<compile_context>
chip_gen: v5e
topology: v5e:2x2
jax: 0.10.0
libtpu: 0.0.40
codegen_flags: <defaults>
</compile_context>

<pallas_src>
import functools

import jax
import jax.numpy as jnp
from jax import lax
from jax.experimental import pallas as pl
from jax.experimental.pallas import tpu as pltpu


def _pick_divisor(n, candidates):
    for c in candidates:
        if n % c == 0:
            return c
    return 1


# ----------------------------- 1x1 conv kernel -----------------------------
def _conv1x1_kernel(x_ref, w_ref, b_ref, o_ref):
    # x_ref: (1, Cin, T)   w_ref: (Cout, Cin)   b_ref: (Cout, 1)   o_ref: (1, Cout, T)
    y = jnp.dot(w_ref[...], x_ref[0], preferred_element_type=jnp.float32)
    o_ref[0] = (y + b_ref[...]).astype(o_ref.dtype)


def conv1x1(x, w, b):
    # x: (B, Cin, HW), w: (Cout, Cin), b: (Cout,)
    B, Cin, HW = x.shape
    Cout = w.shape[0]
    # Lane-dense spatial tiles (multiple of 128 when possible) keep per-step VMEM small
    # and the DMA pipeline streaming at realistic Restormer sizes.
    t = next((c for c in (2048, 1024, 512, 256, 128) if HW % c == 0), HW)
    return pl.pallas_call(
        _conv1x1_kernel,
        out_shape=jax.ShapeDtypeStruct((B, Cout, HW), x.dtype),
        grid=(B, HW // t),
        in_specs=[
            pl.BlockSpec((1, Cin, t), lambda bi, si: (bi, 0, si)),
            pl.BlockSpec((Cout, Cin), lambda bi, si: (0, 0)),   # constant index: resident
            pl.BlockSpec((Cout, 1), lambda bi, si: (0, 0)),
        ],
        out_specs=pl.BlockSpec((1, Cout, t), lambda bi, si: (bi, 0, si)),
        compiler_params=pltpu.CompilerParams(
            dimension_semantics=("parallel", "parallel")),
    )(x, w, b.reshape(Cout, 1))


# ------------------------- depthwise 3x3 conv kernel ------------------------
def _dwconv3x3_kernel(xp_ref, w_ref, b_ref, o_ref, *, H, W, C_BLK):
    # xp_ref: (1, C_BLK, H+2, W+2) VMEM    w_ref: (C_total*9,) SMEM    b_ref: (C_total,) SMEM
    c0 = pl.program_id(1) * C_BLK
    for c in range(C_BLK):                       # static unroll over the channel block
        gc = c0 + c
        acc = jnp.zeros((H, W), jnp.float32)
        for ky in range(3):
            for kx in range(3):
                patch = xp_ref[0, c, ky:ky + H, kx:kx + W]      # static halo window
                acc = acc + w_ref[gc * 9 + 3 * ky + kx] * patch
        o_ref[0, c] = (acc + b_ref[gc]).astype(o_ref.dtype)


def dwconv3x3(x, w, b):
    # x: (B, C, H, W), w: (C, 3, 3) depthwise taps, b: (C,)
    B, C, H, W = x.shape
    c_blk = _pick_divisor(C, (16, 12, 8, 6, 4, 3, 2))
    # TODO(synk): fold the 1-px zero halo into the kernel (masked taps) to drop this
    # extra HBM pass; kept as a wrapper pad for lowering robustness.
    xp = jnp.pad(x, ((0, 0), (0, 0), (1, 1), (1, 1)))
    kernel = functools.partial(_dwconv3x3_kernel, H=H, W=W, C_BLK=c_blk)
    return pl.pallas_call(
        kernel,
        out_shape=jax.ShapeDtypeStruct((B, C, H, W), x.dtype),
        grid=(B, C // c_blk),
        in_specs=[
            pl.BlockSpec((1, c_blk, H + 2, W + 2), lambda bi, ci: (bi, ci, 0, 0)),
            pl.BlockSpec(memory_space=pltpu.MemorySpace.SMEM),   # 1-D taps
            pl.BlockSpec(memory_space=pltpu.MemorySpace.SMEM),   # 1-D bias
        ],
        out_specs=pl.BlockSpec((1, c_blk, H, W), lambda bi, ci: (bi, ci, 0, 0)),
        compiler_params=pltpu.CompilerParams(
            dimension_semantics=("parallel", "parallel")),
    )(xp, w.reshape(C * 9), b)


# ------------------------ channel-attention kernel --------------------------
def _channel_attn_kernel(q_ref, k_ref, v_ref, o_ref):
    # refs are (1, c_head, HW) views directly into the qkv tensor / output
    q = q_ref[0]
    k = k_ref[0]
    v = v_ref[0]
    eps = 1e-12
    # Row norms: one reduce each instead of normalising the full (c_head, HW) slabs.
    rq = 1.0 / jnp.maximum(jnp.sqrt(jnp.sum(q * q, axis=-1, keepdims=True)), eps)
    rk = 1.0 / jnp.maximum(jnp.sqrt(jnp.sum(k * k, axis=-1, keepdims=True)), eps)
    # attn[i, j] = <q_i, k_j> / (|q_i| |k_j|): scale k once, fold rq into the tiny matrix.
    s = lax.dot_general(q, k * rk, (((1,), (1,)), ((), ())),
                        preferred_element_type=jnp.float32)      # (c_head, c_head)
    attn = s * rq
    attn = attn - jnp.max(attn, axis=-1, keepdims=True)
    e = jnp.exp(attn)
    p = e * pl.reciprocal(jnp.sum(e, axis=-1, keepdims=True), approx=True)
    out = jnp.dot(p.astype(v.dtype), v, preferred_element_type=jnp.float32)
    o_ref[0] = out.astype(o_ref.dtype)


def channel_attention(qkv, num_heads):
    # qkv: (B, 3C, HW) laid out [q | k | v] along channels, heads contiguous within each.
    B, C3, HW = qkv.shape
    C = C3 // 3
    c_head = C // num_heads
    assert C3 == 3 * C and C == num_heads * c_head
    assert c_head % 8 == 0, "per-head channel count must be a multiple of 8 (sublane-aligned)"
    blk = (1, c_head, HW)
    q_spec = pl.BlockSpec(blk, lambda b, h: (b, h, 0))
    k_spec = pl.BlockSpec(blk, lambda b, h: (b, num_heads + h, 0))
    v_spec = pl.BlockSpec(blk, lambda b, h: (b, 2 * num_heads + h, 0))
    o_spec = pl.BlockSpec(blk, lambda b, h: (b, h, 0))
    return pl.pallas_call(
        _channel_attn_kernel,
        out_shape=jax.ShapeDtypeStruct((B, C, HW), qkv.dtype),
        grid=(B, num_heads),
        in_specs=[q_spec, k_spec, v_spec],
        out_specs=o_spec,
        compiler_params=pltpu.CompilerParams(
            dimension_semantics=("parallel", "parallel")),
    )(qkv, qkv, qkv)


# ----------------------------- full forward ---------------------------------
def self_attention_forward(x, params, *, num_heads):
    B, C, H, W = x.shape
    HW = H * W
    x2 = x.reshape(B, C, HW)
    qkv = conv1x1(x2, params["w_qkv"], params["b_qkv"])            # (B, 3C, HW)
    qkv = dwconv3x3(qkv.reshape(B, 3 * C, H, W),
                    params["w_dw"], params["b_dw"])                # (B, 3C, H, W)
    out = channel_attention(qkv.reshape(B, 3 * C, HW), num_heads)  # (B, C, HW)
    out = conv1x1(out, params["w_proj"], params["b_proj"])         # (B, C, HW)
    return out.reshape(B, C, H, W)


# ------------------------- pure-JAX reference -------------------------------
def reference_forward(x, params, num_heads):
    B, C, H, W = x.shape
    qkv = lax.conv_general_dilated(
        x, params["w_qkv"].reshape(3 * C, C, 1, 1), (1, 1), "VALID",
        dimension_numbers=("NCHW", "OIHW", "NCHW"))
    qkv = qkv + params["b_qkv"][None, :, None, None]
    qkv = lax.conv_general_dilated(
        qkv, params["w_dw"].reshape(3 * C, 1, 3, 3), (1, 1), ((1, 1), (1, 1)),
        dimension_numbers=("NCHW", "OIHW", "NCHW"), feature_group_count=3 * C)
    qkv = qkv + params["b_dw"][None, :, None, None]
    q, k, v = jnp.split(qkv, 3, axis=1)
    rh = lambda t: t.reshape(B, num_heads, C // num_heads, H * W)
    q, k, v = rh(q), rh(k), rh(v)
    l2n = lambda t: t / jnp.maximum(
        jnp.sqrt(jnp.sum(t * t, axis=-1, keepdims=True)), 1e-12)
    q, k = l2n(q), l2n(k)
    attn = jnp.einsum("bhck,bhdk->bhcd", q, k)
    attn = jax.nn.softmax(attn, axis=-1)
    out = jnp.einsum("bhcd,bhdk->bhck", attn, v).reshape(B, C, H * W)
    out = jnp.einsum("oc,bck->bok", params["w_proj"], out)
    out = out + params["b_proj"][None, :, None]
    return out.reshape(B, C, H, W)


if __name__ == "__main__":
    B, C, H, W = 2, 16, 16, 16
    num_heads = 2  # c_head = 8 (sublane-aligned)

    key = jax.random.PRNGKey(0)
    k_x, k1, k2, k3, k4, k5, k6 = jax.random.split(key, 7)
    x = jax.random.normal(k_x, (B, C, H, W), jnp.float32)
    params = dict(
        w_qkv=0.1 * jax.random.normal(k1, (3 * C, C), jnp.float32),
        b_qkv=0.05 * jax.random.normal(k2, (3 * C,), jnp.float32),
        w_dw=0.1 * jax.random.normal(k3, (3 * C, 3, 3), jnp.float32),
        b_dw=0.05 * jax.random.normal(k4, (3 * C,), jnp.float32),
        w_proj=0.1 * jax.random.normal(k5, (C, C), jnp.float32),
        b_proj=0.05 * jax.random.normal(k6, (C,), jnp.float32),
    )

    fwd = jax.jit(functools.partial(self_attention_forward, num_heads=num_heads))
    out = jax.block_until_ready(fwd(x, params))

    ref = reference_forward(x, params, num_heads)
    assert out.shape == (B, C, H, W)
    assert jnp.allclose(out, ref, atol=1e-2, rtol=1e-2), float(
        jnp.max(jnp.abs(out - ref)))

    print("KERNEL_OK")
</pallas_src>

<mosaic_0001>
module attributes {stable_mosaic.version = 11 : i64} {
  func.func @_conv1x1_kernel(%arg0: i32, %arg1: i32, %arg2: memref<1x16x256xf32, #tpu.memory_space<vmem>>, %arg3: memref<48x16xf32, #tpu.memory_space<vmem>>, %arg4: memref<48x1xf32, #tpu.memory_space<vmem>>, %arg5: memref<1x48x256xf32, #tpu.memory_space<vmem>>) attributes {dimension_semantics = [#tpu.dimension_semantics<parallel>, #tpu.dimension_semantics<parallel>], iteration_bounds = array<i64: 2, 1>, scalar_prefetch = 0 : i64, scratch_operands = 0 : i64, tpu.core_type = #tpu.core_type<tc>, window_params = [{transform_indices = @transform_0, window_bounds = array<i64: 1, 16, 256>}, {pipeline_mode = #tpu.pipeline_mode<synchronous>, transform_indices = @transform_1, window_bounds = array<i64: 48, 16>}, {pipeline_mode = #tpu.pipeline_mode<synchronous>, transform_indices = @transform_2, window_bounds = array<i64: 48, 1>}, {transform_indices = @transform_3, window_bounds = array<i64: 1, 48, 256>}]} {
    %c0 = arith.constant 0 : index
    %c0_0 = arith.constant 0 : index
    %0 = vector.load %arg3[%c0, %c0_0] : memref<48x16xf32, #tpu.memory_space<vmem>>, vector<48x16xf32>
    %c0_1 = arith.constant 0 : index
    %c0_2 = arith.constant 0 : index
    %c0_3 = arith.constant 0 : index
    %1 = vector.load %arg2[%c0_1, %c0_2, %c0_3] : memref<1x16x256xf32, #tpu.memory_space<vmem>>, vector<1x16x256xf32>
    %2 = vector.shape_cast %1 : vector<1x16x256xf32> to vector<16x256xf32>
    %cst = arith.constant dense<0.000000e+00> : vector<48x256xf32>
    %3 = tpu.matmul %0, %2, %cst {dimension_numbers = #tpu.dot_dimension_numbers<[1], [0], [0], [1], [0, 0, 1, 1], [], []>} : vector<48x16xf32>, vector<16x256xf32>, vector<48x256xf32> -> vector<48x256xf32>
    %c0_4 = arith.constant 0 : index
    %c0_5 = arith.constant 0 : index
    %4 = vector.load %arg4[%c0_4, %c0_5] : memref<48x1xf32, #tpu.memory_space<vmem>>, vector<48x1xf32>
    %5 = vector.broadcast %4 : vector<48x1xf32> to vector<48x256xf32>
    %6 = arith.addf %3, %5 : vector<48x256xf32>
    %c0_6 = arith.constant 0 : index
    %c0_7 = arith.constant 0 : index
    %c0_8 = arith.constant 0 : index
    %7 = vector.load %arg5[%c0_6, %c0_7, %c0_8] : memref<1x48x256xf32, #tpu.memory_space<vmem>>, vector<1x48x256xf32>
    %8 = vector.shape_cast %7 : vector<1x48x256xf32> to vector<48x256xf32>
    %9 = vector.shape_cast %6 : vector<48x256xf32> to vector<1x48x256xf32>
    tpu.vector_store %arg5[%c0_6, %c0_7, %c0_8], %9 {strides = array<i32>} : memref<1x48x256xf32, #tpu.memory_space<vmem>>, vector<1x48x256xf32>,
    return
  }
  func.func @transform_0(%arg0: i32, %arg1: i32) -> (i32, i32, i32) {
    %c0_i32 = arith.constant 0 : i32
    %c0_i32_0 = arith.constant 0 : i32
    return %arg0, %c0_i32, %arg1 : i32, i32, i32
  }
  func.func @transform_1(%arg0: i32, %arg1: i32) -> (i32, i32) {
    %c0_i32 = arith.constant 0 : i32
    %c0_i32_0 = arith.constant 0 : i32
    %c0_i32_1 = arith.constant 0 : i32
    return %c0_i32, %c0_i32_0 : i32, i32
  }
  func.func @transform_2(%arg0: i32, %arg1: i32) -> (i32, i32) {
    %c0_i32 = arith.constant 0 : i32
    %c0_i32_0 = arith.constant 0 : i32
    %c0_i32_1 = arith.constant 0 : i32
    return %c0_i32, %c0_i32_0 : i32, i32
  }
  func.func @transform_3(%arg0: i32, %arg1: i32) -> (i32, i32, i32) {
    %c0_i32 = arith.constant 0 : i32
    %c0_i32_0 = arith.constant 0 : i32
    return %arg0, %c0_i32, %arg1 : i32, i32, i32
  }
}

module attributes {stable_mosaic.version = 11 : i64} {
  func.func @_dwconv3x3_kernel(%arg0: i32, %arg1: i32, %arg2: memref<1x16x18x18xf32, #tpu.memory_space<vmem>>, %arg3: memref<432xf32, #tpu.memory_space<smem>>, %arg4: memref<48xf32, #tpu.memory_space<smem>>, %arg5: memref<1x16x16x16xf32, #tpu.memory_space<vmem>>) attributes {dimension_semantics = [#tpu.dimension_semantics<parallel>, #tpu.dimension_semantics<parallel>], iteration_bounds = array<i64: 2, 3>, scalar_prefetch = 0 : i64, scratch_operands = 0 : i64, tpu.core_type = #tpu.core_type<tc>, window_params = [{transform_indices = @transform_0, window_bounds = array<i64: 1, 16, 18, 18>}, {transform_indices = @transform_1, window_bounds = array<i64: 432>}, {transform_indices = @transform_2, window_bounds = array<i64: 48>}, {transform_indices = @transform_3, window_bounds = array<i64: 1, 16, 16, 16>}]} {
    %c16_i32 = arith.constant 16 : i32
    %0 = arith.muli %arg1, %c16_i32 : i32
    %c0_i32 = arith.constant 0 : i32
    %1 = arith.addi %0, %c0_i32 : i32
    %cst = arith.constant 0.000000e+00 : f32
    %2 = vector.broadcast %cst : f32 to vector<16x16xf32>
    %c0 = arith.constant 0 : index
    %c0_0 = arith.constant 0 : index
    %c0_1 = arith.constant 0 : index
    %c0_2 = arith.constant 0 : index
    %3 = vector.load %arg2[%c0, %c0_0, %c0_1, %c0_2] : memref<1x16x18x18xf32, #tpu.memory_space<vmem>>, vector<1x1x16x16xf32>
    %4 = vector.shape_cast %3 : vector<1x1x16x16xf32> to vector<16x16xf32>
    %c9_i32 = arith.constant 9 : i32
    %5 = arith.muli %1, %c9_i32 : i32
    %c0_i32_3 = arith.constant 0 : i32
    %6 = arith.addi %5, %c0_i32_3 : i32
    %c0_i32_4 = arith.constant 0 : i32
    %7 = arith.addi %6, %c0_i32_4 : i32
    %8 = arith.index_cast %7 : i32 to index
    %9 = memref.load %arg3[%8] : memref<432xf32, #tpu.memory_space<smem>>
    %10 = vector.broadcast %9 : f32 to vector<16x16xf32>
    %11 = arith.mulf %10, %4 : vector<16x16xf32>
    %12 = arith.addf %2, %11 : vector<16x16xf32>
    %c0_5 = arith.constant 0 : index
    %c0_6 = arith.constant 0 : index
    %c0_7 = arith.constant 0 : index
    %c1 = arith.constant 1 : index
    %13 = vector.load %arg2[%c0_5, %c0_6, %c0_7, %c1] : memref<1x16x18x18xf32, #tpu.memory_space<vmem>>, vector<1x1x16x16xf32>
    %14 = vector.shape_cast %13 : vector<1x1x16x16xf32> to vector<16x16xf32>
    %c9_i32_8 = arith.constant 9 : i32
    %15 = arith.muli %1, %c9_i32_8 : i32
    %c0_i32_9 = arith.constant 0 : i32
    %16 = arith.addi %15, %c0_i32_9 : i32
    %c1_i32 = arith.constant 1 : i32
    %17 = arith.addi %16, %c1_i32 : i32
    %18 = arith.index_cast %17 : i32 to index
    %19 = memref.load %arg3[%18] : memref<432xf32, #tpu.memory_space<smem>>
    %20 = vector.broadcast %19 : f32 to vector<16x16xf32>
    %21 = arith.mulf %20, %14 : vector<16x16xf32>
    %22 = arith.addf %12, %21 : vector<16x16xf32>
    %c0_10 = arith.constant 0 : index
    %c0_11 = arith.constant 0 : index
    %c0_12 = arith.constant 0 : index
    %c2 = arith.constant 2 : index
    %23 = vector.load %arg2[%c0_10, %c0_11, %c0_12, %c2] : memref<1x16x18x18xf32, #tpu.memory_space<vmem>>, vector<1x1x16x16xf32>
    %24 = vector.shape_cast %23 : vector<1x1x16x16xf32> to vector<16x16xf32>
    %c9_i32_13 = arith.constant 9 : i32
    %25 = arith.muli %1, %c9_i32_13 : i32
    %c0_i32_14 = arith.constant 0 : i32
    %26 = arith.addi %25, %c0_i32_14 : i32
    %c2_i32 = arith.constant 2 : i32
    %27 = arith.addi %26, %c2_i32 : i32
    %28 = arith.index_cast %27 : i32 to index
    %29 = memref.load %arg3[%28] : memref<432xf32, #tpu.memory_space<smem>>
    %30 = vector.broadcast %29 : f32 to vector<16x16xf32>
    %31 = arith.mulf %30, %24 : vector<16x16xf32>
    %32 = arith.addf %22, %31 : vector<16x16xf32>
    %c0_15 = arith.constant 0 : index
    %c0_16 = arith.constant 0 : index
    %c1_17 = arith.constant 1 : index
    %c0_18 = arith.constant 0 : index
    %33 = vector.load %arg2[%c0_15, %c0_16, %c1_17, %c0_18] : memref<1x16x18x18xf32, #tpu.memory_space<vmem>>, vector<1x1x16x16xf32>
    %34 = vector.shape_cast %33 : vector<1x1x16x16xf32> to vector<16x16xf32>
    %c9_i32_19 = arith.constant 9 : i32
    %35 = arith.muli %1, %c9_i32_19 : i32
    %c3_i32 = arith.constant 3 : i32
    %36 = arith.addi %35, %c3_i32 : i32
    %c0_i32_20 = arith.constant 0 : i32
    %37 = arith.addi %36, %c0_i32_20 : i32
    %38 = arith.index_cast %37 : i32 to index
    %39 = memref.load %arg3[%38] : memref<432xf32, #tpu.memory_space<smem>>
    %40 = vector.broadcast %39 : f32 to vector<16x16xf32>
    %41 = arith.mulf %40, %34 : vector<16x16xf32>
    %42 = arith.addf %32, %41 : vector<16x16xf32>
    %c0_21 = arith.constant 0 : index
    %c0_22 = arith.constant 0 : index
    %c1_23 = arith.constant 1 : index
    %c1_24 = arith.constant 1 : index
    %43 = vector.load %arg2[%c0_21, %c0_22, %c1_23, %c1_24] : memref<1x16x18x18xf32, #tpu.memory_space<vmem>>, vector<1x1x16x16xf32>
    %44 = vector.shape_cast %43 : vector<1x1x16x16xf32> to vector<16x16xf32>
    %c9_i32_25 = arith.constant 9 : i32
    %45 = arith.muli %1, %c9_i32_25 : i32
    %c3_i32_26 = arith.constant 3 : i32
    %46 = arith.addi %45, %c3_i32_26 : i32
    %c1_i32_27 = arith.constant 1 : i32
    %47 = arith.addi %46, %c1_i32_27 : i32
    %48 = arith.index_cast %47 : i32 to index
    %49 = memref.load %arg3[%48] : memref<432xf32, #tpu.memory_space<smem>>
    %50 = vector.broadcast %49 : f32 to vector<16x16xf32>
    %51 = arith.mulf %50, %44 : vector<16x16xf32>
    %52 = arith.addf %42, %51 : vector<16x16xf32>
    %c0_28 = arith.constant 0 : index
    %c0_29 = arith.constant 0 : index
    %c1_30 = arith.constant 1 : index
    %c2_31 = arith.constant 2 : index
    %53 = vector.load %arg2[%c0_28, %c0_29, %c1_30, %c2_31] : memref<1x16x18x18xf32, #tpu.memory_space<vmem>>, vector<1x1x16x16xf32>
    %54 = vector.shape_cast %53 : vector<1x1x16x16xf32> to vector<16x16xf32>
    %c9_i32_32 = arith.constant 9 : i32
    %55 = arith.muli %1, %c9_i32_32 : i32
    %c3_i32_33 = arith.constant 3 : i32
    %56 = arith.addi %55, %c3_i32_33 : i32
    %c2_i32_34 = arith.constant 2 : i32
    %57 = arith.addi %56, %c2_i32_34 : i32
    %58 = arith.index_cast %57 : i32 to index
    %59 = memref.load %arg3[%58] : memref<432xf32, #tpu.memory_space<smem>>
    %60 = vector.broadcast %59 : f32 to vector<16x16xf32>
    %61 = arith.mulf %60, %54 : vector<16x16xf32>
    %62 = arith.addf %52, %61 : vector<16x16xf32>
    %c0_35 = arith.constant 0 : index
    %c0_36 = arith.constant 0 : index
    %c2_37 = arith.constant 2 : index
    %c0_38 = arith.constant 0 : index
    %63 = vector.load %arg2[%c0_35, %c0_36, %c2_37, %c0_38] : memref<1x16x18x18xf32, #tpu.memory_space<vmem>>, vector<1x1x16x16xf32>
    %64 = vector.shape_cast %63 : vector<1x1x16x16xf32> to vector<16x16xf32>
    %c9_i32_39 = arith.constant 9 : i32
    %65 = arith.muli %1, %c9_i32_39 : i32
    %c6_i32 = arith.constant 6 : i32
    %66 = arith.addi %65, %c6_i32 : i32
    %c0_i32_40 = arith.constant 0 : i32
    %67 = arith.addi %66, %c0_i32_40 : i32
    %68 = arith.index_cast %67 : i32 to index
    %69 = memref.load %arg3[%68] : memref<432xf32, #tpu.memory_space<smem>>
    %70 = vector.broadcast %69 : f32 to vector<16x16xf32>
    %71 = arith.mulf %70, %64 : vector<16x16xf32>
    %72 = arith.addf %62, %71 : vector<16x16xf32>
    %c0_41 = arith.constant 0 : index
    %c0_42 = arith.constant 0 : index
    %c2_43 = arith.constant 2 : index
    %c1_44 = arith.constant 1 : index
    %73 = vector.load %arg2[%c0_41, %c0_42, %c2_43, %c1_44] : memref<1x16x18x18xf32, #tpu.memory_space<vmem>>, vector<1x1x16x16xf32>
    %74 = vector.shape_cast %73 : vector<1x1x16x16xf32> to vector<16x16xf32>
    %c9_i32_45 = arith.constant 9 : i32
    %75 = arith.muli %1, %c9_i32_45 : i32
    %c6_i32_46 = arith.constant 6 : i32
    %76 = arith.addi %75, %c6_i32_46 : i32
    %c1_i32_47 = arith.constant 1 : i32
    %77 = arith.addi %76, %c1_i32_47 : i32
    %78 = arith.index_cast %77 : i32 to index
    %79 = memref.load %arg3[%78] : memref<432xf32, #tpu.memory_space<smem>>
    %80 = vector.broadcast %79 : f32 to vector<16x16xf32>
    %81 = arith.mulf %80, %74 : vector<16x16xf32>
    %82 = arith.addf %72, %81 : vector<16x16xf32>
    %c0_48 = arith.constant 0 : index
    %c0_49 = arith.constant 0 : index
    %c2_50 = arith.constant 2 : index
    %c2_51 = arith.constant 2 : index
    %83 = vector.load %arg2[%c0_48, %c0_49, %c2_50, %c2_51] : memref<1x16x18x18xf32, #tpu.memory_space<vmem>>, vector<1x1x16x16xf32>
    %84 = vector.shape_cast %83 : vector<1x1x16x16xf32> to vector<16x16xf32>
    %c9_i32_52 = arith.constant 9 : i32
    %85 = arith.muli %1, %c9_i32_52 : i32
    %c6_i32_53 = arith.constant 6 : i32
    %86 = arith.addi %85, %c6_i32_53 : i32
    %c2_i32_54 = arith.constant 2 : i32
    %87 = arith.addi %86, %c2_i32_54 : i32
    %88 = arith.index_cast %87 : i32 to index
    %89 = memref.load %arg3[%88] : memref<432xf32, #tpu.memory_space<smem>>
    %90 = vector.broadcast %89 : f32 to vector<16x16xf32>
    %91 = arith.mulf %90, %84 : vector<16x16xf32>
    %92 = arith.addf %82, %91 : vector<16x16xf32>
    %93 = arith.index_cast %1 : i32 to index
    %94 = memref.load %arg4[%93] : memref<48xf32, #tpu.memory_space<smem>>
    %95 = vector.broadcast %94 : f32 to vector<16x16xf32>
    %96 = arith.addf %92, %95 : vector<16x16xf32>
    %c0_55 = arith.constant 0 : index
    %c0_56 = arith.constant 0 : index
    %c0_57 = arith.constant 0 : index
    %c0_58 = arith.constant 0 : index
    %97 = vector.load %arg5[%c0_55, %c0_56, %c0_57, %c0_58] : memref<1x16x16x16xf32, #tpu.memory_space<vmem>>, vector<1x1x16x16xf32>
    %98 = vector.shape_cast %97 : vector<1x1x16x16xf32> to vector<16x16xf32>
    %99 = vector.shape_cast %96 : vector<16x16xf32> to vector<1x1x16x16xf32>
    tpu.vector_store %arg5[%c0_55, %c0_56, %c0_57, %c0_58], %99 {strides = array<i32>} : memref<1x16x16x16xf32, #tpu.memory_space<vmem>>, vector<1x1x16x16xf32>,
    %c1_i32_59 = arith.constant 1 : i32
    %100 = arith.addi %0, %c1_i32_59 : i32
    %cst_60 = arith.constant 0.000000e+00 : f32
    %101 = vector.broadcast %cst_60 : f32 to vector<16x16xf32>
    %c0_61 = arith.constant 0 : index
    %c1_62 = arith.constant 1 : index
    %c0_63 = arith.constant 0 : index
    %c0_64 = arith.constant 0 : index
    %102 = vector.load %arg2[%c0_61, %c1_62, %c0_63, %c0_64] : memref<1x16x18x18xf32, #tpu.memory_space<vmem>>, vector<1x1x16x16xf32>
    %103 = vector.shape_cast %102 : vector<1x1x16x16xf32> to vector<16x16xf32>
    %c9_i32_65 = arith.constant 9 : i32
    %104 = arith.muli %100, %c9_i32_65 : i32
    %c0_i32_66 = arith.constant 0 : i32
    %105 = arith.addi %104, %c0_i32_66 : i32
    %c0_i32_67 = arith.constant 0 : i32
    %106 = arith.addi %105, %c0_i32_67 : i32
    %107 = arith.index_cast %106 : i32 to index
    %108 = memref.load %arg3[%107] : memref<432xf32, #tpu.memory_space<smem>>
    %109 = vector.broadcast %108 : f32 to vector<16x16xf32>
    %110 = arith.mulf %109, %103 : vector<16x16xf32>
    %111 = arith.addf %101, %110 : vector<16x16xf32>
    %c0_68 = arith.constant 0 : index
    %c1_69 = arith.constant 1 : index
    %c0_70 = arith.constant 0 : index
    %c1_71 = arith.constant 1 : index
    %112 = vector.load %arg2[%c0_68, %c1_69, %c0_70, %c1_71] : memref<1x16x18x18xf32, #tpu.memory_space<vmem>>, vector<1x1x16x16xf32>
    %113 = vector.shape_cast %112 : vector<1x1x16x16xf32> to vector<16x16xf32>
    %c9_i32_72 = arith.constant 9 : i32
    %114 = arith.muli %100, %c9_i32_72 : i32
    %c0_i32_73 = arith.constant 0 : i32
    %115 = arith.addi %114, %c0_i32_73 : i32
    %c1_i32_74 = arith.constant 1 : i32
    %116 = arith.addi %115, %c1_i32_74 : i32
    %117 = arith.index_cast %116 : i32 to index
    %118 = memref.load %arg3[%117] : memref<432xf32, #tpu.memory_space<smem>>
    %119 = vector.broadcast %118 : f32 to vector<16x16xf32>
    %120 = arith.mulf %119, %113 : vector<16x16xf32>
    %121 = arith.addf %111, %120 : vector<16x16xf32>
    %c0_75 = arith.constant 0 : index
    %c1_76 = arith.constant 1 : index
    %c0_77 = arith.constant 0 : index
    %c2_78 = arith.constant 2 : index
    %122 = vector.load %arg2[%c0_75, %c1_76, %c0_77, %c2_78] : memref<1x16x18x18xf32, #tpu.memory_space<vmem>>, vector<1x1x16x16xf32>
    %123 = vector.shape_cast %122 : vector<1x1x16x16xf32> to vector<16x16xf32>
    %c9_i32_79 = arith.constant 9 : i32
    %124 = arith.muli %100, %c9_i32_79 : i32
    %c0_i32_80 = arith.constant 0 : i32
    %125 = arith.addi %124, %c0_i32_80 : i32
    %c2_i32_81 = arith.constant 2 : i32
    %126 = arith.addi %125, %c2_i32_81 : i32
    %127 = arith.index_cast %126 : i32 to index
    %128 = memref.load %arg3[%127] : memref<432xf32, #tpu.memory_space<smem>>
    %129 = vector.broadcast %128 : f32 to vector<16x16xf32>
    %130 = arith.mulf %129, %123 : vector<16x16xf32>
    %131 = arith.addf %121, %130 : vector<16x16xf32>
    %c0_82 = arith.constant 0 : index
    %c1_83 = arith.constant 1 : index
    %c1_84 = arith.constant 1 : index
    %c0_85 = arith.constant 0 : index
    %132 = vector.load %arg2[%c0_82, %c1_83, %c1_84, %c0_85] : memref<1x16x18x18xf32, #tpu.memory_space<vmem>>, vector<1x1x16x16xf32>
    %133 = vector.shape_cast %132 : vector<1x1x16x16xf32> to vector<16x16xf32>
    %c9_i32_86 = arith.constant 9 : i32
    %134 = arith.muli %100, %c9_i32_86 : i32
    %c3_i32_87 = arith.constant 3 : i32
    %135 = arith.addi %134, %c3_i32_87 : i32
    %c0_i32_88 = arith.constant 0 : i32
    %136 = arith.addi %135, %c0_i32_88 : i32
    %137 = arith.index_cast %136 : i32 to index
    %138 = memref.load %arg3[%137] : memref<432xf32, #tpu.memory_space<smem>>
    %139 = vector.broadcast %138 : f32 to vector<16x16xf32>
    %140 = arith.mulf %139, %133 : vector<16x16xf32>
    %141 = arith.addf %131, %140 : vector<16x16xf32>
    %c0_89 = arith.constant 0 : index
    %c1_90 = arith.constant 1 : index
    %c1_91 = arith.constant 1 : index
    %c1_92 = arith.constant 1 : index
    %142 = vector.load %arg2[%c0_89, %c1_90, %c1_91, %c1_92] : memref<1x16x18x18xf32, #tpu.memory_space<vmem>>, vector<1x1x16x16xf32>
    %143 = vector.shape_cast %142 : vector<1x1x16x16xf32> to vector<16x16xf32>
    %c9_i32_93 = arith.constant 9 : i32
    %144 = arith.muli %100, %c9_i32_93 : i32
    %c3_i32_94 = arith.constant 3 : i32
    %145 = arith.addi %144, %c3_i32_94 : i32
    %c1_i32_95 = arith.constant 1 : i32
    %146 = arith.addi %145, %c1_i32_95 : i32
    %147 = arith.index_cast %146 : i32 to index
    %148 = memref.load %arg3[%147] : memref<432xf32, #tpu.memory_space<smem>>
    %149 = vector.broadcast %148 : f32 to vector<16x16xf32>
    %150 = arith.mulf %149, %143 : vector<16x16xf32>
    %151 = arith.addf %141, %150 : vector<16x16xf32>
    %c0_96 = arith.constant 0 : index
    %c1_97 = arith.constant 1 : index
    %c1_98 = arith.constant 1 : index
    %c2_99 = arith.constant 2 : index
    %152 = vector.load %arg2[%c0_96, %c1_97, %c1_98, %c2_99] : memref<1x16x18x18xf32, #tpu.memory_space<vmem>>, vector<1x1x16x16xf32>
    %153 = vector.shape_cast %152 : vector<1x1x16x16xf32> to vector<16x16xf32>
    %c9_i32_100 = arith.constant 9 : i32
    %154 = arith.muli %100, %c9_i32_100 : i32
    %c3_i32_101 = arith.constant 3 : i32
    %155 = arith.addi %154, %c3_i32_101 : i32
    %c2_i32_102 = arith.constant 2 : i32
    %156 = arith.addi %155, %c2_i32_102 : i32
    %157 = arith.index_cast %156 : i32 to index
    %158 = memref.load %arg3[%157] : memref<432xf32, #tpu.memory_space<smem>>
    %159 = vector.broadcast %158 : f32 to vector<16x16xf32>
    %160 = arith.mulf %159, %153 : vector<16x16xf32>
    %161 = arith.addf %151, %160 : vector<16x16xf32>
    %c0_103 = arith.constant 0 : index
    %c1_104 = arith.constant 1 : index
    %c2_105 = arith.constant 2 : index
    %c0_106 = arith.constant 0 : index
    %162 = vector.load %arg2[%c0_103, %c1_104, %c2_105, %c0_106] : memref<1x16x18x18xf32, #tpu.memory_space<vmem>>, vector<1x1x16x16xf32>
    %163 = vector.shape_cast %162 : vector<1x1x16x16xf32> to vector<16x16xf32>
    %c9_i32_107 = arith.constant 9 : i32
    %164 = arith.muli %100, %c9_i32_107 : i32
    %c6_i32_108 = arith.constant 6 : i32
    %165 = arith.addi %164, %c6_i32_108 : i32
    %c0_i32_109 = arith.constant 0 : i32
    %166 = arith.addi %165, %c0_i32_109 : i32
    %167 = arith.index_cast %166 : i32 to index
    %168 = memref.load %arg3[%167] : memref<432xf32, #tpu.memory_space<smem>>
    %169 = vector.broadcast %168 : f32 to vector<16x16xf32>
    %170 = arith.mulf %169, %163 : vector<16x16xf32>
    %171 = arith.addf %161, %170 : vector<16x16xf32>
    %c0_110 = arith.constant 0 : index
    %c1_111 = arith.constant 1 : index
    %c2_112 = arith.constant 2 : index
    %c1_113 = arith.constant 1 : index
    %172 = vector.load %arg2[%c0_110, %c1_111, %c2_112, %c1_113] : memref<1x16x18x18xf32, #tpu.memory_space<vmem>>, vector<1x1x16x16xf32>
    %173 = vector.shape_cast %172 : vector<1x1x16x16xf32> to vector<16x16xf32>
    %c9_i32_114 = arith.constant 9 : i32
    %174 = arith.muli %100, %c9_i32_114 : i32
    %c6_i32_115 = arith.constant 6 : i32
    %175 = arith.addi %174, %c6_i32_115 : i32
    %c1_i32_116 = arith.constant 1 : i32
    %176 = arith.addi %175, %c1_i32_116 : i32
    %177 = arith.index_cast %176 : i32 to index
    %178 = memref.load %arg3[%177] : memref<432xf32, #tpu.memory_space<smem>>
    %179 = vector.broadcast %178 : f32 to vector<16x16xf32>
    %180 = arith.mulf %179, %173 : vector<16x16xf32>
    %181 = arith.addf %171, %180 : vector<16x16xf32>
    %c0_117 = arith.constant 0 : index
    %c1_118 = arith.constant 1 : index
    %c2_119 = arith.constant 2 : index
    %c2_120 = arith.constant 2 : index
    %182 = vector.load %arg2[%c0_117, %c1_118, %c2_119, %c2_120] : memref<1x16x18x18xf32, #tpu.memory_space<vmem>>, vector<1x1x16x16xf32>
    %183 = vector.shape_cast %182 : vector<1x1x16x16xf32> to vector<16x16xf32>
    %c9_i32_121 = arith.constant 9 : i32
    %184 = arith.muli %100, %c9_i32_121 : i32
    %c6_i32_122 = arith.constant 6 : i32
    %185 = arith.addi %184, %c6_i32_122 : i32
    %c2_i32_123 = arith.constant 2 : i32
    %186 = arith.addi %185, %c2_i32_123 : i32
    %187 = arith.index_cast %186 : i32 to index
    %188 = memref.load %arg3[%187] : memref<432xf32, #tpu.memory_space<smem>>
    %189 = vector.broadcast %188 : f32 to vector<16x16xf32>
    %190 = arith.mulf %189, %183 : vector<16x16xf32>
    %191 = arith.addf %181, %190 : vector<16x16xf32>
    %192 = arith.index_cast %100 : i32 to index
    %193 = memref.load %arg4[%192] : memref<48xf32, #tpu.memory_space<smem>>
    %194 = vector.broadcast %193 : f32 to vector<16x16xf32>
    %195 = arith.addf %191, %194 : vector<16x16xf32>
    %c0_124 = arith.constant 0 : index
    %c1_125 = arith.constant 1 : index
    %c0_126 = arith.constant 0 : index
    %c0_127 = arith.constant 0 : index
    %196 = vector.load %arg5[%c0_124, %c1_125, %c0_126, %c0_127] : memref<1x16x16x16xf32, #tpu.memory_space<vmem>>, vector<1x1x16x16xf32>
    %197 = vector.shape_cast %196 : vector<1x1x16x16xf32> to vector<16x16xf32>
    %198 = vector.shape_cast %195 : vector<16x16xf32> to vector<1x1x16x16xf32>
    tpu.vector_store %arg5[%c0_124, %c1_125, %c0_126, %c0_127], %198 {strides = array<i32>} : memref<1x16x16x16xf32, #tpu.memory_space<vmem>>, vector<1x1x16x16xf32>,
    %c2_i32_128 = arith.constant 2 : i32
    %199 = arith.addi %0, %c2_i32_128 : i32
    %cst_129 = arith.constant 0.000000e+00 : f32
    %200 = vector.broadcast %cst_129 : f32 to vector<16x16xf32>
    %c0_130 = arith.constant 0 : index
    %c2_131 = arith.constant 2 : index
    %c0_132 = arith.constant 0 : index
    %c0_133 = arith.constant 0 : index
    %201 = vector.load %arg2[%c0_130, %c2_131, %c0_132, %c0_133] : memref<1x16x18x18xf32, #tpu.memory_space<vmem>>, vector<1x1x16x16xf32>
    %202 = vector.shape_cast %201 : vector<1x1x16x16xf32> to vector<16x16xf32>
    %c9_i32_134 = arith.constant 9 : i32
    %203 = arith.muli %199, %c9_i32_134 : i32
    %c0_i32_135 = arith.constant 0 : i32
    %204 = arith.addi %203, %c0_i32_135 : i32
    %c0_i32_136 = arith.constant 0 : i32
    %205 = arith.addi %204, %c0_i32_136 : i32
    %206 = arith.index_cast %205 : i32 to index
    %207 = memref.load %arg3[%206] : memref<432xf32, #tpu.memory_space<smem>>
    %208 = vector.broadcast %207 : f32 to vector<16x16xf32>
    %209 = arith.mulf %208, %202 : vector<16x16xf32>
    %210 = arith.addf %200, %209 : vector<16x16xf32>
    %c0_137 = arith.constant 0 : index
    %c2_138 = arith.constant 2 : index
    %c0_139 = arith.constant 0 : index
    %c1_140 = arith.constant 1 : index
    %211 = vector.load %arg2[%c0_137, %c2_138, %c0_139, %c1_140] : memref<1x16x18x18xf32, #tpu.memory_space<vmem>>, vector<1x1x16x16xf32>
    %212 = vector.shape_cast %211 : vector<1x1x16x16xf32> to vector<16x16xf32>
    %c9_i32_141 = arith.constant 9 : i32
    %213 = arith.muli %199, %c9_i32_141 : i32
    %c0_i32_142 = arith.constant 0 : i32
    %214 = arith.addi %213, %c0_i32_142 : i32
    %c1_i32_143 = arith.constant 1 : i32
    %215 = arith.addi %214, %c1_i32_143 : i32
    %216 = arith.index_cast %215 : i32 to index
    %217 = memref.load %arg3[%216] : memref<432xf32, #tpu.memory_space<smem>>
    %218 = vector.broadcast %217 : f32 to vector<16x16xf32>
    %219 = arith.mulf %218, %212 : vector<16x16xf32>
    %220 = arith.addf %210, %219 : vector<16x16xf32>
    %c0_144 = arith.constant 0 : index
    %c2_145 = arith.constant 2 : index
    %c0_146 = arith.constant 0 : index
    %c2_147 = arith.constant 2 : index
    %221 = vector.load %arg2[%c0_144, %c2_145, %c0_146, %c2_147] : memref<1x16x18x18xf32, #tpu.memory_space<vmem>>, vector<1x1x16x16xf32>
    %222 = vector.shape_cast %221 : vector<1x1x16x16xf32> to vector<16x16xf32>
    %c9_i32_148 = arith.constant 9 : i32
    %223 = arith.muli %199, %c9_i32_148 : i32
    %c0_i32_149 = arith.constant 0 : i32
    %224 = arith.addi %223, %c0_i32_149 : i32
    %c2_i32_150 = arith.constant 2 : i32
    %225 = arith.addi %224, %c2_i32_150 : i32
    %226 = arith.index_cast %225 : i32 to index
    %227 = memref.load %arg3[%226] : memref<432xf32, #tpu.memory_space<smem>>
    %228 = vector.broadcast %227 : f32 to vector<16x16xf32>
    %229 = arith.mulf %228, %222 : vector<16x16xf32>
    %230 = arith.addf %220, %229 : vector<16x16xf32>
    %c0_151 = arith.constant 0 : index
    %c2_152 = arith.constant 2 : index
    %c1_153 = arith.constant 1 : index
    %c0_154 = arith.constant 0 : index
    %231 = vector.load %arg2[%c0_151, %c2_152, %c1_153, %c0_154] : memref<1x16x18x18xf32, #tpu.memory_space<vmem>>, vector<1x1x16x16xf32>
    %232 = vector.shape_cast %231 : vector<1x1x16x16xf32> to vector<16x16xf32>
    %c9_i32_155 = arith.constant 9 : i32
    %233 = arith.muli %199, %c9_i32_155 : i32
    %c3_i32_156 = arith.constant 3 : i32
    %234 = arith.addi %233, %c3_i32_156 : i32
    %c0_i32_157 = arith.constant 0 : i32
    %235 = arith.addi %234, %c0_i32_157 : i32
    %236 = arith.index_cast %235 : i32 to index
    %237 = memref.load %arg3[%236] : memref<432xf32, #tpu.memory_space<smem>>
    %238 = vector.broadcast %237 : f32 to vector<16x16xf32>
    %239 = arith.mulf %238, %232 : vector<16x16xf32>
    %240 = arith.addf %230, %239 : vector<16x16xf32>
    %c0_158 = arith.constant 0 : index
    %c2_159 = arith.constant 2 : index
    %c1_160 = arith.constant 1 : index
    %c1_161 = arith.constant 1 : index
    %241 = vector.load %arg2[%c0_158, %c2_159, %c1_160, %c1_161] : memref<1x16x18x18xf32, #tpu.memory_space<vmem>>, vector<1x1x16x16xf32>
    %242 = vector.shape_cast %241 : vector<1x1x16x16xf32> to vector<16x16xf32>
    %c9_i32_162 = arith.constant 9 : i32
    %243 = arith.muli %199, %c9_i32_162 : i32
    %c3_i32_163 = arith.constant 3 : i32
    %244 = arith.addi %243, %c3_i32_163 : i32
    %c1_i32_164 = arith.constant 1 : i32
    %245 = arith.addi %244, %c1_i32_164 : i32
    %246 = arith.index_cast %245 : i32 to index
    %247 = memref.load %arg3[%246] : memref<432xf32, #tpu.memory_space<smem>>
    %248 = vector.broadcast %247 : f32 to vector<16x16xf32>
    %249 = arith.mulf %248, %242 : vector<16x16xf32>
    %250 = arith.addf %240, %249 : vector<16x16xf32>
    %c0_165 = arith.constant 0 : index
    %c2_166 = arith.constant 2 : index
    %c1_167 = arith.constant 1 : index
    %c2_168 = arith.constant 2 : index
    %251 = vector.load %arg2[%c0_165, %c2_166, %c1_167, %c2_168] : memref<1x16x18x18xf32, #tpu.memory_space<vmem>>, vector<1x1x16x16xf32>
    %252 = vector.shape_cast %251 : vector<1x1x16x16xf32> to vector<16x16xf32>
    %c9_i32_169 = arith.constant 9 : i32
    %253 = arith.muli %199, %c9_i32_169 : i32
    %c3_i32_170 = arith.constant 3 : i32
    %254 = arith.addi %253, %c3_i32_170 : i32
    %c2_i32_171 = arith.constant 2 : i32
    %255 = arith.addi %254, %c2_i32_171 : i32
    %256 = arith.index_cast %255 : i32 to index
    %257 = memref.load %arg3[%256] : memref<432xf32, #tpu.memory_space<smem>>
    %258 = vector.broadcast %257 : f32 to vector<16x16xf32>
    %259 = arith.mulf %258, %252 : vector<16x16xf32>
    %260 = arith.addf %250, %259 : vector<16x16xf32>
    %c0_172 = arith.constant 0 : index
    %c2_173 = arith.constant 2 : index
    %c2_174 = arith.constant 2 : index
    %c0_175 = arith.constant 0 : index
    %261 = vector.load %arg2[%c0_172, %c2_173, %c2_174, %c0_175] : memref<1x16x18x18xf32, #tpu.memory_space<vmem>>, vector<1x1x16x16xf32>
    %262 = vector.shape_cast %261 : vector<1x1x16x16xf32> to vector<16x16xf32>
    %c9_i32_176 = arith.constant 9 : i32
    %263 = arith.muli %199, %c9_i32_176 : i32
    %c6_i32_177 = arith.constant 6 : i32
    %264 = arith.addi %263, %c6_i32_177 : i32
    %c0_i32_178 = arith.constant 0 : i32
    %265 = arith.addi %264, %c0_i32_178 : i32
    %266 = arith.index_cast %265 : i32 to index
    %267 = memref.load %arg3[%266] : memref<432xf32, #tpu.memory_space<smem>>
    %268 = vector.broadcast %267 : f32 to vector<16x16xf32>
    %269 = arith.mulf %268, %262 : vector<16x16xf32>
    %270 = arith.addf %260, %269 : vector<16x16xf32>
    %c0_179 = arith.constant 0 : index
    %c2_180 = arith.constant 2 : index
    %c2_181 = arith.constant 2 : index
    %c1_182 = arith.constant 1 : index
    %271 = vector.load %arg2[%c0_179, %c2_180, %c2_181, %c1_182] : memref<1x16x18x18xf32, #tpu.memory_space<vmem>>, vector<1x1x16x16xf32>
    %272 = vector.shape_cast %271 : vector<1x1x16x16xf32> to vector<16x16xf32>
    %c9_i32_183 = arith.constant 9 : i32
    %273 = arith.muli %199, %c9_i32_183 : i32
    %c6_i32_184 = arith.constant 6 : i32
    %274 = arith.addi %273, %c6_i32_184 : i32
    %c1_i32_185 = arith.constant 1 : i32
    %275 = arith.addi %274, %c1_i32_185 : i32
    %276 = arith.index_cast %275 : i32 to index
    %277 = memref.load %arg3[%276] : memref<432xf32, #tpu.memory_space<smem>>
    %278 = vector.broadcast %277 : f32 to vector<16x16xf32>
    %279 = arith.mulf %278, %272 : vector<16x16xf32>
    %280 = arith.addf %270, %279 : vector<16x16xf32>
    %c0_186 = arith.constant 0 : index
    %c2_187 = arith.constant 2 : index
    %c2_188 = arith.constant 2 : index
    %c2_189 = arith.constant 2 : index
    %281 = vector.load %arg2[%c0_186, %c2_187, %c2_188, %c2_189] : memref<1x16x18x18xf32, #tpu.memory_space<vmem>>, vector<1x1x16x16xf32>
    %282 = vector.shape_cast %281 : vector<1x1x16x16xf32> to vector<16x16xf32>
    %c9_i32_190 = arith.constant 9 : i32
    %283 = arith.muli %199, %c9_i32_190 : i32
    %c6_i32_191 = arith.constant 6 : i32
    %284 = arith.addi %283, %c6_i32_191 : i32
    %c2_i32_192 = arith.constant 2 : i32
    %285 = arith.addi %284, %c2_i32_192 : i32
    %286 = arith.index_cast %285 : i32 to index
    %287 = memref.load %arg3[%286] : memref<432xf32, #tpu.memory_space<smem>>
    %288 = vector.broadcast %287 : f32 to vector<16x16xf32>
    %289 = arith.mulf %288, %282 : vector<16x16xf32>
    %290 = arith.addf %280, %289 : vector<16x16xf32>
    %291 = arith.index_cast %199 : i32 to index
    %292 = memref.load %arg4[%291] : memref<48xf32, #tpu.memory_space<smem>>
    %293 = vector.broadcast %292 : f32 to vector<16x16xf32>
    %294 = arith.addf %290, %293 : vector<16x16xf32>
    %c0_193 = arith.constant 0 : index
    %c2_194 = arith.constant 2 : index
    %c0_195 = arith.constant 0 : index
    %c0_196 = arith.constant 0 : index
    %295 = vector.load %arg5[%c0_193, %c2_194, %c0_195, %c0_196] : memref<1x16x16x16xf32, #tpu.memory_space<vmem>>, vector<1x1x16x16xf32>
    %296 = vector.shape_cast %295 : vector<1x1x16x16xf32> to vector<16x16xf32>
    %297 = vector.shape_cast %294 : vector<16x16xf32> to vector<1x1x16x16xf32>
    tpu.vector_store %arg5[%c0_193, %c2_194, %c0_195, %c0_196], %297 {strides = array<i32>} : memref<1x16x16x16xf32, #tpu.memory_space<vmem>>, vector<1x1x16x16xf32>,
    %c3_i32_197 = arith.constant 3 : i32
    %298 = arith.addi %0, %c3_i32_197 : i32
    %cst_198 = arith.constant 0.000000e+00 : f32
    %299 = vector.broadcast %cst_198 : f32 to vector<16x16xf32>
    %c0_199 = arith.constant 0 : index
    %c3 = arith.constant 3 : index
    %c0_200 = arith.constant 0 : index
    %c0_201 = arith.constant 0 : index
    %300 = vector.load %arg2[%c0_199, %c3, %c0_200, %c0_201] : memref<1x16x18x18xf32, #tpu.memory_space<vmem>>, vector<1x1x16x16xf32>
    %301 = vector.shape_cast %300 : vector<1x1x16x16xf32> to vector<16x16xf32>
    %c9_i32_202 = arith.constant 9 : i32
    %302 = arith.muli %298, %c9_i32_202 : i32
    %c0_i32_203 = arith.constant 0 : i32
    %303 = arith.addi %302, %c0_i32_203 : i32
    %c0_i32_204 = arith.constant 0 : i32
    %304 = arith.addi %303, %c0_i32_204 : i32
    %305 = arith.index_cast %304 : i32 to index
    %306 = memref.load %arg3[%305] : memref<432xf32, #tpu.memory_space<smem>>
    %307 = vector.broadcast %306 : f32 to vector<16x16xf32>
    %308 = arith.mulf %307, %301 : vector<16x16xf32>
    %309 = arith.addf %299, %308 : vector<16x16xf32>
    %c0_205 = arith.constant 0 : index
    %c3_206 = arith.constant 3 : index
    %c0_207 = arith.constant 0 : index
    %c1_208 = arith.constant 1 : index
    %310 = vector.load %arg2[%c0_205, %c3_206, %c0_207, %c1_208] : memref<1x16x18x18xf32, #tpu.memory_space<vmem>>, vector<1x1x16x16xf32>
    %311 = vector.shape_cast %310 : vector<1x1x16x16xf32> to vector<16x16xf32>
    %c9_i32_209 = arith.constant 9 : i32
    %312 = arith.muli %298, %c9_i32_209 : i32
    %c0_i32_210 = arith.constant 0 : i32
    %313 = arith.addi %312, %c0_i32_210 : i32
    %c1_i32_211 = arith.constant 1 : i32
    %314 = arith.addi %313, %c1_i32_211 : i32
    %315 = arith.index_cast %314 : i32 to index
    %316 = memref.load %arg3[%315] : memref<432xf32, #tpu.memory_space<smem>>
    %317 = vector.broadcast %316 : f32 to vector<16x16xf32>
    %318 = arith.mulf %317, %311 : vector<16x16xf32>
    %319 = arith.addf %309, %318 : vector<16x16xf32>
    %c0_212 = arith.constant 0 : index
    %c3_213 = arith.constant 3 : index
    %c0_214 = arith.constant 0 : index
    %c2_215 = arith.constant 2 : index
    %320 = vector.load %arg2[%c0_212, %c3_213, %c0_214, %c2_215] : memref<1x16x18x18xf32, #tpu.memory_space<vmem>>, vector<1x1x16x16xf32>
    %321 = vector.shape_cast %320 : vector<1x1x16x16xf32> to vector<16x16xf32>
    %c9_i32_216 = arith.constant 9 : i32
    %322 = arith.muli %298, %c9_i32_216 : i32
    %c0_i32_217 = arith.constant 0 : i32
    %323 = arith.addi %322, %c0_i32_217 : i32
    %c2_i32_218 = arith.constant 2 : i32
    %324 = arith.addi %323, %c2_i32_218 : i32
    %325 = arith.index_cast %324 : i32 to index
    %326 = memref.load %arg3[%325] : memref<432xf32, #tpu.memory_space<smem>>
    %327 = vector.broadcast %326 : f32 to vector<16x16xf32>
    %328 = arith.mulf %327, %321 : vector<16x16xf32>
    %329 = arith.addf %319, %328 : vector<16x16xf32>
    %c0_219 = arith.constant 0 : index
    %c3_220 = arith.constant 3 : index
    %c1_221 = arith.constant 1 : index
    %c0_222 = arith.constant 0 : index
    %330 = vector.load %arg2[%c0_219, %c3_220, %c1_221, %c0_222] : memref<1x16x18x18xf32, #tpu.memory_space<vmem>>, vector<1x1x16x16xf32>
    %331 = vector.shape_cast %330 : vector<1x1x16x16xf32> to vector<16x16xf32>
    %c9_i32_223 = arith.constant 9 : i32
    %332 = arith.muli %298, %c9_i32_223 : i32
    %c3_i32_224 = arith.constant 3 : i32
    %333 = arith.addi %332, %c3_i32_224 : i32
    %c0_i32_225 = arith.constant 0 : i32
    %334 = arith.addi %333, %c0_i32_225 : i32
    %335 = arith.index_cast %334 : i32 to index
    %336 = memref.load %arg3[%335] : memref<432xf32, #tpu.memory_space<smem>>
    %337 = vector.broadcast %336 : f32 to vector<16x16xf32>
    %338 = arith.mulf %337, %331 : vector<16x16xf32>
    %339 = arith.addf %329, %338 : vector<16x16xf32>
    %c0_226 = arith.constant 0 : index
    %c3_227 = arith.constant 3 : index
    %c1_228 = arith.constant 1 : index
    %c1_229 = arith.constant 1 : index
    %340 = vector.load %arg2[%c0_226, %c3_227, %c1_228, %c1_229] : memref<1x16x18x18xf32, #tpu.memory_space<vmem>>, vector<1x1x16x16xf32>
    %341 = vector.shape_cast %340 : vector<1x1x16x16xf32> to vector<16x16xf32>
    %c9_i32_230 = arith.constant 9 : i32
    %342 = arith.muli %298, %c9_i32_230 : i32
    %c3_i32_231 = arith.constant 3 : i32
    %343 = arith.addi %342, %c3_i32_231 : i32
    %c1_i32_232 = arith.constant 1 : i32
    %344 = arith.addi %343, %c1_i32_232 : i32
    %345 = arith.index_cast %344 : i32 to index
    %346 = memref.load %arg3[%345] : memref<432xf32, #tpu.memory_space<smem>>
    %347 = vector.broadcast %346 : f32 to vector<16x16xf32>
    %348 = arith.mulf %347, %341 : vector<16x16xf32>
    %349 = arith.addf %339, %348 : vector<16x16xf32>
    %c0_233 = arith.constant 0 : index
    %c3_234 = arith.constant 3 : index
    %c1_235 = arith.constant 1 : index
    %c2_236 = arith.constant 2 : index
    %350 = vector.load %arg2[%c0_233, %c3_234, %c1_235, %c2_236] : memref<1x16x18x18xf32, #tpu.memory_space<vmem>>, vector<1x1x16x16xf32>
    %351 = vector.shape_cast %350 : vector<1x1x16x16xf32> to vector<16x16xf32>
    %c9_i32_237 = arith.constant 9 : i32
    %352 = arith.muli %298, %c9_i32_237 : i32
    %c3_i32_238 = arith.constant 3 : i32
    %353 = arith.addi %352, %c3_i32_238 : i32
    %c2_i32_239 = arith.constant 2 : i32
    %354 = arith.addi %353, %c2_i32_239 : i32
    %355 = arith.index_cast %354 : i32 to index
    %356 = memref.load %arg3[%355] : memref<432xf32, #tpu.memory_space<smem>>
    %357 = vector.broadcast %356 : f32 to vector<16x16xf32>
    %358 = arith.mulf %357, %351 : vector<16x16xf32>
    %359 = arith.addf %349, %358 : vector<16x16xf32>
    %c0_240 = arith.constant 0 : index
    %c3_241 = arith.constant 3 : index
    %c2_242 = arith.constant 2 : index
    %c0_243 = arith.constant 0 : index
    %360 = vector.load %arg2[%c0_240, %c3_241, %c2_242, %c0_243] : memref<1x16x18x18xf32, #tpu.memory_space<vmem>>, vector<1x1x16x16xf32>
    %361 = vector.shape_cast %360 : vector<1x1x16x16xf32> to vector<16x16xf32>
    %c9_i32_244 = arith.constant 9 : i32
    %362 = arith.muli %298, %c9_i32_244 : i32
    %c6_i32_245 = arith.constant 6 : i32
    %363 = arith.addi %362, %c6_i32_245 : i32
    %c0_i32_246 = arith.constant 0 : i32
    %364 = arith.addi %363, %c0_i32_246 : i32
    %365 = arith.index_cast %364 : i32 to index
    %366 = memref.load %arg3[%365] : memref<432xf32, #tpu.memory_space<smem>>
    %367 = vector.broadcast %366 : f32 to vector<16x16xf32>
    %368 = arith.mulf %367, %361 : vector<16x16xf32>
    %369 = arith.addf %359, %368 : vector<16x16xf32>
    %c0_247 = arith.constant 0 : index
    %c3_248 = arith.constant 3 : index
    %c2_249 = arith.constant 2 : index
    %c1_250 = arith.constant 1 : index
    %370 = vector.load %arg2[%c0_247, %c3_248, %c2_249, %c1_250] : memref<1x16x18x18xf32, #tpu.memory_space<vmem>>, vector<1x1x16x16xf32>
    %371 = vector.shape_cast %370 : vector<1x1x16x16xf32> to vector<16x16xf32>
    %c9_i32_251 = arith.constant 9 : i32
    %372 = arith.muli %298, %c9_i32_251 : i32
    %c6_i32_252 = arith.constant 6 : i32
    %373 = arith.addi %372, %c6_i32_252 : i32
    %c1_i32_253 = arith.constant 1 : i32
    %374 = arith.addi %373, %c1_i32_253 : i32
    %375 = arith.index_cast %374 : i32 to index
    %376 = memref.load %arg3[%375] : memref<432xf32, #tpu.memory_space<smem>>
    %377 = vector.broadcast %376 : f32 to vector<16x16xf32>
    %378 = arith.mulf %377, %371 : vector<16x16xf32>
    %379 = arith.addf %369, %378 : vector<16x16xf32>
    %c0_254 = arith.constant 0 : index
    %c3_255 = arith.constant 3 : index
    %c2_256 = arith.constant 2 : index
    %c2_257 = arith.constant 2 : index
    %380 = vector.load %arg2[%c0_254, %c3_255, %c2_256, %c2_257] : memref<1x16x18x18xf32, #tpu.memory_space<vmem>>, vector<1x1x16x16xf32>
    %381 = vector.shape_cast %380 : vector<1x1x16x16xf32> to vector<16x16xf32>
    %c9_i32_258 = arith.constant 9 : i32
    %382 = arith.muli %298, %c9_i32_258 : i32
    %c6_i32_259 = arith.constant 6 : i32
    %383 = arith.addi %382, %c6_i32_259 : i32
    %c2_i32_260 = arith.constant 2 : i32
    %384 = arith.addi %383, %c2_i32_260 : i32
    %385 = arith.index_cast %384 : i32 to index
    %386 = memref.load %arg3[%385] : memref<432xf32, #tpu.memory_space<smem>>
    %387 = vector.broadcast %386 : f32 to vector<16x16xf32>
    %388 = arith.mulf %387, %381 : vector<16x16xf32>
    %389 = arith.addf %379, %388 : vector<16x16xf32>
    %390 = arith.index_cast %298 : i32 to index
    %391 = memref.load %arg4[%390] : memref<48xf32, #tpu.memory_space<smem>>
    %392 = vector.broadcast %391 : f32 to vector<16x16xf32>
    %393 = arith.addf %389, %392 : vector<16x16xf32>
    %c0_261 = arith.constant 0 : index
    %c3_262 = arith.constant 3 : index
    %c0_263 = arith.constant 0 : index
    %c0_264 = arith.constant 0 : index
    %394 = vector.load %arg5[%c0_261, %c3_262, %c0_263, %c0_264] : memref<1x16x16x16xf32, #tpu.memory_space<vmem>>, vector<1x1x16x16xf32>
    %395 = vector.shape_cast %394 : vector<1x1x16x16xf32> to vector<16x16xf32>
    %396 = vector.shape_cast %393 : vector<16x16xf32> to vector<1x1x16x16xf32>
    tpu.vector_store %arg5[%c0_261, %c3_262, %c0_263, %c0_264], %396 {strides = array<i32>} : memref<1x16x16x16xf32, #tpu.memory_space<vmem>>, vector<1x1x16x16xf32>,
    %c4_i32 = arith.constant 4 : i32
    %397 = arith.addi %0, %c4_i32 : i32
    %cst_265 = arith.constant 0.000000e+00 : f32
    %398 = vector.broadcast %cst_265 : f32 to vector<16x16xf32>
    %c0_266 = arith.constant 0 : index
    %c4 = arith.constant 4 : index
    %c0_267 = arith.constant 0 : index
    %c0_268 = arith.constant 0 : index
    %399 = vector.load %arg2[%c0_266, %c4, %c0_267, %c0_268] : memref<1x16x18x18xf32, #tpu.memory_space<vmem>>, vector<1x1x16x16xf32>
    %400 = vector.shape_cast %399 : vector<1x1x16x16xf32> to vector<16x16xf32>
    %c9_i32_269 = arith.constant 9 : i32
    %401 = arith.muli %397, %c9_i32_269 : i32
    %c0_i32_270 = arith.constant 0 : i32
    %402 = arith.addi %401, %c0_i32_270 : i32
    %c0_i32_271 = arith.constant 0 : i32
    %403 = arith.addi %402, %c0_i32_271 : i32
    %404 = arith.index_cast %403 : i32 to index
    %405 = memref.load %arg3[%404] : memref<432xf32, #tpu.memory_space<smem>>
    %406 = vector.broadcast %405 : f32 to vector<16x16xf32>
    %407 = arith.mulf %406, %400 : vector<16x16xf32>
    %408 = arith.addf %398, %407 : vector<16x16xf32>
    %c0_272 = arith.constant 0 : index
    %c4_273 = arith.constant 4 : index
    %c0_274 = arith.constant 0 : index
    %c1_275 = arith.constant 1 : index
    %409 = vector.load %arg2[%c0_272, %c4_273, %c0_274, %c1_275] : memref<1x16x18x18xf32, #tpu.memory_space<vmem>>, vector<1x1x16x16xf32>
    %410 = vector.shape_cast %409 : vector<1x1x16x16xf32> to vector<16x16xf32>
    %c9_i32_276 = arith.constant 9 : i32
    %411 = arith.muli %397, %c9_i32_276 : i32
    %c0_i32_277 = arith.constant 0 : i32
    %412 = arith.addi %411, %c0_i32_277 : i32
    %c1_i32_278 = arith.constant 1 : i32
    %413 = arith.addi %412, %c1_i32_278 : i32
    %414 = arith.index_cast %413 : i32 to index
    %415 = memref.load %arg3[%414] : memref<432xf32, #tpu.memory_space<smem>>
    %416 = vector.broadcast %415 : f32 to vector<16x16xf32>
    %417 = arith.mulf %416, %410 : vector<16x16xf32>
    %418 = arith.addf %408, %417 : vector<16x16xf32>
    %c0_279 = arith.constant 0 : index
    %c4_280 = arith.constant 4 : index
    %c0_281 = arith.constant 0 : index
    %c2_282 = arith.constant 2 : index
    %419 = vector.load %arg2[%c0_279, %c4_280, %c0_281, %c2_282] : memref<1x16x18x18xf32, #tpu.memory_space<vmem>>, vector<1x1x16x16xf32>
    %420 = vector.shape_cast %419 : vector<1x1x16x16xf32> to vector<16x16xf32>
    %c9_i32_283 = arith.constant 9 : i32
    %421 = arith.muli %397, %c9_i32_283 : i32
    %c0_i32_284 = arith.constant 0 : i32
    %422 = arith.addi %421, %c0_i32_284 : i32
    %c2_i32_285 = arith.constant 2 : i32
    %423 = arith.addi %422, %c2_i32_285 : i32
    %424 = arith.index_cast %423 : i32 to index
    %425 = memref.load %arg3[%424] : memref<432xf32, #tpu.memory_space<smem>>
    %426 = vector.broadcast %425 : f32 to vector<16x16xf32>
    %427 = arith.mulf %426, %420 : vector<16x16xf32>
    %428 = arith.addf %418, %427 : vector<16x16xf32>
    %c0_286 = arith.constant 0 : index
    %c4_287 = arith.constant 4 : index
    %c1_288 = arith.constant 1 : index
    %c0_289 = arith.constant 0 : index
    %429 = vector.load %arg2[%c0_286, %c4_287, %c1_288, %c0_289] : memref<1x16x18x18xf32, #tpu.memory_space<vmem>>, vector<1x1x16x16xf32>
    %430 = vector.shape_cast %429 : vector<1x1x16x16xf32> to vector<16x16xf32>
    %c9_i32_290 = arith.constant 9 : i32
    %431 = arith.muli %397, %c9_i32_290 : i32
    %c3_i32_291 = arith.constant 3 : i32
    %432 = arith.addi %431, %c3_i32_291 : i32
    %c0_i32_292 = arith.constant 0 : i32
    %433 = arith.addi %432, %c0_i32_292 : i32
    %434 = arith.index_cast %433 : i32 to index
    %435 = memref.load %arg3[%434] : memref<432xf32, #tpu.memory_space<smem>>
    %436 = vector.broadcast %435 : f32 to vector<16x16xf32>
    %437 = arith.mulf %436, %430 : vector<16x16xf32>
    %438 = arith.addf %428, %437 : vector<16x16xf32>
    %c0_293 = arith.constant 0 : index
    %c4_294 = arith.constant 4 : index
    %c1_295 = arith.constant 1 : index
    %c1_296 = arith.constant 1 : index
    %439 = vector.load %arg2[%c0_293, %c4_294, %c1_295, %c1_296] : memref<1x16x18x18xf32, #tpu.memory_space<vmem>>, vector<1x1x16x16xf32>
    %440 = vector.shape_cast %439 : vector<1x1x16x16xf32> to vector<16x16xf32>
    %c9_i32_297 = arith.constant 9 : i32
    %441 = arith.muli %397, %c9_i32_297 : i32
    %c3_i32_298 = arith.constant 3 : i32
    %442 = arith.addi %441, %c3_i32_298 : i32
    %c1_i32_299 = arith.constant 1 : i32
    %443 = arith.addi %442, %c1_i32_299 : i32
    %444 = arith.index_cast %443 : i32 to index
    %445 = memref.load %arg3[%444] : memref<432xf32, #tpu.memory_space<smem>>
    %446 = vector.broadcast %445 : f32 to vector<16x16xf32>
    %447 = arith.mulf %446, %440 : vector<16x16xf32>
    %448 = arith.addf %438, %447 : vector<16x16xf32>
    %c0_300 = arith.constant 0 : index
    %c4_301 = arith.constant 4 : index
    %c1_302 = arith.constant 1 : index
    %c2_303 = arith.constant 2 : index
    %449 = vector.load %arg2[%c0_300, %c4_301, %c1_302, %c2_303] : memref<1x16x18x18xf32, #tpu.memory_space<vmem>>, vector<1x1x16x16xf32>
    %450 = vector.shape_cast %449 : vector<1x1x16x16xf32> to vector<16x16xf32>
    %c9_i32_304 = arith.constant 9 : i32
    %451 = arith.muli %397, %c9_i32_304 : i32
    %c3_i32_305 = arith.constant 3 : i32
    %452 = arith.addi %451, %c3_i32_305 : i32
    %c2_i32_306 = arith.constant 2 : i32
    %453 = arith.addi %452, %c2_i32_306 : i32
    %454 = arith.index_cast %453 : i32 to index
    %455 = memref.load %arg3[%454] : memref<432xf32, #tpu.memory_space<smem>>
    %456 = vector.broadcast %455 : f32 to vector<16x16xf32>
    %457 = arith.mulf %456, %450 : vector<16x16xf32>
    %458 = arith.addf %448, %457 : vector<16x16xf32>
    %c0_307 = arith.constant 0 : index
    %c4_308 = arith.constant 4 : index
    %c2_309 = arith.constant 2 : index
    %c0_310 = arith.constant 0 : index
    %459 = vector.load %arg2[%c0_307, %c4_308, %c2_309, %c0_310] : memref<1x16x18x18xf32, #tpu.memory_space<vmem>>, vector<1x1x16x16xf32>
    %460 = vector.shape_cast %459 : vector<1x1x16x16xf32> to vector<16x16xf32>
    %c9_i32_311 = arith.constant 9 : i32
    %461 = arith.muli %397, %c9_i32_311 : i32
    %c6_i32_312 = arith.constant 6 : i32
    %462 = arith.addi %461, %c6_i32_312 : i32
    %c0_i32_313 = arith.constant 0 : i32
    %463 = arith.addi %462, %c0_i32_313 : i32
    %464 = arith.index_cast %463 : i32 to index
    %465 = memref.load %arg3[%464] : memref<432xf32, #tpu.memory_space<smem>>
    %466 = vector.broadcast %465 : f32 to vector<16x16xf32>
    %467 = arith.mulf %466, %460 : vector<16x16xf32>
    %468 = arith.addf %458, %467 : vector<16x16xf32>
    %c0_314 = arith.constant 0 : index
    %c4_315 = arith.constant 4 : index
    %c2_316 = arith.constant 2 : index
    %c1_317 = arith.constant 1 : index
    %469 = vector.load %arg2[%c0_314, %c4_315, %c2_316, %c1_317] : memref<1x16x18x18xf32, #tpu.memory_space<vmem>>, vector<1x1x16x16xf32>
    %470 = vector.shape_cast %469 : vector<1x1x16x16xf32> to vector<16x16xf32>
    %c9_i32_318 = arith.constant 9 : i32
    %471 = arith.muli %397, %c9_i32_318 : i32
    %c6_i32_319 = arith.constant 6 : i32
    %472 = arith.addi %471, %c6_i32_319 : i32
    %c1_i32_320 = arith.constant 1 : i32
    %473 = arith.addi %472, %c1_i32_320 : i32
    %474 = arith.index_cast %473 : i32 to index
    %475 = memref.load %arg3[%474] : memref<432xf32, #tpu.memory_space<smem>>
    %476 = vector.broadcast %475 : f32 to vector<16x16xf32>
    %477 = arith.mulf %476, %470 : vector<16x16xf32>
    %478 = arith.addf %468, %477 : vector<16x16xf32>
    %c0_321 = arith.constant 0 : index
    %c4_322 = arith.constant 4 : index
    %c2_323 = arith.constant 2 : index
    %c2_324 = arith.constant 2 : index
    %479 = vector.load %arg2[%c0_321, %c4_322, %c2_323, %c2_324] : memref<1x16x18x18xf32, #tpu.memory_space<vmem>>, vector<1x1x16x16xf32>
    %480 = vector.shape_cast %479 : vector<1x1x16x16xf32> to vector<16x16xf32>
    %c9_i32_325 = arith.constant 9 : i32
    %481 = arith.muli %397, %c9_i32_325 : i32
    %c6_i32_326 = arith.constant 6 : i32
    %482 = arith.addi %481, %c6_i32_326 : i32
    %c2_i32_327 = arith.constant 2 : i32
    %483 = arith.addi %482, %c2_i32_327 : i32
    %484 = arith.index_cast %483 : i32 to index
    %485 = memref.load %arg3[%484] : memref<432xf32, #tpu.memory_space<smem>>
    %486 = vector.broadcast %485 : f32 to vector<16x16xf32>
    %487 = arith.mulf %486, %480 : vector<16x16xf32>
    %488 = arith.addf %478, %487 : vector<16x16xf32>
    %489 = arith.index_cast %397 : i32 to index
    %490 = memref.load %arg4[%489] : memref<48xf32, #tpu.memory_space<smem>>
    %491 = vector.broadcast %490 : f32 to vector<16x16xf32>
    %492 = arith.addf %488, %491 : vector<16x16xf32>
    %c0_328 = arith.constant 0 : index
    %c4_329 = arith.constant 4 : index
    %c0_330 = arith.constant 0 : index
    %c0_331 = arith.constant 0 : index
    %493 = vector.load %arg5[%c0_328, %c4_329, %c0_330, %c0_331] : memref<1x16x16x16xf32, #tpu.memory_space<vmem>>, vector<1x1x16x16xf32>
    %494 = vector.shape_cast %493 : vector<1x1x16x16xf32> to vector<16x16xf32>
    %495 = vector.shape_cast %492 : vector<16x16xf32> to vector<1x1x16x16xf32>
    tpu.vector_store %arg5[%c0_328, %c4_329, %c0_330, %c0_331], %495 {strides = array<i32>} : memref<1x16x16x16xf32, #tpu.memory_space<vmem>>, vector<1x1x16x16xf32>,
    %c5_i32 = arith.constant 5 : i32
    %496 = arith.addi %0, %c5_i32 : i32
    %cst_332 = arith.constant 0.000000e+00 : f32
    %497 = vector.broadcast %cst_332 : f32 to vector<16x16xf32>
    %c0_333 = arith.constant 0 : index
    %c5 = arith.constant 5 : index
    %c0_334 = arith.constant 0 : index
    %c0_335 = arith.constant 0 : index
    %498 = vector.load %arg2[%c0_333, %c5, %c0_334, %c0_335] : memref<1x16x18x18xf32, #tpu.memory_space<vmem>>, vector<1x1x16x16xf32>
    %499 = vector.shape_cast %498 : vector<1x1x16x16xf32> to vector<16x16xf32>
    %c9_i32_336 = arith.constant 9 : i32
    %500 = arith.muli %496, %c9_i32_336 : i32
    %c0_i32_337 = arith.constant 0 : i32
    %501 = arith.addi %500, %c0_i32_337 : i32
    %c0_i32_338 = arith.constant 0 : i32
    %502 = arith.addi %501, %c0_i32_338 : i32
    %503 = arith.index_cast %502 : i32 to index
    %504 = memref.load %arg3[%503] : memref<432xf32, #tpu.memory_space<smem>>
    %505 = vector.broadcast %504 : f32 to vector<16x16xf32>
    %506 = arith.mulf %505, %499 : vector<16x16xf32>
    %507 = arith.addf %497, %506 : vector<16x16xf32>
    %c0_339 = arith.constant 0 : index
    %c5_340 = arith.constant 5 : index
    %c0_341 = arith.constant 0 : index
    %c1_342 = arith.constant 1 : index
    %508 = vector.load %arg2[%c0_339, %c5_340, %c0_341, %c1_342] : memref<1x16x18x18xf32, #tpu.memory_space<vmem>>, vector<1x1x16x16xf32>
    %509 = vector.shape_cast %508 : vector<1x1x16x16xf32> to vector<16x16xf32>
    %c9_i32_343 = arith.constant 9 : i32
    %510 = arith.muli %496, %c9_i32_343 : i32
    %c0_i32_344 = arith.constant 0 : i32
    %511 = arith.addi %510, %c0_i32_344 : i32
    %c1_i32_345 = arith.constant 1 : i32
    %512 = arith.addi %511, %c1_i32_345 : i32
    %513 = arith.index_cast %512 : i32 to index
    %514 = memref.load %arg3[%513] : memref<432xf32, #tpu.memory_space<smem>>
    %515 = vector.broadcast %514 : f32 to vector<16x16xf32>
    %516 = arith.mulf %515, %509 : vector<16x16xf32>
    %517 = arith.addf %507, %516 : vector<16x16xf32>
    %c0_346 = arith.constant 0 : index
    %c5_347 = arith.constant 5 : index
    %c0_348 = arith.constant 0 : index
    %c2_349 = arith.constant 2 : index
    %518 = vector.load %arg2[%c0_346, %c5_347, %c0_348, %c2_349] : memref<1x16x18x18xf32, #tpu.memory_space<vmem>>, vector<1x1x16x16xf32>
    %519 = vector.shape_cast %518 : vector<1x1x16x16xf32> to vector<16x16xf32>
    %c9_i32_350 = arith.constant 9 : i32
    %520 = arith.muli %496, %c9_i32_350 : i32
    %c0_i32_351 = arith.constant 0 : i32
    %521 = arith.addi %520, %c0_i32_351 : i32
    %c2_i32_352 = arith.constant 2 : i32
    %522 = arith.addi %521, %c2_i32_352 : i32
    %523 = arith.index_cast %522 : i32 to index
    %524 = memref.load %arg3[%523] : memref<432xf32, #tpu.memory_space<smem>>
    %525 = vector.broadcast %524 : f32 to vector<16x16xf32>
    %526 = arith.mulf %525, %519 : vector<16x16xf32>
    %527 = arith.addf %517, %526 : vector<16x16xf32>
    %c0_353 = arith.constant 0 : index
    %c5_354 = arith.constant 5 : index
    %c1_355 = arith.constant 1 : index
    %c0_356 = arith.constant 0 : index
    %528 = vector.load %arg2[%c0_353, %c5_354, %c1_355, %c0_356] : memref<1x16x18x18xf32, #tpu.memory_space<vmem>>, vector<1x1x16x16xf32>
    %529 = vector.shape_cast %528 : vector<1x1x16x16xf32> to vector<16x16xf32>
    %c9_i32_357 = arith.constant 9 : i32
    %530 = arith.muli %496, %c9_i32_357 : i32
    %c3_i32_358 = arith.constant 3 : i32
    %531 = arith.addi %530, %c3_i32_358 : i32
    %c0_i32_359 = arith.constant 0 : i32
    %532 = arith.addi %531, %c0_i32_359 : i32
    %533 = arith.index_cast %532 : i32 to index
    %534 = memref.load %arg3[%533] : memref<432xf32, #tpu.memory_space<smem>>
    %535 = vector.broadcast %534 : f32 to vector<16x16xf32>
    %536 = arith.mulf %535, %529 : vector<16x16xf32>
    %537 = arith.addf %527, %536 : vector<16x16xf32>
    %c0_360 = arith.constant 0 : index
    %c5_361 = arith.constant 5 : index
    %c1_362 = arith.constant 1 : index
    %c1_363 = arith.constant 1 : index
    %538 = vector.load %arg2[%c0_360, %c5_361, %c1_362, %c1_363] : memref<1x16x18x18xf32, #tpu.memory_space<vmem>>, vector<1x1x16x16xf32>
    %539 = vector.shape_cast %538 : vector<1x1x16x16xf32> to vector<16x16xf32>
    %c9_i32_364 = arith.constant 9 : i32
    %540 = arith.muli %496, %c9_i32_364 : i32
    %c3_i32_365 = arith.constant 3 : i32
    %541 = arith.addi %540, %c3_i32_365 : i32
    %c1_i32_366 = arith.constant 1 : i32
    %542 = arith.addi %541, %c1_i32_366 : i32
    %543 = arith.index_cast %542 : i32 to index
    %544 = memref.load %arg3[%543] : memref<432xf32, #tpu.memory_space<smem>>
    %545 = vector.broadcast %544 : f32 to vector<16x16xf32>
    %546 = arith.mulf %545, %539 : vector<16x16xf32>
    %547 = arith.addf %537, %546 : vector<16x16xf32>
    %c0_367 = arith.constant 0 : index
    %c5_368 = arith.constant 5 : index
    %c1_369 = arith.constant 1 : index
    %c2_370 = arith.constant 2 : index
    %548 = vector.load %arg2[%c0_367, %c5_368, %c1_369, %c2_370] : memref<1x16x18x18xf32, #tpu.memory_space<vmem>>, vector<1x1x16x16xf32>
    %549 = vector.shape_cast %548 : vector<1x1x16x16xf32> to vector<16x16xf32>
    %c9_i32_371 = arith.constant 9 : i32
    %550 = arith.muli %496, %c9_i32_371 : i32
    %c3_i32_372 = arith.constant 3 : i32
    %551 = arith.addi %550, %c3_i32_372 : i32
    %c2_i32_373 = arith.constant 2 : i32
    %552 = arith.addi %551, %c2_i32_373 : i32
    %553 = arith.index_cast %552 : i32 to index
    %554 = memref.load %arg3[%553] : memref<432xf32, #tpu.memory_space<smem>>
    %555 = vector.broadcast %554 : f32 to vector<16x16xf32>
    %556 = arith.mulf %555, %549 : vector<16x16xf32>
    %557 = arith.addf %547, %556 : vector<16x16xf32>
    %c0_374 = arith.constant 0 : index
    %c5_375 = arith.constant 5 : index
    %c2_376 = arith.constant 2 : index
    %c0_377 = arith.constant 0 : index
    %558 = vector.load %arg2[%c0_374, %c5_375, %c2_376, %c0_377] : memref<1x16x18x18xf32, #tpu.memory_space<vmem>>, vector<1x1x16x16xf32>
    %559 = vector.shape_cast %558 : vector<1x1x16x16xf32> to vector<16x16xf32>
    %c9_i32_378 = arith.constant 9 : i32
    %560 = arith.muli %496, %c9_i32_378 : i32
    %c6_i32_379 = arith.constant 6 : i32
    %561 = arith.addi %560, %c6_i32_379 : i32
    %c0_i32_380 = arith.constant 0 : i32
    %562 = arith.addi %561, %c0_i32_380 : i32
    %563 = arith.index_cast %562 : i32 to index
    %564 = memref.load %arg3[%563] : memref<432xf32, #tpu.memory_space<smem>>
    %565 = vector.broadcast %564 : f32 to vector<16x16xf32>
    %566 = arith.mulf %565, %559 : vector<16x16xf32>
    %567 = arith.addf %557, %566 : vector<16x16xf32>
    %c0_381 = arith.constant 0 : index
    %c5_382 = arith.constant 5 : index
    %c2_383 = arith.constant 2 : index
    %c1_384 = arith.constant 1 : index
    %568 = vector.load %arg2[%c0_381, %c5_382, %c2_383, %c1_384] : memref<1x16x18x18xf32, #tpu.memory_space<vmem>>, vector<1x1x16x16xf32>
    %569 = vector.shape_cast %568 : vector<1x1x16x16xf32> to vector<16x16xf32>
    %c9_i32_385 = arith.constant 9 : i32
    %570 = arith.muli %496, %c9_i32_385 : i32
    %c6_i32_386 = arith.constant 6 : i32
    %571 = arith.addi %570, %c6_i32_386 : i32
    %c1_i32_387 = arith.constant 1 : i32
    %572 = arith.addi %571, %c1_i32_387 : i32
    %573 = arith.index_cast %572 : i32 to index
    %574 = memref.load %arg3[%573] : memref<432xf32, #tpu.memory_space<smem>>
    %575 = vector.broadcast %574 : f32 to vector<16x16xf32>
    %576 = arith.mulf %575, %569 : vector<16x16xf32>
    %577 = arith.addf %567, %576 : vector<16x16xf32>
    %c0_388 = arith.constant 0 : index
    %c5_389 = arith.constant 5 : index
    %c2_390 = arith.constant 2 : index
    %c2_391 = arith.constant 2 : index
    %578 = vector.load %arg2[%c0_388, %c5_389, %c2_390, %c2_391] : memref<1x16x18x18xf32, #tpu.memory_space<vmem>>, vector<1x1x16x16xf32>
    %579 = vector.shape_cast %578 : vector<1x1x16x16xf32> to vector<16x16xf32>
    %c9_i32_392 = arith.constant 9 : i32
    %580 = arith.muli %496, %c9_i32_392 : i32
    %c6_i32_393 = arith.constant 6 : i32
    %581 = arith.addi %580, %c6_i32_393 : i32
    %c2_i32_394 = arith.constant 2 : i32
    %582 = arith.addi %581, %c2_i32_394 : i32
    %583 = arith.index_cast %582 : i32 to index
    %584 = memref.load %arg3[%583] : memref<432xf32, #tpu.memory_space<smem>>
    %585 = vector.broadcast %584 : f32 to vector<16x16xf32>
    %586 = arith.mulf %585, %579 : vector<16x16xf32>
    %587 = arith.addf %577, %586 : vector<16x16xf32>
    %588 = arith.index_cast %496 : i32 to index
    %589 = memref.load %arg4[%588] : memref<48xf32, #tpu.memory_space<smem>>
    %590 = vector.broadcast %589 : f32 to vector<16x16xf32>
    %591 = arith.addf %587, %590 : vector<16x16xf32>
    %c0_395 = arith.constant 0 : index
    %c5_396 = arith.constant 5 : index
    %c0_397 = arith.constant 0 : index
    %c0_398 = arith.constant 0 : index
    %592 = vector.load %arg5[%c0_395, %c5_396, %c0_397, %c0_398] : memref<1x16x16x16xf32, #tpu.memory_space<vmem>>, vector<1x1x16x16xf32>
    %593 = vector.shape_cast %592 : vector<1x1x16x16xf32> to vector<16x16xf32>
    %594 = vector.shape_cast %591 : vector<16x16xf32> to vector<1x1x16x16xf32>
    tpu.vector_store %arg5[%c0_395, %c5_396, %c0_397, %c0_398], %594 {strides = array<i32>} : memref<1x16x16x16xf32, #tpu.memory_space<vmem>>, vector<1x1x16x16xf32>,
    %c6_i32_399 = arith.constant 6 : i32
    %595 = arith.addi %0, %c6_i32_399 : i32
    %cst_400 = arith.constant 0.000000e+00 : f32
    %596 = vector.broadcast %cst_400 : f32 to vector<16x16xf32>
    %c0_401 = arith.constant 0 : index
    %c6 = arith.constant 6 : index
    %c0_402 = arith.constant 0 : index
    %c0_403 = arith.constant 0 : index
    %597 = vector.load %arg2[%c0_401, %c6, %c0_402, %c0_403] : memref<1x16x18x18xf32, #tpu.memory_space<vmem>>, vector<1x1x16x16xf32>
    %598 = vector.shape_cast %597 : vector<1x1x16x16xf32> to vector<16x16xf32>
    %c9_i32_404 = arith.constant 9 : i32
    %599 = arith.muli %595, %c9_i32_404 : i32
    %c0_i32_405 = arith.constant 0 : i32
    %600 = arith.addi %599, %c0_i32_405 : i32
    %c0_i32_406 = arith.constant 0 : i32
    %601 = arith.addi %600, %c0_i32_406 : i32
    %602 = arith.index_cast %601 : i32 to index
    %603 = memref.load %arg3[%602] : memref<432xf32, #tpu.memory_space<smem>>
    %604 = vector.broadcast %603 : f32 to vector<16x16xf32>
    %605 = arith.mulf %604, %598 : vector<16x16xf32>
    %606 = arith.addf %596, %605 : vector<16x16xf32>
    %c0_407 = arith.constant 0 : index
    %c6_408 = arith.constant 6 : index
    %c0_409 = arith.constant 0 : index
    %c1_410 = arith.constant 1 : index
    %607 = vector.load %arg2[%c0_407, %c6_408, %c0_409, %c1_410] : memref<1x16x18x18xf32, #tpu.memory_space<vmem>>, vector<1x1x16x16xf32>
    %608 = vector.shape_cast %607 : vector<1x1x16x16xf32> to vector<16x16xf32>
    %c9_i32_411 = arith.constant 9 : i32
    %609 = arith.muli %595, %c9_i32_411 : i32
    %c0_i32_412 = arith.constant 0 : i32
    %610 = arith.addi %609, %c0_i32_412 : i32
    %c1_i32_413 = arith.constant 1 : i32
    %611 = arith.addi %610, %c1_i32_413 : i32
    %612 = arith.index_cast %611 : i32 to index
    %613 = memref.load %arg3[%612] : memref<432xf32, #tpu.memory_space<smem>>
    %614 = vector.broadcast %613 : f32 to vector<16x16xf32>
    %615 = arith.mulf %614, %608 : vector<16x16xf32>
    %616 = arith.addf %606, %615 : vector<16x16xf32>
    %c0_414 = arith.constant 0 : index
    %c6_415 = arith.constant 6 : index
    %c0_416 = arith.constant 0 : index
    %c2_417 = arith.constant 2 : index
    %617 = vector.load %arg2[%c0_414, %c6_415, %c0_416, %c2_417] : memref<1x16x18x18xf32, #tpu.memory_space<vmem>>, vector<1x1x16x16xf32>
    %618 = vector.shape_cast %617 : vector<1x1x16x16xf32> to vector<16x16xf32>
    %c9_i32_418 = arith.constant 9 : i32
    %619 = arith.muli %595, %c9_i32_418 : i32
    %c0_i32_419 = arith.constant 0 : i32
    %620 = arith.addi %619, %c0_i32_419 : i32
    %c2_i32_420 = arith.constant 2 : i32
    %621 = arith.addi %620, %c2_i32_420 : i32
    %622 = arith.index_cast %621 : i32 to index
    %623 = memref.load %arg3[%622] : memref<432xf32, #tpu.memory_space<smem>>
    %624 = vector.broadcast %623 : f32 to vector<16x16xf32>
    %625 = arith.mulf %624, %618 : vector<16x16xf32>
    %626 = arith.addf %616, %625 : vector<16x16xf32>
    %c0_421 = arith.constant 0 : index
    %c6_422 = arith.constant 6 : index
    %c1_423 = arith.constant 1 : index
    %c0_424 = arith.constant 0 : index
    %627 = vector.load %arg2[%c0_421, %c6_422, %c1_423, %c0_424] : memref<1x16x18x18xf32, #tpu.memory_space<vmem>>, vector<1x1x16x16xf32>
    %628 = vector.shape_cast %627 : vector<1x1x16x16xf32> to vector<16x16xf32>
    %c9_i32_425 = arith.constant 9 : i32
    %629 = arith.muli %595, %c9_i32_425 : i32
    %c3_i32_426 = arith.constant 3 : i32
    %630 = arith.addi %629, %c3_i32_426 : i32
    %c0_i32_427 = arith.constant 0 : i32
    %631 = arith.addi %630, %c0_i32_427 : i32
    %632 = arith.index_cast %631 : i32 to index
    %633 = memref.load %arg3[%632] : memref<432xf32, #tpu.memory_space<smem>>
    %634 = vector.broadcast %633 : f32 to vector<16x16xf32>
    %635 = arith.mulf %634, %628 : vector<16x16xf32>
    %636 = arith.addf %626, %635 : vector<16x16xf32>
    %c0_428 = arith.constant 0 : index
    %c6_429 = arith.constant 6 : index
    %c1_430 = arith.constant 1 : index
    %c1_431 = arith.constant 1 : index
    %637 = vector.load %arg2[%c0_428, %c6_429, %c1_430, %c1_431] : memref<1x16x18x18xf32, #tpu.memory_space<vmem>>, vector<1x1x16x16xf32>
    %638 = vector.shape_cast %637 : vector<1x1x16x16xf32> to vector<16x16xf32>
    %c9_i32_432 = arith.constant 9 : i32
    %639 = arith.muli %595, %c9_i32_432 : i32
    %c3_i32_433 = arith.constant 3 : i32
    %640 = arith.addi %639, %c3_i32_433 : i32
    %c1_i32_434 = arith.constant 1 : i32
    %641 = arith.addi %640, %c1_i32_434 : i32
    %642 = arith.index_cast %641 : i32 to index
    %643 = memref.load %arg3[%642] : memref<432xf32, #tpu.memory_space<smem>>
    %644 = vector.broadcast %643 : f32 to vector<16x16xf32>
    %645 = arith.mulf %644, %638 : vector<16x16xf32>
    %646 = arith.addf %636, %645 : vector<16x16xf32>
    %c0_435 = arith.constant 0 : index
    %c6_436 = arith.constant 6 : index
    %c1_437 = arith.constant 1 : index
    %c2_438 = arith.constant 2 : index
    %647 = vector.load %arg2[%c0_435, %c6_436, %c1_437, %c2_438] : memref<1x16x18x18xf32, #tpu.memory_space<vmem>>, vector<1x1x16x16xf32>
    %648 = vector.shape_cast %647 : vector<1x1x16x16xf32> to vector<16x16xf32>
    %c9_i32_439 = arith.constant 9 : i32
    %649 = arith.muli %595, %c9_i32_439 : i32
    %c3_i32_440 = arith.constant 3 : i32
    %650 = arith.addi %649, %c3_i32_440 : i32
    %c2_i32_441 = arith.constant 2 : i32
    %651 = arith.addi %650, %c2_i32_441 : i32
    %652 = arith.index_cast %651 : i32 to index
    %653 = memref.load %arg3[%652] : memref<432xf32, #tpu.memory_space<smem>>
    %654 = vector.broadcast %653 : f32 to vector<16x16xf32>
    %655 = arith.mulf %654, %648 : vector<16x16xf32>
    %656 = arith.addf %646, %655 : vector<16x16xf32>
    %c0_442 = arith.constant 0 : index
    %c6_443 = arith.constant 6 : index
    %c2_444 = arith.constant 2 : index
    %c0_445 = arith.constant 0 : index
    %657 = vector.load %arg2[%c0_442, %c6_443, %c2_444, %c0_445] : memref<1x16x18x18xf32, #tpu.memory_space<vmem>>, vector<1x1x16x16xf32>
    %658 = vector.shape_cast %657 : vector<1x1x16x16xf32> to vector<16x16xf32>
    %c9_i32_446 = arith.constant 9 : i32
    %659 = arith.muli %595, %c9_i32_446 : i32
    %c6_i32_447 = arith.constant 6 : i32
    %660 = arith.addi %659, %c6_i32_447 : i32
    %c0_i32_448 = arith.constant 0 : i32
    %661 = arith.addi %660, %c0_i32_448 : i32
    %662 = arith.index_cast %661 : i32 to index
    %663 = memref.load %arg3[%662] : memref<432xf32, #tpu.memory_space<smem>>
    %664 = vector.broadcast %663 : f32 to vector<16x16xf32>
    %665 = arith.mulf %664, %658 : vector<16x16xf32>
    %666 = arith.addf %656, %665 : vector<16x16xf32>
    %c0_449 = arith.constant 0 : index
    %c6_450 = arith.constant 6 : index
    %c2_451 = arith.constant 2 : index
    %c1_452 = arith.constant 1 : index
    %667 = vector.load %arg2[%c0_449, %c6_450, %c2_451, %c1_452] : memref<1x16x18x18xf32, #tpu.memory_space<vmem>>, vector<1x1x16x16xf32>
    %668 = vector.shape_cast %667 : vector<1x1x16x16xf32> to vector<16x16xf32>
    %c9_i32_453 = arith.constant 9 : i32
    %669 = arith.muli %595, %c9_i32_453 : i32
    %c6_i32_454 = arith.constant 6 : i32
    %670 = arith.addi %669, %c6_i32_454 : i32
    %c1_i32_455 = arith.constant 1 : i32
    %671 = arith.addi %670, %c1_i32_455 : i32
    %672 = arith.index_cast %671 : i32 to index
    %673 = memref.load %arg3[%672] : memref<432xf32, #tpu.memory_space<smem>>
    %674 = vector.broadcast %673 : f32 to vector<16x16xf32>
    %675 = arith.mulf %674, %668 : vector<16x16xf32>
    %676 = arith.addf %666, %675 : vector<16x16xf32>
    %c0_456 = arith.constant 0 : index
    %c6_457 = arith.constant 6 : index
    %c2_458 = arith.constant 2 : index
    %c2_459 = arith.constant 2 : index
    %677 = vector.load %arg2[%c0_456, %c6_457, %c2_458, %c2_459] : memref<1x16x18x18xf32, #tpu.memory_space<vmem>>, vector<1x1x16x16xf32>
    %678 = vector.shape_cast %677 : vector<1x1x16x16xf32> to vector<16x16xf32>
    %c9_i32_460 = arith.constant 9 : i32
    %679 = arith.muli %595, %c9_i32_460 : i32
    %c6_i32_461 = arith.constant 6 : i32
    %680 = arith.addi %679, %c6_i32_461 : i32
    %c2_i32_462 = arith.constant 2 : i32
    %681 = arith.addi %680, %c2_i32_462 : i32
    %682 = arith.index_cast %681 : i32 to index
    %683 = memref.load %arg3[%682] : memref<432xf32, #tpu.memory_space<smem>>
    %684 = vector.broadcast %683 : f32 to vector<16x16xf32>
    %685 = arith.mulf %684, %678 : vector<16x16xf32>
    %686 = arith.addf %676, %685 : vector<16x16xf32>
    %687 = arith.index_cast %595 : i32 to index
    %688 = memref.load %arg4[%687] : memref<48xf32, #tpu.memory_space<smem>>
    %689 = vector.broadcast %688 : f32 to vector<16x16xf32>
    %690 = arith.addf %686, %689 : vector<16x16xf32>
    %c0_463 = arith.constant 0 : index
    %c6_464 = arith.constant 6 : index
    %c0_465 = arith.constant 0 : index
    %c0_466 = arith.constant 0 : index
    %691 = vector.load %arg5[%c0_463, %c6_464, %c0_465, %c0_466] : memref<1x16x16x16xf32, #tpu.memory_space<vmem>>, vector<1x1x16x16xf32>
    %692 = vector.shape_cast %691 : vector<1x1x16x16xf32> to vector<16x16xf32>
    %693 = vector.shape_cast %690 : vector<16x16xf32> to vector<1x1x16x16xf32>
    tpu.vector_store %arg5[%c0_463, %c6_464, %c0_465, %c0_466], %693 {strides = array<i32>} : memref<1x16x16x16xf32, #tpu.memory_space<vmem>>, vector<1x1x16x16xf32>,
    %c7_i32 = arith.constant 7 : i32
    %694 = arith.addi %0, %c7_i32 : i32
    %cst_467 = arith.constant 0.000000e+00 : f32
    %695 = vector.broadcast %cst_467 : f32 to vector<16x16xf32>
    %c0_468 = arith.constant 0 : index
    %c7 = arith.constant 7 : index
    %c0_469 = arith.constant 0 : index
    %c0_470 = arith.constant 0 : index
    %696 = vector.load %arg2[%c0_468, %c7, %c0_469, %c0_470] : memref<1x16x18x18xf32, #tpu.memory_space<vmem>>, vector<1x1x16x16xf32>
    %697 = vector.shape_cast %696 : vector<1x1x16x16xf32> to vector<16x16xf32>
    %c9_i32_471 = arith.constant 9 : i32
    %698 = arith.muli %694, %c9_i32_471 : i32
    %c0_i32_472 = arith.constant 0 : i32
    %699 = arith.addi %698, %c0_i32_472 : i32
    %c0_i32_473 = arith.constant 0 : i32
    %700 = arith.addi %699, %c0_i32_473 : i32
    %701 = arith.index_cast %700 : i32 to index
    %702 = memref.load %arg3[%701] : memref<432xf32, #tpu.memory_space<smem>>
    %703 = vector.broadcast %702 : f32 to vector<16x16xf32>
    %704 = arith.mulf %703, %697 : vector<16x16xf32>
    %705 = arith.addf %695, %704 : vector<16x16xf32>
    %c0_474 = arith.constant 0 : index
    %c7_475 = arith.constant 7 : index
    %c0_476 = arith.constant 0 : index
    %c1_477 = arith.constant 1 : index
    %706 = vector.load %arg2[%c0_474, %c7_475, %c0_476, %c1_477] : memref<1x16x18x18xf32, #tpu.memory_space<vmem>>, vector<1x1x16x16xf32>
    %707 = vector.shape_cast %706 : vector<1x1x16x16xf32> to vector<16x16xf32>
    %c9_i32_478 = arith.constant 9 : i32
    %708 = arith.muli %694, %c9_i32_478 : i32
    %c0_i32_479 = arith.constant 0 : i32
    %709 = arith.addi %708, %c0_i32_479 : i32
    %c1_i32_480 = arith.constant 1 : i32
    %710 = arith.addi %709, %c1_i32_480 : i32
    %711 = arith.index_cast %710 : i32 to index
    %712 = memref.load %arg3[%711] : memref<432xf32, #tpu.memory_space<smem>>
    %713 = vector.broadcast %712 : f32 to vector<16x16xf32>
    %714 = arith.mulf %713, %707 : vector<16x16xf32>
    %715 = arith.addf %705, %714 : vector<16x16xf32>
    %c0_481 = arith.constant 0 : index
    %c7_482 = arith.constant 7 : index
    %c0_483 = arith.constant 0 : index
    %c2_484 = arith.constant 2 : index
    %716 = vector.load %arg2[%c0_481, %c7_482, %c0_483, %c2_484] : memref<1x16x18x18xf32, #tpu.memory_space<vmem>>, vector<1x1x16x16xf32>
    %717 = vector.shape_cast %716 : vector<1x1x16x16xf32> to vector<16x16xf32>
    %c9_i32_485 = arith.constant 9 : i32
    %718 = arith.muli %694, %c9_i32_485 : i32
    %c0_i32_486 = arith.constant 0 : i32
    %719 = arith.addi %718, %c0_i32_486 : i32
    %c2_i32_487 = arith.constant 2 : i32
    %720 = arith.addi %719, %c2_i32_487 : i32
    %721 = arith.index_cast %720 : i32 to index
    %722 = memref.load %arg3[%721] : memref<432xf32, #tpu.memory_space<smem>>
    %723 = vector.broadcast %722 : f32 to vector<16x16xf32>
    %724 = arith.mulf %723, %717 : vector<16x16xf32>
    %725 = arith.addf %715, %724 : vector<16x16xf32>
    %c0_488 = arith.constant 0 : index
    %c7_489 = arith.constant 7 : index
    %c1_490 = arith.constant 1 : index
    %c0_491 = arith.constant 0 : index
    %726 = vector.load %arg2[%c0_488, %c7_489, %c1_490, %c0_491] : memref<1x16x18x18xf32, #tpu.memory_space<vmem>>, vector<1x1x16x16xf32>
    %727 = vector.shape_cast %726 : vector<1x1x16x16xf32> to vector<16x16xf32>
    %c9_i32_492 = arith.constant 9 : i32
    %728 = arith.muli %694, %c9_i32_492 : i32
    %c3_i32_493 = arith.constant 3 : i32
    %729 = arith.addi %728, %c3_i32_493 : i32
    %c0_i32_494 = arith.constant 0 : i32
    %730 = arith.addi %729, %c0_i32_494 : i32
    %731 = arith.index_cast %730 : i32 to index
    %732 = memref.load %arg3[%731] : memref<432xf32, #tpu.memory_space<smem>>
    %733 = vector.broadcast %732 : f32 to vector<16x16xf32>
    %734 = arith.mulf %733, %727 : vector<16x16xf32>
    %735 = arith.addf %725, %734 : vector<16x16xf32>
    %c0_495 = arith.constant 0 : index
    %c7_496 = arith.constant 7 : index
    %c1_497 = arith.constant 1 : index
    %c1_498 = arith.constant 1 : index
    %736 = vector.load %arg2[%c0_495, %c7_496, %c1_497, %c1_498] : memref<1x16x18x18xf32, #tpu.memory_space<vmem>>, vector<1x1x16x16xf32>
    %737 = vector.shape_cast %736 : vector<1x1x16x16xf32> to vector<16x16xf32>
    %c9_i32_499 = arith.constant 9 : i32
    %738 = arith.muli %694, %c9_i32_499 : i32
    %c3_i32_500 = arith.constant 3 : i32
    %739 = arith.addi %738, %c3_i32_500 : i32
    %c1_i32_501 = arith.constant 1 : i32
    %740 = arith.addi %739, %c1_i32_501 : i32
    %741 = arith.index_cast %740 : i32 to index
    %742 = memref.load %arg3[%741] : memref<432xf32, #tpu.memory_space<smem>>
    %743 = vector.broadcast %742 : f32 to vector<16x16xf32>
    %744 = arith.mulf %743, %737 : vector<16x16xf32>
    %745 = arith.addf %735, %744 : vector<16x16xf32>
    %c0_502 = arith.constant 0 : index
    %c7_503 = arith.constant 7 : index
    %c1_504 = arith.constant 1 : index
    %c2_505 = arith.constant 2 : index
    %746 = vector.load %arg2[%c0_502, %c7_503, %c1_504, %c2_505] : memref<1x16x18x18xf32, #tpu.memory_space<vmem>>, vector<1x1x16x16xf32>
    %747 = vector.shape_cast %746 : vector<1x1x16x16xf32> to vector<16x16xf32>
    %c9_i32_506 = arith.constant 9 : i32
    %748 = arith.muli %694, %c9_i32_506 : i32
    %c3_i32_507 = arith.constant 3 : i32
    %749 = arith.addi %748, %c3_i32_507 : i32
    %c2_i32_508 = arith.constant 2 : i32
    %750 = arith.addi %749, %c2_i32_508 : i32
    %751 = arith.index_cast %750 : i32 to index
    %752 = memref.load %arg3[%751] : memref<432xf32, #tpu.memory_space<smem>>
    %753 = vector.broadcast %752 : f32 to vector<16x16xf32>
    %754 = arith.mulf %753, %747 : vector<16x16xf32>
    %755 = arith.addf %745, %754 : vector<16x16xf32>
    %c0_509 = arith.constant 0 : index
    %c7_510 = arith.constant 7 : index
    %c2_511 = arith.constant 2 : index
    %c0_512 = arith.constant 0 : index
    %756 = vector.load %arg2[%c0_509, %c7_510, %c2_511, %c0_512] : memref<1x16x18x18xf32, #tpu.memory_space<vmem>>, vector<1x1x16x16xf32>
    %757 = vector.shape_cast %756 : vector<1x1x16x16xf32> to vector<16x16xf32>
    %c9_i32_513 = arith.constant 9 : i32
    %758 = arith.muli %694, %c9_i32_513 : i32
    %c6_i32_514 = arith.constant 6 : i32
    %759 = arith.addi %758, %c6_i32_514 : i32
    %c0_i32_515 = arith.constant 0 : i32
    %760 = arith.addi %759, %c0_i32_515 : i32
    %761 = arith.index_cast %760 : i32 to index
    %762 = memref.load %arg3[%761] : memref<432xf32, #tpu.memory_space<smem>>
    %763 = vector.broadcast %762 : f32 to vector<16x16xf32>
    %764 = arith.mulf %763, %757 : vector<16x16xf32>
    %765 = arith.addf %755, %764 : vector<16x16xf32>
    %c0_516 = arith.constant 0 : index
    %c7_517 = arith.constant 7 : index
    %c2_518 = arith.constant 2 : index
    %c1_519 = arith.constant 1 : index
    %766 = vector.load %arg2[%c0_516, %c7_517, %c2_518, %c1_519] : memref<1x16x18x18xf32, #tpu.memory_space<vmem>>, vector<1x1x16x16xf32>
    %767 = vector.shape_cast %766 : vector<1x1x16x16xf32> to vector<16x16xf32>
    %c9_i32_520 = arith.constant 9 : i32
    %768 = arith.muli %694, %c9_i32_520 : i32
    %c6_i32_521 = arith.constant 6 : i32
    %769 = arith.addi %768, %c6_i32_521 : i32
    %c1_i32_522 = arith.constant 1 : i32
    %770 = arith.addi %769, %c1_i32_522 : i32
    %771 = arith.index_cast %770 : i32 to index
    %772 = memref.load %arg3[%771] : memref<432xf32, #tpu.memory_space<smem>>
    %773 = vector.broadcast %772 : f32 to vector<16x16xf32>
    %774 = arith.mulf %773, %767 : vector<16x16xf32>
    %775 = arith.addf %765, %774 : vector<16x16xf32>
    %c0_523 = arith.constant 0 : index
    %c7_524 = arith.constant 7 : index
    %c2_525 = arith.constant 2 : index
    %c2_526 = arith.constant 2 : index
    %776 = vector.load %arg2[%c0_523, %c7_524, %c2_525, %c2_526] : memref<1x16x18x18xf32, #tpu.memory_space<vmem>>, vector<1x1x16x16xf32>
    %777 = vector.shape_cast %776 : vector<1x1x16x16xf32> to vector<16x16xf32>
    %c9_i32_527 = arith.constant 9 : i32
    %778 = arith.muli %694, %c9_i32_527 : i32
    %c6_i32_528 = arith.constant 6 : i32
    %779 = arith.addi %778, %c6_i32_528 : i32
    %c2_i32_529 = arith.constant 2 : i32
    %780 = arith.addi %779, %c2_i32_529 : i32
    %781 = arith.index_cast %780 : i32 to index
    %782 = memref.load %arg3[%781] : memref<432xf32, #tpu.memory_space<smem>>
    %783 = vector.broadcast %782 : f32 to vector<16x16xf32>
    %784 = arith.mulf %783, %777 : vector<16x16xf32>
    %785 = arith.addf %775, %784 : vector<16x16xf32>
    %786 = arith.index_cast %694 : i32 to index
    %787 = memref.load %arg4[%786] : memref<48xf32, #tpu.memory_space<smem>>
    %788 = vector.broadcast %787 : f32 to vector<16x16xf32>
    %789 = arith.addf %785, %788 : vector<16x16xf32>
    %c0_530 = arith.constant 0 : index
    %c7_531 = arith.constant 7 : index
    %c0_532 = arith.constant 0 : index
    %c0_533 = arith.constant 0 : index
    %790 = vector.load %arg5[%c0_530, %c7_531, %c0_532, %c0_533] : memref<1x16x16x16xf32, #tpu.memory_space<vmem>>, vector<1x1x16x16xf32>
    %791 = vector.shape_cast %790 : vector<1x1x16x16xf32> to vector<16x16xf32>
    %792 = vector.shape_cast %789 : vector<16x16xf32> to vector<1x1x16x16xf32>
    tpu.vector_store %arg5[%c0_530, %c7_531, %c0_532, %c0_533], %792 {strides = array<i32>} : memref<1x16x16x16xf32, #tpu.memory_space<vmem>>, vector<1x1x16x16xf32>,
    %c8_i32 = arith.constant 8 : i32
    %793 = arith.addi %0, %c8_i32 : i32
    %cst_534 = arith.constant 0.000000e+00 : f32
    %794 = vector.broadcast %cst_534 : f32 to vector<16x16xf32>
    %c0_535 = arith.constant 0 : index
    %c8 = arith.constant 8 : index
    %c0_536 = arith.constant 0 : index
    %c0_537 = arith.constant 0 : index
    %795 = vector.load %arg2[%c0_535, %c8, %c0_536, %c0_537] : memref<1x16x18x18xf32, #tpu.memory_space<vmem>>, vector<1x1x16x16xf32>
    %796 = vector.shape_cast %795 : vector<1x1x16x16xf32> to vector<16x16xf32>
    %c9_i32_538 = arith.constant 9 : i32
    %797 = arith.muli %793, %c9_i32_538 : i32
    %c0_i32_539 = arith.constant 0 : i32
    %798 = arith.addi %797, %c0_i32_539 : i32
    %c0_i32_540 = arith.constant 0 : i32
    %799 = arith.addi %798, %c0_i32_540 : i32
    %800 = arith.index_cast %799 : i32 to index
    %801 = memref.load %arg3[%800] : memref<432xf32, #tpu.memory_space<smem>>
    %802 = vector.broadcast %801 : f32 to vector<16x16xf32>
    %803 = arith.mulf %802, %796 : vector<16x16xf32>
    %804 = arith.addf %794, %803 : vector<16x16xf32>
    %c0_541 = arith.constant 0 : index
    %c8_542 = arith.constant 8 : index
    %c0_543 = arith.constant 0 : index
    %c1_544 = arith.constant 1 : index
    %805 = vector.load %arg2[%c0_541, %c8_542, %c0_543, %c1_544] : memref<1x16x18x18xf32, #tpu.memory_space<vmem>>, vector<1x1x16x16xf32>
    %806 = vector.shape_cast %805 : vector<1x1x16x16xf32> to vector<16x16xf32>
    %c9_i32_545 = arith.constant 9 : i32
    %807 = arith.muli %793, %c9_i32_545 : i32
    %c0_i32_546 = arith.constant 0 : i32
    %808 = arith.addi %807, %c0_i32_546 : i32
    %c1_i32_547 = arith.constant 1 : i32
    %809 = arith.addi %808, %c1_i32_547 : i32
    %810 = arith.index_cast %809 : i32 to index
    %811 = memref.load %arg3[%810] : memref<432xf32, #tpu.memory_space<smem>>
    %812 = vector.broadcast %811 : f32 to vector<16x16xf32>
    %813 = arith.mulf %812, %806 : vector<16x16xf32>
    %814 = arith.addf %804, %813 : vector<16x16xf32>
    %c0_548 = arith.constant 0 : index
    %c8_549 = arith.constant 8 : index
    %c0_550 = arith.constant 0 : index
    %c2_551 = arith.constant 2 : index
    %815 = vector.load %arg2[%c0_548, %c8_549, %c0_550, %c2_551] : memref<1x16x18x18xf32, #tpu.memory_space<vmem>>, vector<1x1x16x16xf32>
    %816 = vector.shape_cast %815 : vector<1x1x16x16xf32> to vector<16x16xf32>
    %c9_i32_552 = arith.constant 9 : i32
    %817 = arith.muli %793, %c9_i32_552 : i32
    %c0_i32_553 = arith.constant 0 : i32
    %818 = arith.addi %817, %c0_i32_553 : i32
    %c2_i32_554 = arith.constant 2 : i32
    %819 = arith.addi %818, %c2_i32_554 : i32
    %820 = arith.index_cast %819 : i32 to index
    %821 = memref.load %arg3[%820] : memref<432xf32, #tpu.memory_space<smem>>
    %822 = vector.broadcast %821 : f32 to vector<16x16xf32>
    %823 = arith.mulf %822, %816 : vector<16x16xf32>
    %824 = arith.addf %814, %823 : vector<16x16xf32>
    %c0_555 = arith.constant 0 : index
    %c8_556 = arith.constant 8 : index
    %c1_557 = arith.constant 1 : index
    %c0_558 = arith.constant 0 : index
    %825 = vector.load %arg2[%c0_555, %c8_556, %c1_557, %c0_558] : memref<1x16x18x18xf32, #tpu.memory_space<vmem>>, vector<1x1x16x16xf32>
    %826 = vector.shape_cast %825 : vector<1x1x16x16xf32> to vector<16x16xf32>
    %c9_i32_559 = arith.constant 9 : i32
    %827 = arith.muli %793, %c9_i32_559 : i32
    %c3_i32_560 = arith.constant 3 : i32
    %828 = arith.addi %827, %c3_i32_560 : i32
    %c0_i32_561 = arith.constant 0 : i32
    %829 = arith.addi %828, %c0_i32_561 : i32
    %830 = arith.index_cast %829 : i32 to index
    %831 = memref.load %arg3[%830] : memref<432xf32, #tpu.memory_space<smem>>
    %832 = vector.broadcast %831 : f32 to vector<16x16xf32>
    %833 = arith.mulf %832, %826 : vector<16x16xf32>
    %834 = arith.addf %824, %833 : vector<16x16xf32>
    %c0_562 = arith.constant 0 : index
    %c8_563 = arith.constant 8 : index
    %c1_564 = arith.constant 1 : index
    %c1_565 = arith.constant 1 : index
    %835 = vector.load %arg2[%c0_562, %c8_563, %c1_564, %c1_565] : memref<1x16x18x18xf32, #tpu.memory_space<vmem>>, vector<1x1x16x16xf32>
    %836 = vector.shape_cast %835 : vector<1x1x16x16xf32> to vector<16x16xf32>
    %c9_i32_566 = arith.constant 9 : i32
    %837 = arith.muli %793, %c9_i32_566 : i32
    %c3_i32_567 = arith.constant 3 : i32
    %838 = arith.addi %837, %c3_i32_567 : i32
    %c1_i32_568 = arith.constant 1 : i32
    %839 = arith.addi %838, %c1_i32_568 : i32
    %840 = arith.index_cast %839 : i32 to index
    %841 = memref.load %arg3[%840] : memref<432xf32, #tpu.memory_space<smem>>
    %842 = vector.broadcast %841 : f32 to vector<16x16xf32>
    %843 = arith.mulf %842, %836 : vector<16x16xf32>
    %844 = arith.addf %834, %843 : vector<16x16xf32>
    %c0_569 = arith.constant 0 : index
    %c8_570 = arith.constant 8 : index
    %c1_571 = arith.constant 1 : index
    %c2_572 = arith.constant 2 : index
    %845 = vector.load %arg2[%c0_569, %c8_570, %c1_571, %c2_572] : memref<1x16x18x18xf32, #tpu.memory_space<vmem>>, vector<1x1x16x16xf32>
    %846 = vector.shape_cast %845 : vector<1x1x16x16xf32> to vector<16x16xf32>
    %c9_i32_573 = arith.constant 9 : i32
    %847 = arith.muli %793, %c9_i32_573 : i32
    %c3_i32_574 = arith.constant 3 : i32
    %848 = arith.addi %847, %c3_i32_574 : i32
    %c2_i32_575 = arith.constant 2 : i32
    %849 = arith.addi %848, %c2_i32_575 : i32
    %850 = arith.index_cast %849 : i32 to index
    %851 = memref.load %arg3[%850] : memref<432xf32, #tpu.memory_space<smem>>
    %852 = vector.broadcast %851 : f32 to vector<16x16xf32>
    %853 = arith.mulf %852, %846 : vector<16x16xf32>
    %854 = arith.addf %844, %853 : vector<16x16xf32>
    %c0_576 = arith.constant 0 : index
    %c8_577 = arith.constant 8 : index
    %c2_578 = arith.constant 2 : index
    %c0_579 = arith.constant 0 : index
    %855 = vector.load %arg2[%c0_576, %c8_577, %c2_578, %c0_579] : memref<1x16x18x18xf32, #tpu.memory_space<vmem>>, vector<1x1x16x16xf32>
    %856 = vector.shape_cast %855 : vector<1x1x16x16xf32> to vector<16x16xf32>
    %c9_i32_580 = arith.constant 9 : i32
    %857 = arith.muli %793, %c9_i32_580 : i32
    %c6_i32_581 = arith.constant 6 : i32
    %858 = arith.addi %857, %c6_i32_581 : i32
    %c0_i32_582 = arith.constant 0 : i32
    %859 = arith.addi %858, %c0_i32_582 : i32
    %860 = arith.index_cast %859 : i32 to index
    %861 = memref.load %arg3[%860] : memref<432xf32, #tpu.memory_space<smem>>
    %862 = vector.broadcast %861 : f32 to vector<16x16xf32>
    %863 = arith.mulf %862, %856 : vector<16x16xf32>
    %864 = arith.addf %854, %863 : vector<16x16xf32>
    %c0_583 = arith.constant 0 : index
    %c8_584 = arith.constant 8 : index
    %c2_585 = arith.constant 2 : index
    %c1_586 = arith.constant 1 : index
    %865 = vector.load %arg2[%c0_583, %c8_584, %c2_585, %c1_586] : memref<1x16x18x18xf32, #tpu.memory_space<vmem>>, vector<1x1x16x16xf32>
    %866 = vector.shape_cast %865 : vector<1x1x16x16xf32> to vector<16x16xf32>
    %c9_i32_587 = arith.constant 9 : i32
    %867 = arith.muli %793, %c9_i32_587 : i32
    %c6_i32_588 = arith.constant 6 : i32
    %868 = arith.addi %867, %c6_i32_588 : i32
    %c1_i32_589 = arith.constant 1 : i32
    %869 = arith.addi %868, %c1_i32_589 : i32
    %870 = arith.index_cast %869 : i32 to index
    %871 = memref.load %arg3[%870] : memref<432xf32, #tpu.memory_space<smem>>
    %872 = vector.broadcast %871 : f32 to vector<16x16xf32>
    %873 = arith.mulf %872, %866 : vector<16x16xf32>
    %874 = arith.addf %864, %873 : vector<16x16xf32>
    %c0_590 = arith.constant 0 : index
    %c8_591 = arith.constant 8 : index
    %c2_592 = arith.constant 2 : index
    %c2_593 = arith.constant 2 : index
    %875 = vector.load %arg2[%c0_590, %c8_591, %c2_592, %c2_593] : memref<1x16x18x18xf32, #tpu.memory_space<vmem>>, vector<1x1x16x16xf32>
    %876 = vector.shape_cast %875 : vector<1x1x16x16xf32> to vector<16x16xf32>
    %c9_i32_594 = arith.constant 9 : i32
    %877 = arith.muli %793, %c9_i32_594 : i32
    %c6_i32_595 = arith.constant 6 : i32
    %878 = arith.addi %877, %c6_i32_595 : i32
    %c2_i32_596 = arith.constant 2 : i32
    %879 = arith.addi %878, %c2_i32_596 : i32
    %880 = arith.index_cast %879 : i32 to index
    %881 = memref.load %arg3[%880] : memref<432xf32, #tpu.memory_space<smem>>
    %882 = vector.broadcast %881 : f32 to vector<16x16xf32>
    %883 = arith.mulf %882, %876 : vector<16x16xf32>
    %884 = arith.addf %874, %883 : vector<16x16xf32>
    %885 = arith.index_cast %793 : i32 to index
    %886 = memref.load %arg4[%885] : memref<48xf32, #tpu.memory_space<smem>>
    %887 = vector.broadcast %886 : f32 to vector<16x16xf32>
    %888 = arith.addf %884, %887 : vector<16x16xf32>
    %c0_597 = arith.constant 0 : index
    %c8_598 = arith.constant 8 : index
    %c0_599 = arith.constant 0 : index
    %c0_600 = arith.constant 0 : index
    %889 = vector.load %arg5[%c0_597, %c8_598, %c0_599, %c0_600] : memref<1x16x16x16xf32, #tpu.memory_space<vmem>>, vector<1x1x16x16xf32>
    %890 = vector.shape_cast %889 : vector<1x1x16x16xf32> to vector<16x16xf32>
    %891 = vector.shape_cast %888 : vector<16x16xf32> to vector<1x1x16x16xf32>
    tpu.vector_store %arg5[%c0_597, %c8_598, %c0_599, %c0_600], %891 {strides = array<i32>} : memref<1x16x16x16xf32, #tpu.memory_space<vmem>>, vector<1x1x16x16xf32>,
    %c9_i32_601 = arith.constant 9 : i32
    %892 = arith.addi %0, %c9_i32_601 : i32
    %cst_602 = arith.constant 0.000000e+00 : f32
    %893 = vector.broadcast %cst_602 : f32 to vector<16x16xf32>
    %c0_603 = arith.constant 0 : index
    %c9 = arith.constant 9 : index
    %c0_604 = arith.constant 0 : index
    %c0_605 = arith.constant 0 : index
    %894 = vector.load %arg2[%c0_603, %c9, %c0_604, %c0_605] : memref<1x16x18x18xf32, #tpu.memory_space<vmem>>, vector<1x1x16x16xf32>
    %895 = vector.shape_cast %894 : vector<1x1x16x16xf32> to vector<16x16xf32>
    %c9_i32_606 = arith.constant 9 : i32
    %896 = arith.muli %892, %c9_i32_606 : i32
    %c0_i32_607 = arith.constant 0 : i32
    %897 = arith.addi %896, %c0_i32_607 : i32
    %c0_i32_608 = arith.constant 0 : i32
    %898 = arith.addi %897, %c0_i32_608 : i32
    %899 = arith.index_cast %898 : i32 to index
    %900 = memref.load %arg3[%899] : memref<432xf32, #tpu.memory_space<smem>>
    %901 = vector.broadcast %900 : f32 to vector<16x16xf32>
    %902 = arith.mulf %901, %895 : vector<16x16xf32>
    %903 = arith.addf %893, %902 : vector<16x16xf32>
    %c0_609 = arith.constant 0 : index
    %c9_610 = arith.constant 9 : index
    %c0_611 = arith.constant 0 : index
    %c1_612 = arith.constant 1 : index
    %904 = vector.load %arg2[%c0_609, %c9_610, %c0_611, %c1_612] : memref<1x16x18x18xf32, #tpu.memory_space<vmem>>, vector<1x1x16x16xf32>
    %905 = vector.shape_cast %904 : vector<1x1x16x16xf32> to vector<16x16xf32>
    %c9_i32_613 = arith.constant 9 : i32
    %906 = arith.muli %892, %c9_i32_613 : i32
    %c0_i32_614 = arith.constant 0 : i32
    %907 = arith.addi %906, %c0_i32_614 : i32
    %c1_i32_615 = arith.constant 1 : i32
    %908 = arith.addi %907, %c1_i32_615 : i32
    %909 = arith.index_cast %908 : i32 to index
    %910 = memref.load %arg3[%909] : memref<432xf32, #tpu.memory_space<smem>>
    %911 = vector.broadcast %910 : f32 to vector<16x16xf32>
    %912 = arith.mulf %911, %905 : vector<16x16xf32>
    %913 = arith.addf %903, %912 : vector<16x16xf32>
    %c0_616 = arith.constant 0 : index
    %c9_617 = arith.constant 9 : index
    %c0_618 = arith.constant 0 : index
    %c2_619 = arith.constant 2 : index
    %914 = vector.load %arg2[%c0_616, %c9_617, %c0_618, %c2_619] : memref<1x16x18x18xf32, #tpu.memory_space<vmem>>, vector<1x1x16x16xf32>
    %915 = vector.shape_cast %914 : vector<1x1x16x16xf32> to vector<16x16xf32>
    %c9_i32_620 = arith.constant 9 : i32
    %916 = arith.muli %892, %c9_i32_620 : i32
    %c0_i32_621 = arith.constant 0 : i32
    %917 = arith.addi %916, %c0_i32_621 : i32
    %c2_i32_622 = arith.constant 2 : i32
    %918 = arith.addi %917, %c2_i32_622 : i32
    %919 = arith.index_cast %918 : i32 to index
    %920 = memref.load %arg3[%919] : memref<432xf32, #tpu.memory_space<smem>>
    %921 = vector.broadcast %920 : f32 to vector<16x16xf32>
    %922 = arith.mulf %921, %915 : vector<16x16xf32>
    %923 = arith.addf %913, %922 : vector<16x16xf32>
    %c0_623 = arith.constant 0 : index
    %c9_624 = arith.constant 9 : index
    %c1_625 = arith.constant 1 : index
    %c0_626 = arith.constant 0 : index
    %924 = vector.load %arg2[%c0_623, %c9_624, %c1_625, %c0_626] : memref<1x16x18x18xf32, #tpu.memory_space<vmem>>, vector<1x1x16x16xf32>
    %925 = vector.shape_cast %924 : vector<1x1x16x16xf32> to vector<16x16xf32>
    %c9_i32_627 = arith.constant 9 : i32
    %926 = arith.muli %892, %c9_i32_627 : i32
    %c3_i32_628 = arith.constant 3 : i32
    %927 = arith.addi %926, %c3_i32_628 : i32
    %c0_i32_629 = arith.constant 0 : i32
    %928 = arith.addi %927, %c0_i32_629 : i32
    %929 = arith.index_cast %928 : i32 to index
    %930 = memref.load %arg3[%929] : memref<432xf32, #tpu.memory_space<smem>>
    %931 = vector.broadcast %930 : f32 to vector<16x16xf32>
    %932 = arith.mulf %931, %925 : vector<16x16xf32>
    %933 = arith.addf %923, %932 : vector<16x16xf32>
    %c0_630 = arith.constant 0 : index
    %c9_631 = arith.constant 9 : index
    %c1_632 = arith.constant 1 : index
    %c1_633 = arith.constant 1 : index
    %934 = vector.load %arg2[%c0_630, %c9_631, %c1_632, %c1_633] : memref<1x16x18x18xf32, #tpu.memory_space<vmem>>, vector<1x1x16x16xf32>
    %935 = vector.shape_cast %934 : vector<1x1x16x16xf32> to vector<16x16xf32>
    %c9_i32_634 = arith.constant 9 : i32
    %936 = arith.muli %892, %c9_i32_634 : i32
    %c3_i32_635 = arith.constant 3 : i32
    %937 = arith.addi %936, %c3_i32_635 : i32
    %c1_i32_636 = arith.constant 1 : i32
    %938 = arith.addi %937, %c1_i32_636 : i32
    %939 = arith.index_cast %938 : i32 to index
    %940 = memref.load %arg3[%939] : memref<432xf32, #tpu.memory_space<smem>>
    %941 = vector.broadcast %940 : f32 to vector<16x16xf32>
    %942 = arith.mulf %941, %935 : vector<16x16xf32>
    %943 = arith.addf %933, %942 : vector<16x16xf32>
    %c0_637 = arith.constant 0 : index
    %c9_638 = arith.constant 9 : index
    %c1_639 = arith.constant 1 : index
    %c2_640 = arith.constant 2 : index
    %944 = vector.load %arg2[%c0_637, %c9_638, %c1_639, %c2_640] : memref<1x16x18x18xf32, #tpu.memory_space<vmem>>, vector<1x1x16x16xf32>
    %945 = vector.shape_cast %944 : vector<1x1x16x16xf32> to vector<16x16xf32>
    %c9_i32_641 = arith.constant 9 : i32
    %946 = arith.muli %892, %c9_i32_641 : i32
    %c3_i32_642 = arith.constant 3 : i32
    %947 = arith.addi %946, %c3_i32_642 : i32
    %c2_i32_643 = arith.constant 2 : i32
    %948 = arith.addi %947, %c2_i32_643 : i32
    %949 = arith.index_cast %948 : i32 to index
    %950 = memref.load %arg3[%949] : memref<432xf32, #tpu.memory_space<smem>>
    %951 = vector.broadcast %950 : f32 to vector<16x16xf32>
    %952 = arith.mulf %951, %945 : vector<16x16xf32>
    %953 = arith.addf %943, %952 : vector<16x16xf32>
    %c0_644 = arith.constant 0 : index
    %c9_645 = arith.constant 9 : index
    %c2_646 = arith.constant 2 : index
    %c0_647 = arith.constant 0 : index
    %954 = vector.load %arg2[%c0_644, %c9_645, %c2_646, %c0_647] : memref<1x16x18x18xf32, #tpu.memory_space<vmem>>, vector<1x1x16x16xf32>
    %955 = vector.shape_cast %954 : vector<1x1x16x16xf32> to vector<16x16xf32>
    %c9_i32_648 = arith.constant 9 : i32
    %956 = arith.muli %892, %c9_i32_648 : i32
    %c6_i32_649 = arith.constant 6 : i32
    %957 = arith.addi %956, %c6_i32_649 : i32
    %c0_i32_650 = arith.constant 0 : i32
    %958 = arith.addi %957, %c0_i32_650 : i32
    %959 = arith.index_cast %958 : i32 to index
    %960 = memref.load %arg3[%959] : memref<432xf32, #tpu.memory_space<smem>>
    %961 = vector.broadcast %960 : f32 to vector<16x16xf32>
    %962 = arith.mulf %961, %955 : vector<16x16xf32>
    %963 = arith.addf %953, %962 : vector<16x16xf32>
    %c0_651 = arith.constant 0 : index
    %c9_652 = arith.constant 9 : index
    %c2_653 = arith.constant 2 : index
    %c1_654 = arith.constant 1 : index
    %964 = vector.load %arg2[%c0_651, %c9_652, %c2_653, %c1_654] : memref<1x16x18x18xf32, #tpu.memory_space<vmem>>, vector<1x1x16x16xf32>
    %965 = vector.shape_cast %964 : vector<1x1x16x16xf32> to vector<16x16xf32>
    %c9_i32_655 = arith.constant 9 : i32
    %966 = arith.muli %892, %c9_i32_655 : i32
    %c6_i32_656 = arith.constant 6 : i32
    %967 = arith.addi %966, %c6_i32_656 : i32
    %c1_i32_657 = arith.constant 1 : i32
    %968 = arith.addi %967, %c1_i32_657 : i32
    %969 = arith.index_cast %968 : i32 to index
    %970 = memref.load %arg3[%969] : memref<432xf32, #tpu.memory_space<smem>>
    %971 = vector.broadcast %970 : f32 to vector<16x16xf32>
    %972 = arith.mulf %971, %965 : vector<16x16xf32>
    %973 = arith.addf %963, %972 : vector<16x16xf32>
    %c0_658 = arith.constant 0 : index
    %c9_659 = arith.constant 9 : index
    %c2_660 = arith.constant 2 : index
    %c2_661 = arith.constant 2 : index
    %974 = vector.load %arg2[%c0_658, %c9_659, %c2_660, %c2_661] : memref<1x16x18x18xf32, #tpu.memory_space<vmem>>, vector<1x1x16x16xf32>
    %975 = vector.shape_cast %974 : vector<1x1x16x16xf32> to vector<16x16xf32>
    %c9_i32_662 = arith.constant 9 : i32
    %976 = arith.muli %892, %c9_i32_662 : i32
    %c6_i32_663 = arith.constant 6 : i32
    %977 = arith.addi %976, %c6_i32_663 : i32
    %c2_i32_664 = arith.constant 2 : i32
    %978 = arith.addi %977, %c2_i32_664 : i32
    %979 = arith.index_cast %978 : i32 to index
    %980 = memref.load %arg3[%979] : memref<432xf32, #tpu.memory_space<smem>>
    %981 = vector.broadcast %980 : f32 to vector<16x16xf32>
    %982 = arith.mulf %981, %975 : vector<16x16xf32>
    %983 = arith.addf %973, %982 : vector<16x16xf32>
    %984 = arith.index_cast %892 : i32 to index
    %985 = memref.load %arg4[%984] : memref<48xf32, #tpu.memory_space<smem>>
    %986 = vector.broadcast %985 : f32 to vector<16x16xf32>
    %987 = arith.addf %983, %986 : vector<16x16xf32>
    %c0_665 = arith.constant 0 : index
    %c9_666 = arith.constant 9 : index
    %c0_667 = arith.constant 0 : index
    %c0_668 = arith.constant 0 : index
    %988 = vector.load %arg5[%c0_665, %c9_666, %c0_667, %c0_668] : memref<1x16x16x16xf32, #tpu.memory_space<vmem>>, vector<1x1x16x16xf32>
    %989 = vector.shape_cast %988 : vector<1x1x16x16xf32> to vector<16x16xf32>
    %990 = vector.shape_cast %987 : vector<16x16xf32> to vector<1x1x16x16xf32>
    tpu.vector_store %arg5[%c0_665, %c9_666, %c0_667, %c0_668], %990 {strides = array<i32>} : memref<1x16x16x16xf32, #tpu.memory_space<vmem>>, vector<1x1x16x16xf32>,
    %c10_i32 = arith.constant 10 : i32
    %991 = arith.addi %0, %c10_i32 : i32
    %cst_669 = arith.constant 0.000000e+00 : f32
    %992 = vector.broadcast %cst_669 : f32 to vector<16x16xf32>
    %c0_670 = arith.constant 0 : index
    %c10 = arith.constant 10 : index
    %c0_671 = arith.constant 0 : index
    %c0_672 = arith.constant 0 : index
    %993 = vector.load %arg2[%c0_670, %c10, %c0_671, %c0_672] : memref<1x16x18x18xf32, #tpu.memory_space<vmem>>, vector<1x1x16x16xf32>
    %994 = vector.shape_cast %993 : vector<1x1x16x16xf32> to vector<16x16xf32>
    %c9_i32_673 = arith.constant 9 : i32
    %995 = arith.muli %991, %c9_i32_673 : i32
    %c0_i32_674 = arith.constant 0 : i32
    %996 = arith.addi %995, %c0_i32_674 : i32
    %c0_i32_675 = arith.constant 0 : i32
    %997 = arith.addi %996, %c0_i32_675 : i32
    %998 = arith.index_cast %997 : i32 to index
    %999 = memref.load %arg3[%998] : memref<432xf32, #tpu.memory_space<smem>>
    %1000 = vector.broadcast %999 : f32 to vector<16x16xf32>
    %1001 = arith.mulf %1000, %994 : vector<16x16xf32>
    %1002 = arith.addf %992, %1001 : vector<16x16xf32>
    %c0_676 = arith.constant 0 : index
    %c10_677 = arith.constant 10 : index
    %c0_678 = arith.constant 0 : index
    %c1_679 = arith.constant 1 : index
    %1003 = vector.load %arg2[%c0_676, %c10_677, %c0_678, %c1_679] : memref<1x16x18x18xf32, #tpu.memory_space<vmem>>, vector<1x1x16x16xf32>
    %1004 = vector.shape_cast %1003 : vector<1x1x16x16xf32> to vector<16x16xf32>
    %c9_i32_680 = arith.constant 9 : i32
    %1005 = arith.muli %991, %c9_i32_680 : i32
    %c0_i32_681 = arith.constant 0 : i32
    %1006 = arith.addi %1005, %c0_i32_681 : i32
    %c1_i32_682 = arith.constant 1 : i32
    %1007 = arith.addi %1006, %c1_i32_682 : i32
    %1008 = arith.index_cast %1007 : i32 to index
    %1009 = memref.load %arg3[%1008] : memref<432xf32, #tpu.memory_space<smem>>
    %1010 = vector.broadcast %1009 : f32 to vector<16x16xf32>
    %1011 = arith.mulf %1010, %1004 : vector<16x16xf32>
    %1012 = arith.addf %1002, %1011 : vector<16x16xf32>
    %c0_683 = arith.constant 0 : index
    %c10_684 = arith.constant 10 : index
    %c0_685 = arith.constant 0 : index
    %c2_686 = arith.constant 2 : index
    %1013 = vector.load %arg2[%c0_683, %c10_684, %c0_685, %c2_686] : memref<1x16x18x18xf32, #tpu.memory_space<vmem>>, vector<1x1x16x16xf32>
    %1014 = vector.shape_cast %1013 : vector<1x1x16x16xf32> to vector<16x16xf32>
    %c9_i32_687 = arith.constant 9 : i32
    %1015 = arith.muli %991, %c9_i32_687 : i32
    %c0_i32_688 = arith.constant 0 : i32
    %1016 = arith.addi %1015, %c0_i32_688 : i32
    %c2_i32_689 = arith.constant 2 : i32
    %1017 = arith.addi %1016, %c2_i32_689 : i32
    %1018 = arith.index_cast %1017 : i32 to index
    %1019 = memref.load %arg3[%1018] : memref<432xf32, #tpu.memory_space<smem>>
    %1020 = vector.broadcast %1019 : f32 to vector<16x16xf32>
    %1021 = arith.mulf %1020, %1014 : vector<16x16xf32>
    %1022 = arith.addf %1012, %1021 : vector<16x16xf32>
    %c0_690 = arith.constant 0 : index
    %c10_691 = arith.constant 10 : index
    %c1_692 = arith.constant 1 : index
    %c0_693 = arith.constant 0 : index
    %1023 = vector.load %arg2[%c0_690, %c10_691, %c1_692, %c0_693] : memref<1x16x18x18xf32, #tpu.memory_space<vmem>>, vector<1x1x16x16xf32>
    %1024 = vector.shape_cast %1023 : vector<1x1x16x16xf32> to vector<16x16xf32>
    %c9_i32_694 = arith.constant 9 : i32
    %1025 = arith.muli %991, %c9_i32_694 : i32
    %c3_i32_695 = arith.constant 3 : i32
    %1026 = arith.addi %1025, %c3_i32_695 : i32
    %c0_i32_696 = arith.constant 0 : i32
    %1027 = arith.addi %1026, %c0_i32_696 : i32
    %1028 = arith.index_cast %1027 : i32 to index
    %1029 = memref.load %arg3[%1028] : memref<432xf32, #tpu.memory_space<smem>>
    %1030 = vector.broadcast %1029 : f32 to vector<16x16xf32>
    %1031 = arith.mulf %1030, %1024 : vector<16x16xf32>
    %1032 = arith.addf %1022, %1031 : vector<16x16xf32>
    %c0_697 = arith.constant 0 : index
    %c10_698 = arith.constant 10 : index
    %c1_699 = arith.constant 1 : index
    %c1_700 = arith.constant 1 : index
    %1033 = vector.load %arg2[%c0_697, %c10_698, %c1_699, %c1_700] : memref<1x16x18x18xf32, #tpu.memory_space<vmem>>, vector<1x1x16x16xf32>
    %1034 = vector.shape_cast %1033 : vector<1x1x16x16xf32> to vector<16x16xf32>
    %c9_i32_701 = arith.constant 9 : i32
    %1035 = arith.muli %991, %c9_i32_701 : i32
    %c3_i32_702 = arith.constant 3 : i32
    %1036 = arith.addi %1035, %c3_i32_702 : i32
    %c1_i32_703 = arith.constant 1 : i32
    %1037 = arith.addi %1036, %c1_i32_703 : i32
    %1038 = arith.index_cast %1037 : i32 to index
    %1039 = memref.load %arg3[%1038] : memref<432xf32, #tpu.memory_space<smem>>
    %1040 = vector.broadcast %1039 : f32 to vector<16x16xf32>
    %1041 = arith.mulf %1040, %1034 : vector<16x16xf32>
    %1042 = arith.addf %1032, %1041 : vector<16x16xf32>
    %c0_704 = arith.constant 0 : index
    %c10_705 = arith.constant 10 : index
    %c1_706 = arith.constant 1 : index
    %c2_707 = arith.constant 2 : index
    %1043 = vector.load %arg2[%c0_704, %c10_705, %c1_706, %c2_707] : memref<1x16x18x18xf32, #tpu.memory_space<vmem>>, vector<1x1x16x16xf32>
    %1044 = vector.shape_cast %1043 : vector<1x1x16x16xf32> to vector<16x16xf32>
    %c9_i32_708 = arith.constant 9 : i32
    %1045 = arith.muli %991, %c9_i32_708 : i32
    %c3_i32_709 = arith.constant 3 : i32
    %1046 = arith.addi %1045, %c3_i32_709 : i32
    %c2_i32_710 = arith.constant 2 : i32
    %1047 = arith.addi %1046, %c2_i32_710 : i32
    %1048 = arith.index_cast %1047 : i32 to index
    %1049 = memref.load %arg3[%1048] : memref<432xf32, #tpu.memory_space<smem>>
    %1050 = vector.broadcast %1049 : f32 to vector<16x16xf32>
    %1051 = arith.mulf %1050, %1044 : vector<16x16xf32>
    %1052 = arith.addf %1042, %1051 : vector<16x16xf32>
    %c0_711 = arith.constant 0 : index
    %c10_712 = arith.constant 10 : index
    %c2_713 = arith.constant 2 : index
    %c0_714 = arith.constant 0 : index
    %1053 = vector.load %arg2[%c0_711, %c10_712, %c2_713, %c0_714] : memref<1x16x18x18xf32, #tpu.memory_space<vmem>>, vector<1x1x16x16xf32>
    %1054 = vector.shape_cast %1053 : vector<1x1x16x16xf32> to vector<16x16xf32>
    %c9_i32_715 = arith.constant 9 : i32
    %1055 = arith.muli %991, %c9_i32_715 : i32
    %c6_i32_716 = arith.constant 6 : i32
    %1056 = arith.addi %1055, %c6_i32_716 : i32
    %c0_i32_717 = arith.constant 0 : i32
    %1057 = arith.addi %1056, %c0_i32_717 : i32
    %1058 = arith.index_cast %1057 : i32 to index
    %1059 = memref.load %arg3[%1058] : memref<432xf32, #tpu.memory_space<smem>>
    %1060 = vector.broadcast %1059 : f32 to vector<16x16xf32>
    %1061 = arith.mulf %1060, %1054 : vector<16x16xf32>
    %1062 = arith.addf %1052, %1061 : vector<16x16xf32>
    %c0_718 = arith.constant 0 : index
    %c10_719 = arith.constant 10 : index
    %c2_720 = arith.constant 2 : index
    %c1_721 = arith.constant 1 : index
    %1063 = vector.load %arg2[%c0_718, %c10_719, %c2_720, %c1_721] : memref<1x16x18x18xf32, #tpu.memory_space<vmem>>, vector<1x1x16x16xf32>
    %1064 = vector.shape_cast %1063 : vector<1x1x16x16xf32> to vector<16x16xf32>
    %c9_i32_722 = arith.constant 9 : i32
    %1065 = arith.muli %991, %c9_i32_722 : i32
    %c6_i32_723 = arith.constant 6 : i32
    %1066 = arith.addi %1065, %c6_i32_723 : i32
    %c1_i32_724 = arith.constant 1 : i32
    %1067 = arith.addi %1066, %c1_i32_724 : i32
    %1068 = arith.index_cast %1067 : i32 to index
    %1069 = memref.load %arg3[%1068] : memref<432xf32, #tpu.memory_space<smem>>
    %1070 = vector.broadcast %1069 : f32 to vector<16x16xf32>
    %1071 = arith.mulf %1070, %1064 : vector<16x16xf32>
    %1072 = arith.addf %1062, %1071 : vector<16x16xf32>
    %c0_725 = arith.constant 0 : index
    %c10_726 = arith.constant 10 : index
    %c2_727 = arith.constant 2 : index
    %c2_728 = arith.constant 2 : index
    %1073 = vector.load %arg2[%c0_725, %c10_726, %c2_727, %c2_728] : memref<1x16x18x18xf32, #tpu.memory_space<vmem>>, vector<1x1x16x16xf32>
    %1074 = vector.shape_cast %1073 : vector<1x1x16x16xf32> to vector<16x16xf32>
    %c9_i32_729 = arith.constant 9 : i32
    %1075 = arith.muli %991, %c9_i32_729 : i32
    %c6_i32_730 = arith.constant 6 : i32
    %1076 = arith.addi %1075, %c6_i32_730 : i32
    %c2_i32_731 = arith.constant 2 : i32
    %1077 = arith.addi %1076, %c2_i32_731 : i32
    %1078 = arith.index_cast %1077 : i32 to index
    %1079 = memref.load %arg3[%1078] : memref<432xf32, #tpu.memory_space<smem>>
    %1080 = vector.broadcast %1079 : f32 to vector<16x16xf32>
    %1081 = arith.mulf %1080, %1074 : vector<16x16xf32>
    %1082 = arith.addf %1072, %1081 : vector<16x16xf32>
    %1083 = arith.index_cast %991 : i32 to index
    %1084 = memref.load %arg4[%1083] : memref<48xf32, #tpu.memory_space<smem>>
    %1085 = vector.broadcast %1084 : f32 to vector<16x16xf32>
    %1086 = arith.addf %1082, %1085 : vector<16x16xf32>
    %c0_732 = arith.constant 0 : index
    %c10_733 = arith.constant 10 : index
    %c0_734 = arith.constant 0 : index
    %c0_735 = arith.constant 0 : index
    %1087 = vector.load %arg5[%c0_732, %c10_733, %c0_734, %c0_735] : memref<1x16x16x16xf32, #tpu.memory_space<vmem>>, vector<1x1x16x16xf32>
    %1088 = vector.shape_cast %1087 : vector<1x1x16x16xf32> to vector<16x16xf32>
    %1089 = vector.shape_cast %1086 : vector<16x16xf32> to vector<1x1x16x16xf32>
    tpu.vector_store %arg5[%c0_732, %c10_733, %c0_734, %c0_735], %1089 {strides = array<i32>} : memref<1x16x16x16xf32, #tpu.memory_space<vmem>>, vector<1x1x16x16xf32>,
    %c11_i32 = arith.constant 11 : i32
    %1090 = arith.addi %0, %c11_i32 : i32
    %cst_736 = arith.constant 0.000000e+00 : f32
    %1091 = vector.broadcast %cst_736 : f32 to vector<16x16xf32>
    %c0_737 = arith.constant 0 : index
    %c11 = arith.constant 11 : index
    %c0_738 = arith.constant 0 : index
    %c0_739 = arith.constant 0 : index
    %1092 = vector.load %arg2[%c0_737, %c11, %c0_738, %c0_739] : memref<1x16x18x18xf32, #tpu.memory_space<vmem>>, vector<1x1x16x16xf32>
    %1093 = vector.shape_cast %1092 : vector<1x1x16x16xf32> to vector<16x16xf32>
    %c9_i32_740 = arith.constant 9 : i32
    %1094 = arith.muli %1090, %c9_i32_740 : i32
    %c0_i32_741 = arith.constant 0 : i32
    %1095 = arith.addi %1094, %c0_i32_741 : i32
    %c0_i32_742 = arith.constant 0 : i32
    %1096 = arith.addi %1095, %c0_i32_742 : i32
    %1097 = arith.index_cast %1096 : i32 to index
    %1098 = memref.load %arg3[%1097] : memref<432xf32, #tpu.memory_space<smem>>
    %1099 = vector.broadcast %1098 : f32 to vector<16x16xf32>
    %1100 = arith.mulf %1099, %1093 : vector<16x16xf32>
    %1101 = arith.addf %1091, %1100 : vector<16x16xf32>
    %c0_743 = arith.constant 0 : index
    %c11_744 = arith.constant 11 : index
    %c0_745 = arith.constant 0 : index
    %c1_746 = arith.constant 1 : index
    %1102 = vector.load %arg2[%c0_743, %c11_744, %c0_745, %c1_746] : memref<1x16x18x18xf32, #tpu.memory_space<vmem>>, vector<1x1x16x16xf32>
    %1103 = vector.shape_cast %1102 : vector<1x1x16x16xf32> to vector<16x16xf32>
    %c9_i32_747 = arith.constant 9 : i32
    %1104 = arith.muli %1090, %c9_i32_747 : i32
    %c0_i32_748 = arith.constant 0 : i32
    %1105 = arith.addi %1104, %c0_i32_748 : i32
    %c1_i32_749 = arith.constant 1 : i32
    %1106 = arith.addi %1105, %c1_i32_749 : i32
    %1107 = arith.index_cast %1106 : i32 to index
    %1108 = memref.load %arg3[%1107] : memref<432xf32, #tpu.memory_space<smem>>
    %1109 = vector.broadcast %1108 : f32 to vector<16x16xf32>
    %1110 = arith.mulf %1109, %1103 : vector<16x16xf32>
    %1111 = arith.addf %1101, %1110 : vector<16x16xf32>
    %c0_750 = arith.constant 0 : index
    %c11_751 = arith.constant 11 : index
    %c0_752 = arith.constant 0 : index
    %c2_753 = arith.constant 2 : index
    %1112 = vector.load %arg2[%c0_750, %c11_751, %c0_752, %c2_753] : memref<1x16x18x18xf32, #tpu.memory_space<vmem>>, vector<1x1x16x16xf32>
    %1113 = vector.shape_cast %1112 : vector<1x1x16x16xf32> to vector<16x16xf32>
    %c9_i32_754 = arith.constant 9 : i32
    %1114 = arith.muli %1090, %c9_i32_754 : i32
    %c0_i32_755 = arith.constant 0 : i32
    %1115 = arith.addi %1114, %c0_i32_755 : i32
    %c2_i32_756 = arith.constant 2 : i32
    %1116 = arith.addi %1115, %c2_i32_756 : i32
    %1117 = arith.index_cast %1116 : i32 to index
    %1118 = memref.load %arg3[%1117] : memref<432xf32, #tpu.memory_space<smem>>
    %1119 = vector.broadcast %1118 : f32 to vector<16x16xf32>
    %1120 = arith.mulf %1119, %1113 : vector<16x16xf32>
    %1121 = arith.addf %1111, %1120 : vector<16x16xf32>
    %c0_757 = arith.constant 0 : index
    %c11_758 = arith.constant 11 : index
    %c1_759 = arith.constant 1 : index
    %c0_760 = arith.constant 0 : index
    %1122 = vector.load %arg2[%c0_757, %c11_758, %c1_759, %c0_760] : memref<1x16x18x18xf32, #tpu.memory_space<vmem>>, vector<1x1x16x16xf32>
    %1123 = vector.shape_cast %1122 : vector<1x1x16x16xf32> to vector<16x16xf32>
    %c9_i32_761 = arith.constant 9 : i32
    %1124 = arith.muli %1090, %c9_i32_761 : i32
    %c3_i32_762 = arith.constant 3 : i32
    %1125 = arith.addi %1124, %c3_i32_762 : i32
    %c0_i32_763 = arith.constant 0 : i32
    %1126 = arith.addi %1125, %c0_i32_763 : i32
    %1127 = arith.index_cast %1126 : i32 to index
    %1128 = memref.load %arg3[%1127] : memref<432xf32, #tpu.memory_space<smem>>
    %1129 = vector.broadcast %1128 : f32 to vector<16x16xf32>
    %1130 = arith.mulf %1129, %1123 : vector<16x16xf32>
    %1131 = arith.addf %1121, %1130 : vector<16x16xf32>
    %c0_764 = arith.constant 0 : index
    %c11_765 = arith.constant 11 : index
    %c1_766 = arith.constant 1 : index
    %c1_767 = arith.constant 1 : index
    %1132 = vector.load %arg2[%c0_764, %c11_765, %c1_766, %c1_767] : memref<1x16x18x18xf32, #tpu.memory_space<vmem>>, vector<1x1x16x16xf32>
    %1133 = vector.shape_cast %1132 : vector<1x1x16x16xf32> to vector<16x16xf32>
    %c9_i32_768 = arith.constant 9 : i32
    %1134 = arith.muli %1090, %c9_i32_768 : i32
    %c3_i32_769 = arith.constant 3 : i32
    %1135 = arith.addi %1134, %c3_i32_769 : i32
    %c1_i32_770 = arith.constant 1 : i32
    %1136 = arith.addi %1135, %c1_i32_770 : i32
    %1137 = arith.index_cast %1136 : i32 to index
    %1138 = memref.load %arg3[%1137] : memref<432xf32, #tpu.memory_space<smem>>
    %1139 = vector.broadcast %1138 : f32 to vector<16x16xf32>
    %1140 = arith.mulf %1139, %1133 : vector<16x16xf32>
    %1141 = arith.addf %1131, %1140 : vector<16x16xf32>
    %c0_771 = arith.constant 0 : index
    %c11_772 = arith.constant 11 : index
    %c1_773 = arith.constant 1 : index
    %c2_774 = arith.constant 2 : index
    %1142 = vector.load %arg2[%c0_771, %c11_772, %c1_773, %c2_774] : memref<1x16x18x18xf32, #tpu.memory_space<vmem>>, vector<1x1x16x16xf32>
    %1143 = vector.shape_cast %1142 : vector<1x1x16x16xf32> to vector<16x16xf32>
    %c9_i32_775 = arith.constant 9 : i32
    %1144 = arith.muli %1090, %c9_i32_775 : i32
    %c3_i32_776 = arith.constant 3 : i32
    %1145 = arith.addi %1144, %c3_i32_776 : i32
    %c2_i32_777 = arith.constant 2 : i32
    %1146 = arith.addi %1145, %c2_i32_777 : i32
    %1147 = arith.index_cast %1146 : i32 to index
    %1148 = memref.load %arg3[%1147] : memref<432xf32, #tpu.memory_space<smem>>
    %1149 = vector.broadcast %1148 : f32 to vector<16x16xf32>
    %1150 = arith.mulf %1149, %1143 : vector<16x16xf32>
    %1151 = arith.addf %1141, %1150 : vector<16x16xf32>
    %c0_778 = arith.constant 0 : index
    %c11_779 = arith.constant 11 : index
    %c2_780 = arith.constant 2 : index
    %c0_781 = arith.constant 0 : index
    %1152 = vector.load %arg2[%c0_778, %c11_779, %c2_780, %c0_781] : memref<1x16x18x18xf32, #tpu.memory_space<vmem>>, vector<1x1x16x16xf32>
    %1153 = vector.shape_cast %1152 : vector<1x1x16x16xf32> to vector<16x16xf32>
    %c9_i32_782 = arith.constant 9 : i32
    %1154 = arith.muli %1090, %c9_i32_782 : i32
    %c6_i32_783 = arith.constant 6 : i32
    %1155 = arith.addi %1154, %c6_i32_783 : i32
    %c0_i32_784 = arith.constant 0 : i32
    %1156 = arith.addi %1155, %c0_i32_784 : i32
    %1157 = arith.index_cast %1156 : i32 to index
    %1158 = memref.load %arg3[%1157] : memref<432xf32, #tpu.memory_space<smem>>
    %1159 = vector.broadcast %1158 : f32 to vector<16x16xf32>
    %1160 = arith.mulf %1159, %1153 : vector<16x16xf32>
    %1161 = arith.addf %1151, %1160 : vector<16x16xf32>
    %c0_785 = arith.constant 0 : index
    %c11_786 = arith.constant 11 : index
    %c2_787 = arith.constant 2 : index
    %c1_788 = arith.constant 1 : index
    %1162 = vector.load %arg2[%c0_785, %c11_786, %c2_787, %c1_788] : memref<1x16x18x18xf32, #tpu.memory_space<vmem>>, vector<1x1x16x16xf32>
    %1163 = vector.shape_cast %1162 : vector<1x1x16x16xf32> to vector<16x16xf32>
    %c9_i32_789 = arith.constant 9 : i32
    %1164 = arith.muli %1090, %c9_i32_789 : i32
    %c6_i32_790 = arith.constant 6 : i32
    %1165 = arith.addi %1164, %c6_i32_790 : i32
    %c1_i32_791 = arith.constant 1 : i32
    %1166 = arith.addi %1165, %c1_i32_791 : i32
    %1167 = arith.index_cast %1166 : i32 to index
    %1168 = memref.load %arg3[%1167] : memref<432xf32, #tpu.memory_space<smem>>
    %1169 = vector.broadcast %1168 : f32 to vector<16x16xf32>
    %1170 = arith.mulf %1169, %1163 : vector<16x16xf32>
    %1171 = arith.addf %1161, %1170 : vector<16x16xf32>
    %c0_792 = arith.constant 0 : index
    %c11_793 = arith.constant 11 : index
    %c2_794 = arith.constant 2 : index
    %c2_795 = arith.constant 2 : index
    %1172 = vector.load %arg2[%c0_792, %c11_793, %c2_794, %c2_795] : memref<1x16x18x18xf32, #tpu.memory_space<vmem>>, vector<1x1x16x16xf32>
    %1173 = vector.shape_cast %1172 : vector<1x1x16x16xf32> to vector<16x16xf32>
    %c9_i32_796 = arith.constant 9 : i32
    %1174 = arith.muli %1090, %c9_i32_796 : i32
    %c6_i32_797 = arith.constant 6 : i32
    %1175 = arith.addi %1174, %c6_i32_797 : i32
    %c2_i32_798 = arith.constant 2 : i32
    %1176 = arith.addi %1175, %c2_i32_798 : i32
    %1177 = arith.index_cast %1176 : i32 to index
    %1178 = memref.load %arg3[%1177] : memref<432xf32, #tpu.memory_space<smem>>
    %1179 = vector.broadcast %1178 : f32 to vector<16x16xf32>
    %1180 = arith.mulf %1179, %1173 : vector<16x16xf32>
    %1181 = arith.addf %1171, %1180 : vector<16x16xf32>
    %1182 = arith.index_cast %1090 : i32 to index
    %1183 = memref.load %arg4[%1182] : memref<48xf32, #tpu.memory_space<smem>>
    %1184 = vector.broadcast %1183 : f32 to vector<16x16xf32>
    %1185 = arith.addf %1181, %1184 : vector<16x16xf32>
    %c0_799 = arith.constant 0 : index
    %c11_800 = arith.constant 11 : index
    %c0_801 = arith.constant 0 : index
    %c0_802 = arith.constant 0 : index
    %1186 = vector.load %arg5[%c0_799, %c11_800, %c0_801, %c0_802] : memref<1x16x16x16xf32, #tpu.memory_space<vmem>>, vector<1x1x16x16xf32>
    %1187 = vector.shape_cast %1186 : vector<1x1x16x16xf32> to vector<16x16xf32>
    %1188 = vector.shape_cast %1185 : vector<16x16xf32> to vector<1x1x16x16xf32>
    tpu.vector_store %arg5[%c0_799, %c11_800, %c0_801, %c0_802], %1188 {strides = array<i32>} : memref<1x16x16x16xf32, #tpu.memory_space<vmem>>, vector<1x1x16x16xf32>,
    %c12_i32 = arith.constant 12 : i32
    %1189 = arith.addi %0, %c12_i32 : i32
    %cst_803 = arith.constant 0.000000e+00 : f32
    %1190 = vector.broadcast %cst_803 : f32 to vector<16x16xf32>
    %c0_804 = arith.constant 0 : index
    %c12 = arith.constant 12 : index
    %c0_805 = arith.constant 0 : index
    %c0_806 = arith.constant 0 : index
    %1191 = vector.load %arg2[%c0_804, %c12, %c0_805, %c0_806] : memref<1x16x18x18xf32, #tpu.memory_space<vmem>>, vector<1x1x16x16xf32>
    %1192 = vector.shape_cast %1191 : vector<1x1x16x16xf32> to vector<16x16xf32>
    %c9_i32_807 = arith.constant 9 : i32
    %1193 = arith.muli %1189, %c9_i32_807 : i32
    %c0_i32_808 = arith.constant 0 : i32
    %1194 = arith.addi %1193, %c0_i32_808 : i32
    %c0_i32_809 = arith.constant 0 : i32
    %1195 = arith.addi %1194, %c0_i32_809 : i32
    %1196 = arith.index_cast %1195 : i32 to index
    %1197 = memref.load %arg3[%1196] : memref<432xf32, #tpu.memory_space<smem>>
    %1198 = vector.broadcast %1197 : f32 to vector<16x16xf32>
    %1199 = arith.mulf %1198, %1192 : vector<16x16xf32>
    %1200 = arith.addf %1190, %1199 : vector<16x16xf32>
    %c0_810 = arith.constant 0 : index
    %c12_811 = arith.constant 12 : index
    %c0_812 = arith.constant 0 : index
    %c1_813 = arith.constant 1 : index
    %1201 = vector.load %arg2[%c0_810, %c12_811, %c0_812, %c1_813] : memref<1x16x18x18xf32, #tpu.memory_space<vmem>>, vector<1x1x16x16xf32>
    %1202 = vector.shape_cast %1201 : vector<1x1x16x16xf32> to vector<16x16xf32>
    %c9_i32_814 = arith.constant 9 : i32
    %1203 = arith.muli %1189, %c9_i32_814 : i32
    %c0_i32_815 = arith.constant 0 : i32
    %1204 = arith.addi %1203, %c0_i32_815 : i32
    %c1_i32_816 = arith.constant 1 : i32
    %1205 = arith.addi %1204, %c1_i32_816 : i32
    %1206 = arith.index_cast %1205 : i32 to index
    %1207 = memref.load %arg3[%1206] : memref<432xf32, #tpu.memory_space<smem>>
    %1208 = vector.broadcast %1207 : f32 to vector<16x16xf32>
    %1209 = arith.mulf %1208, %1202 : vector<16x16xf32>
    %1210 = arith.addf %1200, %1209 : vector<16x16xf32>
    %c0_817 = arith.constant 0 : index
    %c12_818 = arith.constant 12 : index
    %c0_819 = arith.constant 0 : index
    %c2_820 = arith.constant 2 : index
    %1211 = vector.load %arg2[%c0_817, %c12_818, %c0_819, %c2_820] : memref<1x16x18x18xf32, #tpu.memory_space<vmem>>, vector<1x1x16x16xf32>
    %1212 = vector.shape_cast %1211 : vector<1x1x16x16xf32> to vector<16x16xf32>
    %c9_i32_821 = arith.constant 9 : i32
    %1213 = arith.muli %1189, %c9_i32_821 : i32
    %c0_i32_822 = arith.constant 0 : i32
    %1214 = arith.addi %1213, %c0_i32_822 : i32
    %c2_i32_823 = arith.constant 2 : i32
    %1215 = arith.addi %1214, %c2_i32_823 : i32
    %1216 = arith.index_cast %1215 : i32 to index
    %1217 = memref.load %arg3[%1216] : memref<432xf32, #tpu.memory_space<smem>>
    %1218 = vector.broadcast %1217 : f32 to vector<16x16xf32>
    %1219 = arith.mulf %1218, %1212 : vector<16x16xf32>
    %1220 = arith.addf %1210, %1219 : vector<16x16xf32>
    %c0_824 = arith.constant 0 : index
    %c12_825 = arith.constant 12 : index
    %c1_826 = arith.constant 1 : index
    %c0_827 = arith.constant 0 : index
    %1221 = vector.load %arg2[%c0_824, %c12_825, %c1_826, %c0_827] : memref<1x16x18x18xf32, #tpu.memory_space<vmem>>, vector<1x1x16x16xf32>
    %1222 = vector.shape_cast %1221 : vector<1x1x16x16xf32> to vector<16x16xf32>
    %c9_i32_828 = arith.constant 9 : i32
    %1223 = arith.muli %1189, %c9_i32_828 : i32
    %c3_i32_829 = arith.constant 3 : i32
    %1224 = arith.addi %1223, %c3_i32_829 : i32
    %c0_i32_830 = arith.constant 0 : i32
    %1225 = arith.addi %1224, %c0_i32_830 : i32
    %1226 = arith.index_cast %1225 : i32 to index
    %1227 = memref.load %arg3[%1226] : memref<432xf32, #tpu.memory_space<smem>>
    %1228 = vector.broadcast %1227 : f32 to vector<16x16xf32>
    %1229 = arith.mulf %1228, %1222 : vector<16x16xf32>
    %1230 = arith.addf %1220, %1229 : vector<16x16xf32>
    %c0_831 = arith.constant 0 : index
    %c12_832 = arith.constant 12 : index
    %c1_833 = arith.constant 1 : index
    %c1_834 = arith.constant 1 : index
    %1231 = vector.load %arg2[%c0_831, %c12_832, %c1_833, %c1_834] : memref<1x16x18x18xf32, #tpu.memory_space<vmem>>, vector<1x1x16x16xf32>
    %1232 = vector.shape_cast %1231 : vector<1x1x16x16xf32> to vector<16x16xf32>
    %c9_i32_835 = arith.constant 9 : i32
    %1233 = arith.muli %1189, %c9_i32_835 : i32
    %c3_i32_836 = arith.constant 3 : i32
    %1234 = arith.addi %1233, %c3_i32_836 : i32
    %c1_i32_837 = arith.constant 1 : i32
    %1235 = arith.addi %1234, %c1_i32_837 : i32
    %1236 = arith.index_cast %1235 : i32 to index
    %1237 = memref.load %arg3[%1236] : memref<432xf32, #tpu.memory_space<smem>>
    %1238 = vector.broadcast %1237 : f32 to vector<16x16xf32>
    %1239 = arith.mulf %1238, %1232 : vector<16x16xf32>
    %1240 = arith.addf %1230, %1239 : vector<16x16xf32>
    %c0_838 = arith.constant 0 : index
    %c12_839 = arith.constant 12 : index
    %c1_840 = arith.constant 1 : index
    %c2_841 = arith.constant 2 : index
    %1241 = vector.load %arg2[%c0_838, %c12_839, %c1_840, %c2_841] : memref<1x16x18x18xf32, #tpu.memory_space<vmem>>, vector<1x1x16x16xf32>
    %1242 = vector.shape_cast %1241 : vector<1x1x16x16xf32> to vector<16x16xf32>
    %c9_i32_842 = arith.constant 9 : i32
    %1243 = arith.muli %1189, %c9_i32_842 : i32
    %c3_i32_843 = arith.constant 3 : i32
    %1244 = arith.addi %1243, %c3_i32_843 : i32
    %c2_i32_844 = arith.constant 2 : i32
    %1245 = arith.addi %1244, %c2_i32_844 : i32
    %1246 = arith.index_cast %1245 : i32 to index
    %1247 = memref.load %arg3[%1246] : memref<432xf32, #tpu.memory_space<smem>>
    %1248 = vector.broadcast %1247 : f32 to vector<16x16xf32>
    %1249 = arith.mulf %1248, %1242 : vector<16x16xf32>
    %1250 = arith.addf %1240, %1249 : vector<16x16xf32>
    %c0_845 = arith.constant 0 : index
    %c12_846 = arith.constant 12 : index
    %c2_847 = arith.constant 2 : index
    %c0_848 = arith.constant 0 : index
    %1251 = vector.load %arg2[%c0_845, %c12_846, %c2_847, %c0_848] : memref<1x16x18x18xf32, #tpu.memory_space<vmem>>, vector<1x1x16x16xf32>
    %1252 = vector.shape_cast %1251 : vector<1x1x16x16xf32> to vector<16x16xf32>
    %c9_i32_849 = arith.constant 9 : i32
    %1253 = arith.muli %1189, %c9_i32_849 : i32
    %c6_i32_850 = arith.constant 6 : i32
    %1254 = arith.addi %1253, %c6_i32_850 : i32
    %c0_i32_851 = arith.constant 0 : i32
    %1255 = arith.addi %1254, %c0_i32_851 : i32
    %1256 = arith.index_cast %1255 : i32 to index
    %1257 = memref.load %arg3[%1256] : memref<432xf32, #tpu.memory_space<smem>>
    %1258 = vector.broadcast %1257 : f32 to vector<16x16xf32>
    %1259 = arith.mulf %1258, %1252 : vector<16x16xf32>
    %1260 = arith.addf %1250, %1259 : vector<16x16xf32>
    %c0_852 = arith.constant 0 : index
    %c12_853 = arith.constant 12 : index
    %c2_854 = arith.constant 2 : index
    %c1_855 = arith.constant 1 : index
    %1261 = vector.load %arg2[%c0_852, %c12_853, %c2_854, %c1_855] : memref<1x16x18x18xf32, #tpu.memory_space<vmem>>, vector<1x1x16x16xf32>
    %1262 = vector.shape_cast %1261 : vector<1x1x16x16xf32> to vector<16x16xf32>
    %c9_i32_856 = arith.constant 9 : i32
    %1263 = arith.muli %1189, %c9_i32_856 : i32
    %c6_i32_857 = arith.constant 6 : i32
    %1264 = arith.addi %1263, %c6_i32_857 : i32
    %c1_i32_858 = arith.constant 1 : i32
    %1265 = arith.addi %1264, %c1_i32_858 : i32
    %1266 = arith.index_cast %1265 : i32 to index
    %1267 = memref.load %arg3[%1266] : memref<432xf32, #tpu.memory_space<smem>>
    %1268 = vector.broadcast %1267 : f32 to vector<16x16xf32>
    %1269 = arith.mulf %1268, %1262 : vector<16x16xf32>
    %1270 = arith.addf %1260, %1269 : vector<16x16xf32>
    %c0_859 = arith.constant 0 : index
    %c12_860 = arith.constant 12 : index
    %c2_861 = arith.constant 2 : index
    %c2_862 = arith.constant 2 : index
    %1271 = vector.load %arg2[%c0_859, %c12_860, %c2_861, %c2_862] : memref<1x16x18x18xf32, #tpu.memory_space<vmem>>, vector<1x1x16x16xf32>
    %1272 = vector.shape_cast %1271 : vector<1x1x16x16xf32> to vector<16x16xf32>
    %c9_i32_863 = arith.constant 9 : i32
    %1273 = arith.muli %1189, %c9_i32_863 : i32
    %c6_i32_864 = arith.constant 6 : i32
    %1274 = arith.addi %1273, %c6_i32_864 : i32
    %c2_i32_865 = arith.constant 2 : i32
    %1275 = arith.addi %1274, %c2_i32_865 : i32
    %1276 = arith.index_cast %1275 : i32 to index
    %1277 = memref.load %arg3[%1276] : memref<432xf32, #tpu.memory_space<smem>>
    %1278 = vector.broadcast %1277 : f32 to vector<16x16xf32>
    %1279 = arith.mulf %1278, %1272 : vector<16x16xf32>
    %1280 = arith.addf %1270, %1279 : vector<16x16xf32>
    %1281 = arith.index_cast %1189 : i32 to index
    %1282 = memref.load %arg4[%1281] : memref<48xf32, #tpu.memory_space<smem>>
    %1283 = vector.broadcast %1282 : f32 to vector<16x16xf32>
    %1284 = arith.addf %1280, %1283 : vector<16x16xf32>
    %c0_866 = arith.constant 0 : index
    %c12_867 = arith.constant 12 : index
    %c0_868 = arith.constant 0 : index
    %c0_869 = arith.constant 0 : index
    %1285 = vector.load %arg5[%c0_866, %c12_867, %c0_868, %c0_869] : memref<1x16x16x16xf32, #tpu.memory_space<vmem>>, vector<1x1x16x16xf32>
    %1286 = vector.shape_cast %1285 : vector<1x1x16x16xf32> to vector<16x16xf32>
    %1287 = vector.shape_cast %1284 : vector<16x16xf32> to vector<1x1x16x16xf32>
    tpu.vector_store %arg5[%c0_866, %c12_867, %c0_868, %c0_869], %1287 {strides = array<i32>} : memref<1x16x16x16xf32, #tpu.memory_space<vmem>>, vector<1x1x16x16xf32>,
    %c13_i32 = arith.constant 13 : i32
    %1288 = arith.addi %0, %c13_i32 : i32
    %cst_870 = arith.constant 0.000000e+00 : f32
    %1289 = vector.broadcast %cst_870 : f32 to vector<16x16xf32>
    %c0_871 = arith.constant 0 : index
    %c13 = arith.constant 13 : index
    %c0_872 = arith.constant 0 : index
    %c0_873 = arith.constant 0 : index
    %1290 = vector.load %arg2[%c0_871, %c13, %c0_872, %c0_873] : memref<1x16x18x18xf32, #tpu.memory_space<vmem>>, vector<1x1x16x16xf32>
    %1291 = vector.shape_cast %1290 : vector<1x1x16x16xf32> to vector<16x16xf32>
    %c9_i32_874 = arith.constant 9 : i32
    %1292 = arith.muli %1288, %c9_i32_874 : i32
    %c0_i32_875 = arith.constant 0 : i32
    %1293 = arith.addi %1292, %c0_i32_875 : i32
    %c0_i32_876 = arith.constant 0 : i32
    %1294 = arith.addi %1293, %c0_i32_876 : i32
    %1295 = arith.index_cast %1294 : i32 to index
    %1296 = memref.load %arg3[%1295] : memref<432xf32, #tpu.memory_space<smem>>
    %1297 = vector.broadcast %1296 : f32 to vector<16x16xf32>
    %1298 = arith.mulf %1297, %1291 : vector<16x16xf32>
    %1299 = arith.addf %1289, %1298 : vector<16x16xf32>
    %c0_877 = arith.constant 0 : index
    %c13_878 = arith.constant 13 : index
    %c0_879 = arith.constant 0 : index
    %c1_880 = arith.constant 1 : index
    %1300 = vector.load %arg2[%c0_877, %c13_878, %c0_879, %c1_880] : memref<1x16x18x18xf32, #tpu.memory_space<vmem>>, vector<1x1x16x16xf32>
    %1301 = vector.shape_cast %1300 : vector<1x1x16x16xf32> to vector<16x16xf32>
    %c9_i32_881 = arith.constant 9 : i32
    %1302 = arith.muli %1288, %c9_i32_881 : i32
    %c0_i32_882 = arith.constant 0 : i32
    %1303 = arith.addi %1302, %c0_i32_882 : i32
    %c1_i32_883 = arith.constant 1 : i32
    %1304 = arith.addi %1303, %c1_i32_883 : i32
    %1305 = arith.index_cast %1304 : i32 to index
    %1306 = memref.load %arg3[%1305] : memref<432xf32, #tpu.memory_space<smem>>
    %1307 = vector.broadcast %1306 : f32 to vector<16x16xf32>
    %1308 = arith.mulf %1307, %1301 : vector<16x16xf32>
    %1309 = arith.addf %1299, %1308 : vector<16x16xf32>
    %c0_884 = arith.constant 0 : index
    %c13_885 = arith.constant 13 : index
    %c0_886 = arith.constant 0 : index
    %c2_887 = arith.constant 2 : index
    %1310 = vector.load %arg2[%c0_884, %c13_885, %c0_886, %c2_887] : memref<1x16x18x18xf32, #tpu.memory_space<vmem>>, vector<1x1x16x16xf32>
    %1311 = vector.shape_cast %1310 : vector<1x1x16x16xf32> to vector<16x16xf32>
    %c9_i32_888 = arith.constant 9 : i32
    %1312 = arith.muli %1288, %c9_i32_888 : i32
    %c0_i32_889 = arith.constant 0 : i32
    %1313 = arith.addi %1312, %c0_i32_889 : i32
    %c2_i32_890 = arith.constant 2 : i32
    %1314 = arith.addi %1313, %c2_i32_890 : i32
    %1315 = arith.index_cast %1314 : i32 to index
    %1316 = memref.load %arg3[%1315] : memref<432xf32, #tpu.memory_space<smem>>
    %1317 = vector.broadcast %1316 : f32 to vector<16x16xf32>
    %1318 = arith.mulf %1317, %1311 : vector<16x16xf32>
    %1319 = arith.addf %1309, %1318 : vector<16x16xf32>
    %c0_891 = arith.constant 0 : index
    %c13_892 = arith.constant 13 : index
    %c1_893 = arith.constant 1 : index
    %c0_894 = arith.constant 0 : index
    %1320 = vector.load %arg2[%c0_891, %c13_892, %c1_893, %c0_894] : memref<1x16x18x18xf32, #tpu.memory_space<vmem>>, vector<1x1x16x16xf32>
    %1321 = vector.shape_cast %1320 : vector<1x1x16x16xf32> to vector<16x16xf32>
    %c9_i32_895 = arith.constant 9 : i32
    %1322 = arith.muli %1288, %c9_i32_895 : i32
    %c3_i32_896 = arith.constant 3 : i32
    %1323 = arith.addi %1322, %c3_i32_896 : i32
    %c0_i32_897 = arith.constant 0 : i32
    %1324 = arith.addi %1323, %c0_i32_897 : i32
    %1325 = arith.index_cast %1324 : i32 to index
    %1326 = memref.load %arg3[%1325] : memref<432xf32, #tpu.memory_space<smem>>
    %1327 = vector.broadcast %1326 : f32 to vector<16x16xf32>
    %1328 = arith.mulf %1327, %1321 : vector<16x16xf32>
    %1329 = arith.addf %1319, %1328 : vector<16x16xf32>
    %c0_898 = arith.constant 0 : index
    %c13_899 = arith.constant 13 : index
    %c1_900 = arith.constant 1 : index
    %c1_901 = arith.constant 1 : index
    %1330 = vector.load %arg2[%c0_898, %c13_899, %c1_900, %c1_901] : memref<1x16x18x18xf32, #tpu.memory_space<vmem>>, vector<1x1x16x16xf32>
    %1331 = vector.shape_cast %1330 : vector<1x1x16x16xf32> to vector<16x16xf32>
    %c9_i32_902 = arith.constant 9 : i32
    %1332 = arith.muli %1288, %c9_i32_902 : i32
    %c3_i32_903 = arith.constant 3 : i32
    %1333 = arith.addi %1332, %c3_i32_903 : i32
    %c1_i32_904 = arith.constant 1 : i32
    %1334 = arith.addi %1333, %c1_i32_904 : i32
    %1335 = arith.index_cast %1334 : i32 to index
    %1336 = memref.load %arg3[%1335] : memref<432xf32, #tpu.memory_space<smem>>
    %1337 = vector.broadcast %1336 : f32 to vector<16x16xf32>
    %1338 = arith.mulf %1337, %1331 : vector<16x16xf32>
    %1339 = arith.addf %1329, %1338 : vector<16x16xf32>
    %c0_905 = arith.constant 0 : index
    %c13_906 = arith.constant 13 : index
    %c1_907 = arith.constant 1 : index
    %c2_908 = arith.constant 2 : index
    %1340 = vector.load %arg2[%c0_905, %c13_906, %c1_907, %c2_908] : memref<1x16x18x18xf32, #tpu.memory_space<vmem>>, vector<1x1x16x16xf32>
    %1341 = vector.shape_cast %1340 : vector<1x1x16x16xf32> to vector<16x16xf32>
    %c9_i32_909 = arith.constant 9 : i32
    %1342 = arith.muli %1288, %c9_i32_909 : i32
    %c3_i32_910 = arith.constant 3 : i32
    %1343 = arith.addi %1342, %c3_i32_910 : i32
    %c2_i32_911 = arith.constant 2 : i32
    %1344 = arith.addi %1343, %c2_i32_911 : i32
    %1345 = arith.index_cast %1344 : i32 to index
    %1346 = memref.load %arg3[%1345] : memref<432xf32, #tpu.memory_space<smem>>
    %1347 = vector.broadcast %1346 : f32 to vector<16x16xf32>
    %1348 = arith.mulf %1347, %1341 : vector<16x16xf32>
    %1349 = arith.addf %1339, %1348 : vector<16x16xf32>
    %c0_912 = arith.constant 0 : index
    %c13_913 = arith.constant 13 : index
    %c2_914 = arith.constant 2 : index
    %c0_915 = arith.constant 0 : index
    %1350 = vector.load %arg2[%c0_912, %c13_913, %c2_914, %c0_915] : memref<1x16x18x18xf32, #tpu.memory_space<vmem>>, vector<1x1x16x16xf32>
    %1351 = vector.shape_cast %1350 : vector<1x1x16x16xf32> to vector<16x16xf32>
    %c9_i32_916 = arith.constant 9 : i32
    %1352 = arith.muli %1288, %c9_i32_916 : i32
    %c6_i32_917 = arith.constant 6 : i32
    %1353 = arith.addi %1352, %c6_i32_917 : i32
    %c0_i32_918 = arith.constant 0 : i32
    %1354 = arith.addi %1353, %c0_i32_918 : i32
    %1355 = arith.index_cast %1354 : i32 to index
    %1356 = memref.load %arg3[%1355] : memref<432xf32, #tpu.memory_space<smem>>
    %1357 = vector.broadcast %1356 : f32 to vector<16x16xf32>
    %1358 = arith.mulf %1357, %1351 : vector<16x16xf32>
    %1359 = arith.addf %1349, %1358 : vector<16x16xf32>
    %c0_919 = arith.constant 0 : index
    %c13_920 = arith.constant 13 : index
    %c2_921 = arith.constant 2 : index
    %c1_922 = arith.constant 1 : index
    %1360 = vector.load %arg2[%c0_919, %c13_920, %c2_921, %c1_922] : memref<1x16x18x18xf32, #tpu.memory_space<vmem>>, vector<1x1x16x16xf32>
    %1361 = vector.shape_cast %1360 : vector<1x1x16x16xf32> to vector<16x16xf32>
    %c9_i32_923 = arith.constant 9 : i32
    %1362 = arith.muli %1288, %c9_i32_923 : i32
    %c6_i32_924 = arith.constant 6 : i32
    %1363 = arith.addi %1362, %c6_i32_924 : i32
    %c1_i32_925 = arith.constant 1 : i32
    %1364 = arith.addi %1363, %c1_i32_925 : i32
    %1365 = arith.index_cast %1364 : i32 to index
    %1366 = memref.load %arg3[%1365] : memref<432xf32, #tpu.memory_space<smem>>
    %1367 = vector.broadcast %1366 : f32 to vector<16x16xf32>
    %1368 = arith.mulf %1367, %1361 : vector<16x16xf32>
    %1369 = arith.addf %1359, %1368 : vector<16x16xf32>
    %c0_926 = arith.constant 0 : index
    %c13_927 = arith.constant 13 : index
    %c2_928 = arith.constant 2 : index
    %c2_929 = arith.constant 2 : index
    %1370 = vector.load %arg2[%c0_926, %c13_927, %c2_928, %c2_929] : memref<1x16x18x18xf32, #tpu.memory_space<vmem>>, vector<1x1x16x16xf32>
    %1371 = vector.shape_cast %1370 : vector<1x1x16x16xf32> to vector<16x16xf32>
    %c9_i32_930 = arith.constant 9 : i32
    %1372 = arith.muli %1288, %c9_i32_930 : i32
    %c6_i32_931 = arith.constant 6 : i32
    %1373 = arith.addi %1372, %c6_i32_931 : i32
    %c2_i32_932 = arith.constant 2 : i32
    %1374 = arith.addi %1373, %c2_i32_932 : i32
    %1375 = arith.index_cast %1374 : i32 to index
    %1376 = memref.load %arg3[%1375] : memref<432xf32, #tpu.memory_space<smem>>
    %1377 = vector.broadcast %1376 : f32 to vector<16x16xf32>
    %1378 = arith.mulf %1377, %1371 : vector<16x16xf32>
    %1379 = arith.addf %1369, %1378 : vector<16x16xf32>
    %1380 = arith.index_cast %1288 : i32 to index
    %1381 = memref.load %arg4[%1380] : memref<48xf32, #tpu.memory_space<smem>>
    %1382 = vector.broadcast %1381 : f32 to vector<16x16xf32>
    %1383 = arith.addf %1379, %1382 : vector<16x16xf32>
    %c0_933 = arith.constant 0 : index
    %c13_934 = arith.constant 13 : index
    %c0_935 = arith.constant 0 : index
    %c0_936 = arith.constant 0 : index
    %1384 = vector.load %arg5[%c0_933, %c13_934, %c0_935, %c0_936] : memref<1x16x16x16xf32, #tpu.memory_space<vmem>>, vector<1x1x16x16xf32>
    %1385 = vector.shape_cast %1384 : vector<1x1x16x16xf32> to vector<16x16xf32>
    %1386 = vector.shape_cast %1383 : vector<16x16xf32> to vector<1x1x16x16xf32>
    tpu.vector_store %arg5[%c0_933, %c13_934, %c0_935, %c0_936], %1386 {strides = array<i32>} : memref<1x16x16x16xf32, #tpu.memory_space<vmem>>, vector<1x1x16x16xf32>,
    %c14_i32 = arith.constant 14 : i32
    %1387 = arith.addi %0, %c14_i32 : i32
    %cst_937 = arith.constant 0.000000e+00 : f32
    %1388 = vector.broadcast %cst_937 : f32 to vector<16x16xf32>
    %c0_938 = arith.constant 0 : index
    %c14 = arith.constant 14 : index
    %c0_939 = arith.constant 0 : index
    %c0_940 = arith.constant 0 : index
    %1389 = vector.load %arg2[%c0_938, %c14, %c0_939, %c0_940] : memref<1x16x18x18xf32, #tpu.memory_space<vmem>>, vector<1x1x16x16xf32>
    %1390 = vector.shape_cast %1389 : vector<1x1x16x16xf32> to vector<16x16xf32>
    %c9_i32_941 = arith.constant 9 : i32
    %1391 = arith.muli %1387, %c9_i32_941 : i32
    %c0_i32_942 = arith.constant 0 : i32
    %1392 = arith.addi %1391, %c0_i32_942 : i32
    %c0_i32_943 = arith.constant 0 : i32
    %1393 = arith.addi %1392, %c0_i32_943 : i32
    %1394 = arith.index_cast %1393 : i32 to index
    %1395 = memref.load %arg3[%1394] : memref<432xf32, #tpu.memory_space<smem>>
    %1396 = vector.broadcast %1395 : f32 to vector<16x16xf32>
    %1397 = arith.mulf %1396, %1390 : vector<16x16xf32>
    %1398 = arith.addf %1388, %1397 : vector<16x16xf32>
    %c0_944 = arith.constant 0 : index
    %c14_945 = arith.constant 14 : index
    %c0_946 = arith.constant 0 : index
    %c1_947 = arith.constant 1 : index
    %1399 = vector.load %arg2[%c0_944, %c14_945, %c0_946, %c1_947] : memref<1x16x18x18xf32, #tpu.memory_space<vmem>>, vector<1x1x16x16xf32>
    %1400 = vector.shape_cast %1399 : vector<1x1x16x16xf32> to vector<16x16xf32>
    %c9_i32_948 = arith.constant 9 : i32
    %1401 = arith.muli %1387, %c9_i32_948 : i32
    %c0_i32_949 = arith.constant 0 : i32
    %1402 = arith.addi %1401, %c0_i32_949 : i32
    %c1_i32_950 = arith.constant 1 : i32
    %1403 = arith.addi %1402, %c1_i32_950 : i32
    %1404 = arith.index_cast %1403 : i32 to index
    %1405 = memref.load %arg3[%1404] : memref<432xf32, #tpu.memory_space<smem>>
    %1406 = vector.broadcast %1405 : f32 to vector<16x16xf32>
    %1407 = arith.mulf %1406, %1400 : vector<16x16xf32>
    %1408 = arith.addf %1398, %1407 : vector<16x16xf32>
    %c0_951 = arith.constant 0 : index
    %c14_952 = arith.constant 14 : index
    %c0_953 = arith.constant 0 : index
    %c2_954 = arith.constant 2 : index
    %1409 = vector.load %arg2[%c0_951, %c14_952, %c0_953, %c2_954] : memref<1x16x18x18xf32, #tpu.memory_space<vmem>>, vector<1x1x16x16xf32>
    %1410 = vector.shape_cast %1409 : vector<1x1x16x16xf32> to vector<16x16xf32>
    %c9_i32_955 = arith.constant 9 : i32
    %1411 = arith.muli %1387, %c9_i32_955 : i32
    %c0_i32_956 = arith.constant 0 : i32
    %1412 = arith.addi %1411, %c0_i32_956 : i32
    %c2_i32_957 = arith.constant 2 : i32
    %1413 = arith.addi %1412, %c2_i32_957 : i32
    %1414 = arith.index_cast %1413 : i32 to index
    %1415 = memref.load %arg3[%1414] : memref<432xf32, #tpu.memory_space<smem>>
    %1416 = vector.broadcast %1415 : f32 to vector<16x16xf32>
    %1417 = arith.mulf %1416, %1410 : vector<16x16xf32>
    %1418 = arith.addf %1408, %1417 : vector<16x16xf32>
    %c0_958 = arith.constant 0 : index
    %c14_959 = arith.constant 14 : index
    %c1_960 = arith.constant 1 : index
    %c0_961 = arith.constant 0 : index
    %1419 = vector.load %arg2[%c0_958, %c14_959, %c1_960, %c0_961] : memref<1x16x18x18xf32, #tpu.memory_space<vmem>>, vector<1x1x16x16xf32>
    %1420 = vector.shape_cast %1419 : vector<1x1x16x16xf32> to vector<16x16xf32>
    %c9_i32_962 = arith.constant 9 : i32
    %1421 = arith.muli %1387, %c9_i32_962 : i32
    %c3_i32_963 = arith.constant 3 : i32
    %1422 = arith.addi %1421, %c3_i32_963 : i32
    %c0_i32_964 = arith.constant 0 : i32
    %1423 = arith.addi %1422, %c0_i32_964 : i32
    %1424 = arith.index_cast %1423 : i32 to index
    %1425 = memref.load %arg3[%1424] : memref<432xf32, #tpu.memory_space<smem>>
    %1426 = vector.broadcast %1425 : f32 to vector<16x16xf32>
    %1427 = arith.mulf %1426, %1420 : vector<16x16xf32>
    %1428 = arith.addf %1418, %1427 : vector<16x16xf32>
    %c0_965 = arith.constant 0 : index
    %c14_966 = arith.constant 14 : index
    %c1_967 = arith.constant 1 : index
    %c1_968 = arith.constant 1 : index
    %1429 = vector.load %arg2[%c0_965, %c14_966, %c1_967, %c1_968] : memref<1x16x18x18xf32, #tpu.memory_space<vmem>>, vector<1x1x16x16xf32>
    %1430 = vector.shape_cast %1429 : vector<1x1x16x16xf32> to vector<16x16xf32>
    %c9_i32_969 = arith.constant 9 : i32
    %1431 = arith.muli %1387, %c9_i32_969 : i32
    %c3_i32_970 = arith.constant 3 : i32
    %1432 = arith.addi %1431, %c3_i32_970 : i32
    %c1_i32_971 = arith.constant 1 : i32
    %1433 = arith.addi %1432, %c1_i32_971 : i32
    %1434 = arith.index_cast %1433 : i32 to index
    %1435 = memref.load %arg3[%1434] : memref<432xf32, #tpu.memory_space<smem>>
    %1436 = vector.broadcast %1435 : f32 to vector<16x16xf32>
    %1437 = arith.mulf %1436, %1430 : vector<16x16xf32>
    %1438 = arith.addf %1428, %1437 : vector<16x16xf32>
    %c0_972 = arith.constant 0 : index
    %c14_973 = arith.constant 14 : index
    %c1_974 = arith.constant 1 : index
    %c2_975 = arith.constant 2 : index
    %1439 = vector.load %arg2[%c0_972, %c14_973, %c1_974, %c2_975] : memref<1x16x18x18xf32, #tpu.memory_space<vmem>>, vector<1x1x16x16xf32>
    %1440 = vector.shape_cast %1439 : vector<1x1x16x16xf32> to vector<16x16xf32>
    %c9_i32_976 = arith.constant 9 : i32
    %1441 = arith.muli %1387, %c9_i32_976 : i32
    %c3_i32_977 = arith.constant 3 : i32
    %1442 = arith.addi %1441, %c3_i32_977 : i32
    %c2_i32_978 = arith.constant 2 : i32
    %1443 = arith.addi %1442, %c2_i32_978 : i32
    %1444 = arith.index_cast %1443 : i32 to index
    %1445 = memref.load %arg3[%1444] : memref<432xf32, #tpu.memory_space<smem>>
    %1446 = vector.broadcast %1445 : f32 to vector<16x16xf32>
    %1447 = arith.mulf %1446, %1440 : vector<16x16xf32>
    %1448 = arith.addf %1438, %1447 : vector<16x16xf32>
    %c0_979 = arith.constant 0 : index
    %c14_980 = arith.constant 14 : index
    %c2_981 = arith.constant 2 : index
    %c0_982 = arith.constant 0 : index
    %1449 = vector.load %arg2[%c0_979, %c14_980, %c2_981, %c0_982] : memref<1x16x18x18xf32, #tpu.memory_space<vmem>>, vector<1x1x16x16xf32>
    %1450 = vector.shape_cast %1449 : vector<1x1x16x16xf32> to vector<16x16xf32>
    %c9_i32_983 = arith.constant 9 : i32
    %1451 = arith.muli %1387, %c9_i32_983 : i32
    %c6_i32_984 = arith.constant 6 : i32
    %1452 = arith.addi %1451, %c6_i32_984 : i32
    %c0_i32_985 = arith.constant 0 : i32
    %1453 = arith.addi %1452, %c0_i32_985 : i32
    %1454 = arith.index_cast %1453 : i32 to index
    %1455 = memref.load %arg3[%1454] : memref<432xf32, #tpu.memory_space<smem>>
    %1456 = vector.broadcast %1455 : f32 to vector<16x16xf32>
    %1457 = arith.mulf %1456, %1450 : vector<16x16xf32>
    %1458 = arith.addf %1448, %1457 : vector<16x16xf32>
    %c0_986 = arith.constant 0 : index
    %c14_987 = arith.constant 14 : index
    %c2_988 = arith.constant 2 : index
    %c1_989 = arith.constant 1 : index
    %1459 = vector.load %arg2[%c0_986, %c14_987, %c2_988, %c1_989] : memref<1x16x18x18xf32, #tpu.memory_space<vmem>>, vector<1x1x16x16xf32>
    %1460 = vector.shape_cast %1459 : vector<1x1x16x16xf32> to vector<16x16xf32>
    %c9_i32_990 = arith.constant 9 : i32
    %1461 = arith.muli %1387, %c9_i32_990 : i32
    %c6_i32_991 = arith.constant 6 : i32
    %1462 = arith.addi %1461, %c6_i32_991 : i32
    %c1_i32_992 = arith.constant 1 : i32
    %1463 = arith.addi %1462, %c1_i32_992 : i32
    %1464 = arith.index_cast %1463 : i32 to index
    %1465 = memref.load %arg3[%1464] : memref<432xf32, #tpu.memory_space<smem>>
    %1466 = vector.broadcast %1465 : f32 to vector<16x16xf32>
    %1467 = arith.mulf %1466, %1460 : vector<16x16xf32>
    %1468 = arith.addf %1458, %1467 : vector<16x16xf32>
    %c0_993 = arith.constant 0 : index
    %c14_994 = arith.constant 14 : index
    %c2_995 = arith.constant 2 : index
    %c2_996 = arith.constant 2 : index
    %1469 = vector.load %arg2[%c0_993, %c14_994, %c2_995, %c2_996] : memref<1x16x18x18xf32, #tpu.memory_space<vmem>>, vector<1x1x16x16xf32>
    %1470 = vector.shape_cast %1469 : vector<1x1x16x16xf32> to vector<16x16xf32>
    %c9_i32_997 = arith.constant 9 : i32
    %1471 = arith.muli %1387, %c9_i32_997 : i32
    %c6_i32_998 = arith.constant 6 : i32
    %1472 = arith.addi %1471, %c6_i32_998 : i32
    %c2_i32_999 = arith.constant 2 : i32
    %1473 = arith.addi %1472, %c2_i32_999 : i32
    %1474 = arith.index_cast %1473 : i32 to index
    %1475 = memref.load %arg3[%1474] : memref<432xf32, #tpu.memory_space<smem>>
    %1476 = vector.broadcast %1475 : f32 to vector<16x16xf32>
    %1477 = arith.mulf %1476, %1470 : vector<16x16xf32>
    %1478 = arith.addf %1468, %1477 : vector<16x16xf32>
    %1479 = arith.index_cast %1387 : i32 to index
    %1480 = memref.load %arg4[%1479] : memref<48xf32, #tpu.memory_space<smem>>
    %1481 = vector.broadcast %1480 : f32 to vector<16x16xf32>
    %1482 = arith.addf %1478, %1481 : vector<16x16xf32>
    %c0_1000 = arith.constant 0 : index
    %c14_1001 = arith.constant 14 : index
    %c0_1002 = arith.constant 0 : index
    %c0_1003 = arith.constant 0 : index
    %1483 = vector.load %arg5[%c0_1000, %c14_1001, %c0_1002, %c0_1003] : memref<1x16x16x16xf32, #tpu.memory_space<vmem>>, vector<1x1x16x16xf32>
    %1484 = vector.shape_cast %1483 : vector<1x1x16x16xf32> to vector<16x16xf32>
    %1485 = vector.shape_cast %1482 : vector<16x16xf32> to vector<1x1x16x16xf32>
    tpu.vector_store %arg5[%c0_1000, %c14_1001, %c0_1002, %c0_1003], %1485 {strides = array<i32>} : memref<1x16x16x16xf32, #tpu.memory_space<vmem>>, vector<1x1x16x16xf32>,
    %c15_i32 = arith.constant 15 : i32
    %1486 = arith.addi %0, %c15_i32 : i32
    %cst_1004 = arith.constant 0.000000e+00 : f32
    %1487 = vector.broadcast %cst_1004 : f32 to vector<16x16xf32>
    %c0_1005 = arith.constant 0 : index
    %c15 = arith.constant 15 : index
    %c0_1006 = arith.constant 0 : index
    %c0_1007 = arith.constant 0 : index
    %1488 = vector.load %arg2[%c0_1005, %c15, %c0_1006, %c0_1007] : memref<1x16x18x18xf32, #tpu.memory_space<vmem>>, vector<1x1x16x16xf32>
    %1489 = vector.shape_cast %1488 : vector<1x1x16x16xf32> to vector<16x16xf32>
    %c9_i32_1008 = arith.constant 9 : i32
    %1490 = arith.muli %1486, %c9_i32_1008 : i32
    %c0_i32_1009 = arith.constant 0 : i32
    %1491 = arith.addi %1490, %c0_i32_1009 : i32
    %c0_i32_1010 = arith.constant 0 : i32
    %1492 = arith.addi %1491, %c0_i32_1010 : i32
    %1493 = arith.index_cast %1492 : i32 to index
    %1494 = memref.load %arg3[%1493] : memref<432xf32, #tpu.memory_space<smem>>
    %1495 = vector.broadcast %1494 : f32 to vector<16x16xf32>
    %1496 = arith.mulf %1495, %1489 : vector<16x16xf32>
    %1497 = arith.addf %1487, %1496 : vector<16x16xf32>
    %c0_1011 = arith.constant 0 : index
    %c15_1012 = arith.constant 15 : index
    %c0_1013 = arith.constant 0 : index
    %c1_1014 = arith.constant 1 : index
    %1498 = vector.load %arg2[%c0_1011, %c15_1012, %c0_1013, %c1_1014] : memref<1x16x18x18xf32, #tpu.memory_space<vmem>>, vector<1x1x16x16xf32>
    %1499 = vector.shape_cast %1498 : vector<1x1x16x16xf32> to vector<16x16xf32>
    %c9_i32_1015 = arith.constant 9 : i32
    %1500 = arith.muli %1486, %c9_i32_1015 : i32
    %c0_i32_1016 = arith.constant 0 : i32
    %1501 = arith.addi %1500, %c0_i32_1016 : i32
    %c1_i32_1017 = arith.constant 1 : i32
    %1502 = arith.addi %1501, %c1_i32_1017 : i32
    %1503 = arith.index_cast %1502 : i32 to index
    %1504 = memref.load %arg3[%1503] : memref<432xf32, #tpu.memory_space<smem>>
    %1505 = vector.broadcast %1504 : f32 to vector<16x16xf32>
    %1506 = arith.mulf %1505, %1499 : vector<16x16xf32>
    %1507 = arith.addf %1497, %1506 : vector<16x16xf32>
    %c0_1018 = arith.constant 0 : index
    %c15_1019 = arith.constant 15 : index
    %c0_1020 = arith.constant 0 : index
    %c2_1021 = arith.constant 2 : index
    %1508 = vector.load %arg2[%c0_1018, %c15_1019, %c0_1020, %c2_1021] : memref<1x16x18x18xf32, #tpu.memory_space<vmem>>, vector<1x1x16x16xf32>
    %1509 = vector.shape_cast %1508 : vector<1x1x16x16xf32> to vector<16x16xf32>
    %c9_i32_1022 = arith.constant 9 : i32
    %1510 = arith.muli %1486, %c9_i32_1022 : i32
    %c0_i32_1023 = arith.constant 0 : i32
    %1511 = arith.addi %1510, %c0_i32_1023 : i32
    %c2_i32_1024 = arith.constant 2 : i32
    %1512 = arith.addi %1511, %c2_i32_1024 : i32
    %1513 = arith.index_cast %1512 : i32 to index
    %1514 = memref.load %arg3[%1513] : memref<432xf32, #tpu.memory_space<smem>>
    %1515 = vector.broadcast %1514 : f32 to vector<16x16xf32>
    %1516 = arith.mulf %1515, %1509 : vector<16x16xf32>
    %1517 = arith.addf %1507, %1516 : vector<16x16xf32>
    %c0_1025 = arith.constant 0 : index
    %c15_1026 = arith.constant 15 : index
    %c1_1027 = arith.constant 1 : index
    %c0_1028 = arith.constant 0 : index
    %1518 = vector.load %arg2[%c0_1025, %c15_1026, %c1_1027, %c0_1028] : memref<1x16x18x18xf32, #tpu.memory_space<vmem>>, vector<1x1x16x16xf32>
    %1519 = vector.shape_cast %1518 : vector<1x1x16x16xf32> to vector<16x16xf32>
    %c9_i32_1029 = arith.constant 9 : i32
    %1520 = arith.muli %1486, %c9_i32_1029 : i32
    %c3_i32_1030 = arith.constant 3 : i32
    %1521 = arith.addi %1520, %c3_i32_1030 : i32
    %c0_i32_1031 = arith.constant 0 : i32
    %1522 = arith.addi %1521, %c0_i32_1031 : i32
    %1523 = arith.index_cast %1522 : i32 to index
    %1524 = memref.load %arg3[%1523] : memref<432xf32, #tpu.memory_space<smem>>
    %1525 = vector.broadcast %1524 : f32 to vector<16x16xf32>
    %1526 = arith.mulf %1525, %1519 : vector<16x16xf32>
    %1527 = arith.addf %1517, %1526 : vector<16x16xf32>
    %c0_1032 = arith.constant 0 : index
    %c15_1033 = arith.constant 15 : index
    %c1_1034 = arith.constant 1 : index
    %c1_1035 = arith.constant 1 : index
    %1528 = vector.load %arg2[%c0_1032, %c15_1033, %c1_1034, %c1_1035] : memref<1x16x18x18xf32, #tpu.memory_space<vmem>>, vector<1x1x16x16xf32>
    %1529 = vector.shape_cast %1528 : vector<1x1x16x16xf32> to vector<16x16xf32>
    %c9_i32_1036 = arith.constant 9 : i32
    %1530 = arith.muli %1486, %c9_i32_1036 : i32
    %c3_i32_1037 = arith.constant 3 : i32
    %1531 = arith.addi %1530, %c3_i32_1037 : i32
    %c1_i32_1038 = arith.constant 1 : i32
    %1532 = arith.addi %1531, %c1_i32_1038 : i32
    %1533 = arith.index_cast %1532 : i32 to index
    %1534 = memref.load %arg3[%1533] : memref<432xf32, #tpu.memory_space<smem>>
    %1535 = vector.broadcast %1534 : f32 to vector<16x16xf32>
    %1536 = arith.mulf %1535, %1529 : vector<16x16xf32>
    %1537 = arith.addf %1527, %1536 : vector<16x16xf32>
    %c0_1039 = arith.constant 0 : index
    %c15_1040 = arith.constant 15 : index
    %c1_1041 = arith.constant 1 : index
    %c2_1042 = arith.constant 2 : index
    %1538 = vector.load %arg2[%c0_1039, %c15_1040, %c1_1041, %c2_1042] : memref<1x16x18x18xf32, #tpu.memory_space<vmem>>, vector<1x1x16x16xf32>
    %1539 = vector.shape_cast %1538 : vector<1x1x16x16xf32> to vector<16x16xf32>
    %c9_i32_1043 = arith.constant 9 : i32
    %1540 = arith.muli %1486, %c9_i32_1043 : i32
    %c3_i32_1044 = arith.constant 3 : i32
    %1541 = arith.addi %1540, %c3_i32_1044 : i32
    %c2_i32_1045 = arith.constant 2 : i32
    %1542 = arith.addi %1541, %c2_i32_1045 : i32
    %1543 = arith.index_cast %1542 : i32 to index
    %1544 = memref.load %arg3[%1543] : memref<432xf32, #tpu.memory_space<smem>>
    %1545 = vector.broadcast %1544 : f32 to vector<16x16xf32>
    %1546 = arith.mulf %1545, %1539 : vector<16x16xf32>
    %1547 = arith.addf %1537, %1546 : vector<16x16xf32>
    %c0_1046 = arith.constant 0 : index
    %c15_1047 = arith.constant 15 : index
    %c2_1048 = arith.constant 2 : index
    %c0_1049 = arith.constant 0 : index
    %1548 = vector.load %arg2[%c0_1046, %c15_1047, %c2_1048, %c0_1049] : memref<1x16x18x18xf32, #tpu.memory_space<vmem>>, vector<1x1x16x16xf32>
    %1549 = vector.shape_cast %1548 : vector<1x1x16x16xf32> to vector<16x16xf32>
    %c9_i32_1050 = arith.constant 9 : i32
    %1550 = arith.muli %1486, %c9_i32_1050 : i32
    %c6_i32_1051 = arith.constant 6 : i32
    %1551 = arith.addi %1550, %c6_i32_1051 : i32
    %c0_i32_1052 = arith.constant 0 : i32
    %1552 = arith.addi %1551, %c0_i32_1052 : i32
    %1553 = arith.index_cast %1552 : i32 to index
    %1554 = memref.load %arg3[%1553] : memref<432xf32, #tpu.memory_space<smem>>
    %1555 = vector.broadcast %1554 : f32 to vector<16x16xf32>
    %1556 = arith.mulf %1555, %1549 : vector<16x16xf32>
    %1557 = arith.addf %1547, %1556 : vector<16x16xf32>
    %c0_1053 = arith.constant 0 : index
    %c15_1054 = arith.constant 15 : index
    %c2_1055 = arith.constant 2 : index
    %c1_1056 = arith.constant 1 : index
    %1558 = vector.load %arg2[%c0_1053, %c15_1054, %c2_1055, %c1_1056] : memref<1x16x18x18xf32, #tpu.memory_space<vmem>>, vector<1x1x16x16xf32>
    %1559 = vector.shape_cast %1558 : vector<1x1x16x16xf32> to vector<16x16xf32>
    %c9_i32_1057 = arith.constant 9 : i32
    %1560 = arith.muli %1486, %c9_i32_1057 : i32
    %c6_i32_1058 = arith.constant 6 : i32
    %1561 = arith.addi %1560, %c6_i32_1058 : i32
    %c1_i32_1059 = arith.constant 1 : i32
    %1562 = arith.addi %1561, %c1_i32_1059 : i32
    %1563 = arith.index_cast %1562 : i32 to index
    %1564 = memref.load %arg3[%1563] : memref<432xf32, #tpu.memory_space<smem>>
    %1565 = vector.broadcast %1564 : f32 to vector<16x16xf32>
    %1566 = arith.mulf %1565, %1559 : vector<16x16xf32>
    %1567 = arith.addf %1557, %1566 : vector<16x16xf32>
    %c0_1060 = arith.constant 0 : index
    %c15_1061 = arith.constant 15 : index
    %c2_1062 = arith.constant 2 : index
    %c2_1063 = arith.constant 2 : index
    %1568 = vector.load %arg2[%c0_1060, %c15_1061, %c2_1062, %c2_1063] : memref<1x16x18x18xf32, #tpu.memory_space<vmem>>, vector<1x1x16x16xf32>
    %1569 = vector.shape_cast %1568 : vector<1x1x16x16xf32> to vector<16x16xf32>
    %c9_i32_1064 = arith.constant 9 : i32
    %1570 = arith.muli %1486, %c9_i32_1064 : i32
    %c6_i32_1065 = arith.constant 6 : i32
    %1571 = arith.addi %1570, %c6_i32_1065 : i32
    %c2_i32_1066 = arith.constant 2 : i32
    %1572 = arith.addi %1571, %c2_i32_1066 : i32
    %1573 = arith.index_cast %1572 : i32 to index
    %1574 = memref.load %arg3[%1573] : memref<432xf32, #tpu.memory_space<smem>>
    %1575 = vector.broadcast %1574 : f32 to vector<16x16xf32>
    %1576 = arith.mulf %1575, %1569 : vector<16x16xf32>
    %1577 = arith.addf %1567, %1576 : vector<16x16xf32>
    %1578 = arith.index_cast %1486 : i32 to index
    %1579 = memref.load %arg4[%1578] : memref<48xf32, #tpu.memory_space<smem>>
    %1580 = vector.broadcast %1579 : f32 to vector<16x16xf32>
    %1581 = arith.addf %1577, %1580 : vector<16x16xf32>
    %c0_1067 = arith.constant 0 : index
    %c15_1068 = arith.constant 15 : index
    %c0_1069 = arith.constant 0 : index
    %c0_1070 = arith.constant 0 : index
    %1582 = vector.load %arg5[%c0_1067, %c15_1068, %c0_1069, %c0_1070] : memref<1x16x16x16xf32, #tpu.memory_space<vmem>>, vector<1x1x16x16xf32>
    %1583 = vector.shape_cast %1582 : vector<1x1x16x16xf32> to vector<16x16xf32>
    %1584 = vector.shape_cast %1581 : vector<16x16xf32> to vector<1x1x16x16xf32>
    tpu.vector_store %arg5[%c0_1067, %c15_1068, %c0_1069, %c0_1070], %1584 {strides = array<i32>} : memref<1x16x16x16xf32, #tpu.memory_space<vmem>>, vector<1x1x16x16xf32>,
    return
  }
  func.func @transform_0(%arg0: i32, %arg1: i32) -> (i32, i32, i32, i32) {
    %c0_i32 = arith.constant 0 : i32
    %c0_i32_0 = arith.constant 0 : i32
    %c0_i32_1 = arith.constant 0 : i32
    return %arg0, %arg1, %c0_i32, %c0_i32_0 : i32, i32, i32, i32
  }
  func.func @transform_1(%arg0: i32, %arg1: i32) -> i32 {
    %c0_i32 = arith.constant 0 : i32
    %c0_i32_0 = arith.constant 0 : i32
    return %c0_i32 : i32
  }
  func.func @transform_2(%arg0: i32, %arg1: i32) -> i32 {
    %c0_i32 = arith.constant 0 : i32
    %c0_i32_0 = arith.constant 0 : i32
    return %c0_i32 : i32
  }
  func.func @transform_3(%arg0: i32, %arg1: i32) -> (i32, i32, i32, i32) {
    %c0_i32 = arith.constant 0 : i32
    %c0_i32_0 = arith.constant 0 : i32
    %c0_i32_1 = arith.constant 0 : i32
    return %arg0, %arg1, %c0_i32, %c0_i32_0 : i32, i32, i32, i32
  }
}

module attributes {stable_mosaic.version = 11 : i64} {
  func.func @_channel_attn_kernel(%arg0: i32, %arg1: i32, %arg2: memref<1x8x256xf32, #tpu.memory_space<vmem>>, %arg3: memref<1x8x256xf32, #tpu.memory_space<vmem>>, %arg4: memref<1x8x256xf32, #tpu.memory_space<vmem>>, %arg5: memref<1x8x256xf32, #tpu.memory_space<vmem>>) attributes {dimension_semantics = [#tpu.dimension_semantics<parallel>, #tpu.dimension_semantics<parallel>], iteration_bounds = array<i64: 2, 2>, scalar_prefetch = 0 : i64, scratch_operands = 0 : i64, tpu.core_type = #tpu.core_type<tc>, window_params = [{transform_indices = @transform_0, window_bounds = array<i64: 1, 8, 256>}, {transform_indices = @transform_1, window_bounds = array<i64: 1, 8, 256>}, {transform_indices = @transform_2, window_bounds = array<i64: 1, 8, 256>}, {transform_indices = @transform_3, window_bounds = array<i64: 1, 8, 256>}]} {
    %c0 = arith.constant 0 : index
    %c0_0 = arith.constant 0 : index
    %c0_1 = arith.constant 0 : index
    %0 = vector.load %arg2[%c0, %c0_0, %c0_1] : memref<1x8x256xf32, #tpu.memory_space<vmem>>, vector<1x8x256xf32>
    %1 = vector.shape_cast %0 : vector<1x8x256xf32> to vector<8x256xf32>
    %c0_2 = arith.constant 0 : index
    %c0_3 = arith.constant 0 : index
    %c0_4 = arith.constant 0 : index
    %2 = vector.load %arg3[%c0_2, %c0_3, %c0_4] : memref<1x8x256xf32, #tpu.memory_space<vmem>>, vector<1x8x256xf32>
    %3 = vector.shape_cast %2 : vector<1x8x256xf32> to vector<8x256xf32>
    %c0_5 = arith.constant 0 : index
    %c0_6 = arith.constant 0 : index
    %c0_7 = arith.constant 0 : index
    %4 = vector.load %arg4[%c0_5, %c0_6, %c0_7] : memref<1x8x256xf32, #tpu.memory_space<vmem>>, vector<1x8x256xf32>
    %5 = vector.shape_cast %4 : vector<1x8x256xf32> to vector<8x256xf32>
    %6 = arith.mulf %1, %1 : vector<8x256xf32>
    %cst = arith.constant dense<0.000000e+00> : vector<8xf32>
    %7 = vector.multi_reduction <add>, %6, %cst [1] : vector<8x256xf32> to vector<8xf32>
    %8 = vector.shape_cast %7 : vector<8xf32> to vector<8x1xf32>
    %9 = math.sqrt %8 : vector<8x1xf32>
    %cst_8 = arith.constant 9.99999996E-13 : f32
    %10 = vector.broadcast %cst_8 : f32 to vector<8x1xf32>
    %11 = arith.maximumf %9, %10 : vector<8x1xf32>
    %cst_9 = arith.constant 1.000000e+00 : f32
    %12 = vector.broadcast %cst_9 : f32 to vector<8x1xf32>
    %13 = arith.divf %12, %11 : vector<8x1xf32>
    %14 = arith.mulf %3, %3 : vector<8x256xf32>
    %cst_10 = arith.constant dense<0.000000e+00> : vector<8xf32>
    %15 = vector.multi_reduction <add>, %14, %cst_10 [1] : vector<8x256xf32> to vector<8xf32>
    %16 = vector.shape_cast %15 : vector<8xf32> to vector<8x1xf32>
    %17 = math.sqrt %16 : vector<8x1xf32>
    %cst_11 = arith.constant 9.99999996E-13 : f32
    %18 = vector.broadcast %cst_11 : f32 to vector<8x1xf32>
    %19 = arith.maximumf %17, %18 : vector<8x1xf32>
    %cst_12 = arith.constant 1.000000e+00 : f32
    %20 = vector.broadcast %cst_12 : f32 to vector<8x1xf32>
    %21 = arith.divf %20, %19 : vector<8x1xf32>
    %22 = vector.broadcast %21 : vector<8x1xf32> to vector<8x256xf32>
    %23 = arith.mulf %3, %22 : vector<8x256xf32>
    %cst_13 = arith.constant dense<0.000000e+00> : vector<8x8xf32>
    %24 = tpu.matmul %1, %23, %cst_13 {dimension_numbers = #tpu.dot_dimension_numbers<[1], [1], [0], [0], [0, 0, 1, 0], [], []>} : vector<8x256xf32>, vector<8x256xf32>, vector<8x8xf32> -> vector<8x8xf32>
    %25 = vector.broadcast %13 : vector<8x1xf32> to vector<8x8xf32>
    %26 = arith.mulf %24, %25 : vector<8x8xf32>
    %cst_14 = arith.constant dense<0xFF800000> : vector<8xf32>
    %27 = vector.multi_reduction <maximumf>, %26, %cst_14 [1] : vector<8x8xf32> to vector<8xf32>
    %28 = vector.shape_cast %27 : vector<8xf32> to vector<8x1xf32>
    %29 = vector.broadcast %28 : vector<8x1xf32> to vector<8x8xf32>
    %30 = arith.subf %26, %29 : vector<8x8xf32>
    %31 = math.exp %30 : vector<8x8xf32>
    %cst_15 = arith.constant dense<0.000000e+00> : vector<8xf32>
    %32 = vector.multi_reduction <add>, %31, %cst_15 [1] : vector<8x8xf32> to vector<8xf32>
    %33 = vector.shape_cast %32 : vector<8xf32> to vector<8x1xf32>
    %34 = tpu.reciprocal %33 {approx = true} : vector<8x1xf32> -> vector<8x1xf32>
    %35 = vector.broadcast %34 : vector<8x1xf32> to vector<8x8xf32>
    %36 = arith.mulf %31, %35 : vector<8x8xf32>
    %cst_16 = arith.constant dense<0.000000e+00> : vector<8x256xf32>
    %37 = tpu.matmul %36, %5, %cst_16 {dimension_numbers = #tpu.dot_dimension_numbers<[1], [0], [0], [1], [0, 0, 1, 1], [], []>} : vector<8x8xf32>, vector<8x256xf32>, vector<8x256xf32> -> vector<8x256xf32>
    %c0_17 = arith.constant 0 : index
    %c0_18 = arith.constant 0 : index
    %c0_19 = arith.constant 0 : index
    %38 = vector.load %arg5[%c0_17, %c0_18, %c0_19] : memref<1x8x256xf32, #tpu.memory_space<vmem>>, vector<1x8x256xf32>
    %39 = vector.shape_cast %38 : vector<1x8x256xf32> to vector<8x256xf32>
    %40 = vector.shape_cast %37 : vector<8x256xf32> to vector<1x8x256xf32>
    tpu.vector_store %arg5[%c0_17, %c0_18, %c0_19], %40 {strides = array<i32>} : memref<1x8x256xf32, #tpu.memory_space<vmem>>, vector<1x8x256xf32>,
    return
  }
  func.func @transform_0(%arg0: i32, %arg1: i32) -> (i32, i32, i32) {
    %c0_i32 = arith.constant 0 : i32
    %c0_i32_0 = arith.constant 0 : i32
    return %arg0, %arg1, %c0_i32 : i32, i32, i32
  }
  func.func @transform_1(%arg0: i32, %arg1: i32) -> (i32, i32, i32) {
    %c2_i32 = arith.constant 2 : i32
    %0 = arith.addi %c2_i32, %arg1 : i32
    %c0_i32 = arith.constant 0 : i32
    %c0_i32_0 = arith.constant 0 : i32
    return %arg0, %0, %c0_i32 : i32, i32, i32
  }
  func.func @transform_2(%arg0: i32, %arg1: i32) -> (i32, i32, i32) {
    %c4_i32 = arith.constant 4 : i32
    %0 = arith.addi %c4_i32, %arg1 : i32
    %c0_i32 = arith.constant 0 : i32
    %c0_i32_0 = arith.constant 0 : i32
    return %arg0, %0, %c0_i32 : i32, i32, i32
  }
  func.func @transform_3(%arg0: i32, %arg1: i32) -> (i32, i32, i32) {
    %c0_i32 = arith.constant 0 : i32
    %c0_i32_0 = arith.constant 0 : i32
    return %arg0, %arg1, %c0_i32 : i32, i32, i32
  }
}

module attributes {stable_mosaic.version = 11 : i64} {
  func.func @_conv1x1_kernel(%arg0: i32, %arg1: i32, %arg2: memref<1x16x256xf32, #tpu.memory_space<vmem>>, %arg3: memref<16x16xf32, #tpu.memory_space<vmem>>, %arg4: memref<16x1xf32, #tpu.memory_space<vmem>>, %arg5: memref<1x16x256xf32, #tpu.memory_space<vmem>>) attributes {dimension_semantics = [#tpu.dimension_semantics<parallel>, #tpu.dimension_semantics<parallel>], iteration_bounds = array<i64: 2, 1>, scalar_prefetch = 0 : i64, scratch_operands = 0 : i64, tpu.core_type = #tpu.core_type<tc>, window_params = [{transform_indices = @transform_0, window_bounds = array<i64: 1, 16, 256>}, {pipeline_mode = #tpu.pipeline_mode<synchronous>, transform_indices = @transform_1, window_bounds = array<i64: 16, 16>}, {pipeline_mode = #tpu.pipeline_mode<synchronous>, transform_indices = @transform_2, window_bounds = array<i64: 16, 1>}, {transform_indices = @transform_3, window_bounds = array<i64: 1, 16, 256>}]} {
    %c0 = arith.constant 0 : index
    %c0_0 = arith.constant 0 : index
    %0 = vector.load %arg3[%c0, %c0_0] : memref<16x16xf32, #tpu.memory_space<vmem>>, vector<16x16xf32>
    %c0_1 = arith.constant 0 : index
    %c0_2 = arith.constant 0 : index
    %c0_3 = arith.constant 0 : index
    %1 = vector.load %arg2[%c0_1, %c0_2, %c0_3] : memref<1x16x256xf32, #tpu.memory_space<vmem>>, vector<1x16x256xf32>
    %2 = vector.shape_cast %1 : vector<1x16x256xf32> to vector<16x256xf32>
    %cst = arith.constant dense<0.000000e+00> : vector<16x256xf32>
    %3 = tpu.matmul %0, %2, %cst {dimension_numbers = #tpu.dot_dimension_numbers<[1], [0], [0], [1], [0, 0, 1, 1], [], []>} : vector<16x16xf32>, vector<16x256xf32>, vector<16x256xf32> -> vector<16x256xf32>
    %c0_4 = arith.constant 0 : index
    %c0_5 = arith.constant 0 : index
    %4 = vector.load %arg4[%c0_4, %c0_5] : memref<16x1xf32, #tpu.memory_space<vmem>>, vector<16x1xf32>
    %5 = vector.broadcast %4 : vector<16x1xf32> to vector<16x256xf32>
    %6 = arith.addf %3, %5 : vector<16x256xf32>
    %c0_6 = arith.constant 0 : index
    %c0_7 = arith.constant 0 : index
    %c0_8 = arith.constant 0 : index
    %7 = vector.load %arg5[%c0_6, %c0_7, %c0_8] : memref<1x16x256xf32, #tpu.memory_space<vmem>>, vector<1x16x256xf32>
    %8 = vector.shape_cast %7 : vector<1x16x256xf32> to vector<16x256xf32>
    %9 = vector.shape_cast %6 : vector<16x256xf32> to vector<1x16x256xf32>
    tpu.vector_store %arg5[%c0_6, %c0_7, %c0_8], %9 {strides = array<i32>} : memref<1x16x256xf32, #tpu.memory_space<vmem>>, vector<1x16x256xf32>,
    return
  }
  func.func @transform_0(%arg0: i32, %arg1: i32) -> (i32, i32, i32) {
    %c0_i32 = arith.constant 0 : i32
    %c0_i32_0 = arith.constant 0 : i32
    return %arg0, %c0_i32, %arg1 : i32, i32, i32
  }
  func.func @transform_1(%arg0: i32, %arg1: i32) -> (i32, i32) {
    %c0_i32 = arith.constant 0 : i32
    %c0_i32_0 = arith.constant 0 : i32
    %c0_i32_1 = arith.constant 0 : i32
    return %c0_i32, %c0_i32_0 : i32, i32
  }
  func.func @transform_2(%arg0: i32, %arg1: i32) -> (i32, i32) {
    %c0_i32 = arith.constant 0 : i32
    %c0_i32_0 = arith.constant 0 : i32
    %c0_i32_1 = arith.constant 0 : i32
    return %c0_i32, %c0_i32_0 : i32, i32
  }
  func.func @transform_3(%arg0: i32, %arg1: i32) -> (i32, i32, i32) {
    %c0_i32 = arith.constant 0 : i32
    %c0_i32_0 = arith.constant 0 : i32
    return %arg0, %c0_i32, %arg1 : i32, i32, i32
  }
}

</mosaic_0001>

<bundles_post_ra>
// kernel: self_attention_forward.4
= control target key start
LH: loop header
LB: loop body
LE: loop exit
PB: predicated region body
PF: predicated region fallthrough
CT: control target
= control target key end

     0   :  { %s545_s12 = smov 0   ;;  %s547_s13 = smov 0   ;;  %s644_s0 = inlined_call_operand.vmem [shape: f32[2,16,256], index: 0, kind: input, shape index: {}]   ;;  %s645_s1 = inlined_call_operand.vmem [shape: f32[48,16], index: 1, kind: input, shape index: {}]   ;;  %s646_s2 = inlined_call_operand.vmem [shape: f32[48,1], index: 2, kind: input, shape index: {}]   ;;  %s647_s3 = inlined_call_operand.vmem [shape: f32[2,48,256], index: 3, kind: output, shape index: {}]  }
   0x1   :  { %s549_s14 = smov 0  }
   0x2 LB: > { %s25_s15 = sadd.s32 1, %s518_s13  ;;  %p448_p0 = scmp.ge.s32.totalorder %s522_s14, 1  ;;  %s522_s14 = sphi %s549_s14, %s13_s14   ;;  %s518_s13 = sphi %s547_s13, %s649_s13   ;;  %s514_s12 = sphi %s545_s12, %s648_s12  }
   0x3   : > { %p27_p1 = scmp.ge.s32.totalorder %s25_s15, 2  ;;  %p158_p2 = scmp.lt.s32.totalorder %s522_s14, 3 }
   0x5   : > { %s651_s15 = smov (%p27_p1, %s25_s15), 0  ;;  %p159_p3 = pnand %p448_p0, %p158_p2 }
   0x6   : > { %p191_p4 = scmp.lt.s32.totalorder (!%p159_p3), %s514_s12, 1 }
   0x7   : > { %162 = sbr.rel (%p159_p3) target bundleno = 172 (0xac), region = 32 }
   0xc   : > { %v524_v0 = vmov 0   ;;  %v222_v1 = vld [vmem:[%s646_s2 + $0x10] sm:$0xff]  ;;  %s653_s12 = smov (!%p191_p4, %s514_s12), 1  ;;  %v220_v2 = vld [vmem:[%s646_s2] sm:$0xff]  ;;  %vm256_vm0 = vcmask 130048   ;;  %v213_v9 = vld [vmem:[%s645_s1 + $0x18] sm:$0xff] }
   0xd   : > { %498 = vset.pattern.permute.xlu1 %v524_v0  ;;  %497 = vset.pattern.permute.xlu0 %v524_v0  ;;  %v224_v3 = vld [vmem:[%s646_s2 + $0x20] sm:$0xff]  ;;  %s466_s22 = sshll.u32 %s653_s12, 5  ;;  %v223_v10 = vld [vmem:[%s646_s2 + $0x18] sm:$0xff]  ;;  %v221_v11 = vld [vmem:[%s646_s2 + $0x8] sm:$0xff]  ;;  %s471_s21 = smul.u32 96, %s653_s12 }
   0xe   : > { %238 = vperm.xlu1 %498, %v222_v1   ;;  %499 = vset.pattern.permute.xlu2 %v524_v0  ;;  %s198_s25 = scalar_lea.vmem %s644_s0, %s466_s22  ;;  %v210_v8 = vld [vmem:[%s645_s1] sm:$0xff]  ;;  %v225_v12 = vld [vmem:[%s646_s2 + $0x28] sm:$0xff]  ;;  %v212_v15 = vld [vmem:[%s645_s1 + $0x10] sm:$0xff] }
   0xf   : > { %228 = vperm.xlu0 %497, %v220_v2   ;;  %248 = vperm.xlu2 %499, %v224_v3   ;;  %v218_v4 = vld [vmem:[%s198_s25 + $0x10] sm:$0xff]  ;;  %v219_v5 = vld [vmem:[%s198_s25 + $0x18] sm:$0xff]  ;;  %v216_v6 = vld [vmem:[%s198_s25] sm:$0xff]  ;;  %s621_s24 = scalar_lea.vmem %s647_s3, %s471_s21 }
  0x10   : > { %289 = vmatpush.msra.mxu0 %v218_v4  ;;  %467 = vmatpush.msra.mxu2 %v218_v4  ;;  %v217_v7 = vld [vmem:[%s198_s25 + $0x8] sm:$0xff]  ;;  %v214_v14 = vld [vmem:[%s645_s1 + $0x20] sm:$0xff] }
  0x11   : > { %324 = vmatpush.msra.mxu1 %v219_v5  ;;  %469 = vmatpush.msra.mxu3 %v219_v5  ;;  %v211_v13 = vld [vmem:[%s645_s1 + $0x8] sm:$0xff] }
  0x12   : > { %290 = vmatpush.msra.mxu0 %v216_v6  ;;  %468 = vmatpush.msra.mxu2 %v216_v6  ;;  %v215_v16 = vld [vmem:[%s645_s1 + $0x28] sm:$0xff] }
  0x13   : > { %325 = vmatpush.msra.mxu1 %v217_v7  ;;  %470 = vmatpush.msra.mxu3 %v217_v7 }
  0x14   : > { %452 = vmatmul.msk.f32.vlgmr.msra.gmra.mxu0 %vm256_vm0, %v210_v8  ;;  %455 = vmatmul.msk.f32.vlgmr.msra.gmra.mxu2 %vm256_vm0, %v213_v9 }
  0x15   : > { %458 = vmatmul.msk.f32.vlgmr.msra.gmra.mxu1 %vm256_vm0, %v210_v8  ;;  %461 = vmatmul.msk.f32.vlgmr.msra.gmra.mxu3 %vm256_vm0, %v213_v9 }
  0x16   : > { %243 = vperm.xlu1 %498, %v223_v10  }
  0x17   : > { %233 = vperm.xlu0 %497, %v221_v11   ;;  %253 = vperm.xlu2 %499, %v225_v12  }
  0x1c   : > { %453 = vmatmul.msk.f32.gmra.mxu0 %vm256_vm0, %v211_v13  ;;  %456 = vmatmul.msk.f32.gmra.mxu2 %vm256_vm0, %v214_v14 }
  0x1d   : > { %459 = vmatmul.msk.f32.gmra.mxu1 %vm256_vm0, %v211_v13  ;;  %462 = vmatmul.msk.f32.gmra.mxu3 %vm256_vm0, %v214_v14 }
  0x24   : > { %454 = vmatmul.msk.f32.gmra.mxu0 %vm256_vm0, %v212_v15  ;;  %457 = vmatmul.msk.f32.gmra.mxu2 %vm256_vm0, %v215_v16 }
  0x25   : > { %460 = vmatmul.msk.f32.gmra.mxu1 %vm256_vm0, %v212_v15  ;;  %463 = vmatmul.msk.f32.gmra.mxu3 %vm256_vm0, %v215_v16 }
  0x69   : > { %v249_v33 = vpop.permute.xlu2 %248 }
  0x71   : > { %v254_v42 = vpop.permute.xlu2 %253 }
  0x80   : > { %v239_v17 = vpop.permute.xlu1 %238 }
  0x81   : > { %v229_v18 = vpop.permute.xlu0 %228 }
  0x88   : > { %v244_v23 = vpop.permute.xlu1 %243 }
  0x89   : > { %v234_v25 = vpop.permute.xlu0 %233 }
  0x91   : > { %v292_v19 = vpop.f32.mrf.mxu0 }
  0x92   : > { %v327_v20 = vpop.f32.mrf.mxu1  ;;  %v293_v21 = vadd.f32 %v292_v19, %v229_v18 }
  0x93   : > { %v328_v22 = vadd.f32 %v327_v20, %v229_v18 }
  0x94   : > { %345 = vst [vmem:[%s621_s24] sm:$0xff] %v293_v21 }
  0x95   : > { %346 = vst [vmem:[%s621_s24 + $0x8] sm:$0xff] %v328_v22 }
  0x97   : > { %v301_v24 = vpop.f32.mrf.mxu2 }
  0x98   : > { %v302_v26 = vadd.f32 %v301_v24, %v244_v23  ;;  %v336_v27 = vpop.f32.mrf.mxu3 }
  0x99   : > { %v337_v28 = vadd.f32 %v336_v27, %v244_v23  ;;  %v295_v29 = vpop.f32.mrf.mxu0 }
  0x9a   : > { %351 = vst [vmem:[%s621_s24 + $0x30] sm:$0xff] %v302_v26  ;;  %v330_v30 = vpop.f32.mrf.mxu1  ;;  %v296_v31 = vadd.f32 %v295_v29, %v234_v25 }
  0x9b   : > { %352 = vst [vmem:[%s621_s24 + $0x38] sm:$0xff] %v337_v28  ;;  %v331_v32 = vadd.f32 %v330_v30, %v234_v25 }
  0x9c   : > { %347 = vst [vmem:[%s621_s24 + $0x10] sm:$0xff] %v296_v31 }
  0x9d   : > { %348 = vst [vmem:[%s621_s24 + $0x18] sm:$0xff] %v331_v32 }
  0x9f   : > { %v304_v34 = vpop.f32.mrf.mxu2 }
  0xa0   : > { %v305_v35 = vadd.f32 %v304_v34, %v249_v33  ;;  %v339_v36 = vpop.f32.mrf.mxu3 }
  0xa1   : > { %v340_v37 = vadd.f32 %v339_v36, %v249_v33  ;;  %v298_v38 = vpop.f32.mrf.mxu0 }
  0xa2   : > { %353 = vst [vmem:[%s621_s24 + $0x40] sm:$0xff] %v305_v35  ;;  %v299_v39 = vadd.f32 %v298_v38, %v239_v17  ;;  %v333_v40 = vpop.f32.mrf.mxu1 }
  0xa3   : > { %354 = vst [vmem:[%s621_s24 + $0x48] sm:$0xff] %v340_v37  ;;  %v334_v41 = vadd.f32 %v333_v40, %v239_v17 }
  0xa4   : > { %349 = vst [vmem:[%s621_s24 + $0x20] sm:$0xff] %v299_v39 }
  0xa5   : > { %350 = vst [vmem:[%s621_s24 + $0x28] sm:$0xff] %v334_v41 }
  0xa7   : > { %v307_v43 = vpop.f32.mrf.mxu2 }
  0xa8   : > { %v308_v44 = vadd.f32 %v307_v43, %v254_v42  ;;  %v342_v45 = vpop.f32.mrf.mxu3 }
  0xa9   : > { %v343_v46 = vadd.f32 %v342_v45, %v254_v42 }
  0xaa   : > { %355 = vst [vmem:[%s621_s24 + $0x50] sm:$0xff] %v308_v44 }
  0xab   : > { %356 = vst [vmem:[%s621_s24 + $0x58] sm:$0xff] %v343_v46 }
  0xac PF: > { %s13_s14 = sadd.s32 1, %s522_s14   ;;  %s648_s12 = smov %s518_s13 }
  0xad   : > { %p10_p5 = scmp.ge.s32.totalorder %s13_s14, 4   ;;  %s649_s13 = smov %s651_s15 }
  0xaf   :  { %12 = sbr.rel (!%p10_p5) target bundleno = 2 (0x2), region = 62 }

// kernel: self_attention_forward.6
= control target key start
LH: loop header
LB: loop body
LE: loop exit
PB: predicated region body
PF: predicated region fallthrough
CT: control target
= control target key end

     0   :  { %s729_s12 = smov 0   ;;  %s731_s13 = smov 0   ;;  %s807_s0 = inlined_call_operand.vmem [shape: f32[2,48,256], index: 0, kind: input, shape index: {}, may-alias: {0,1,2}]   ;;  %s808_s1 = inlined_call_operand.vmem [shape: f32[2,48,256], index: 1, kind: input, shape index: {}, may-alias: {0,1,2}]   ;;  %s809_s2 = inlined_call_operand.vmem [shape: f32[2,48,256], index: 2, kind: input, shape index: {}, may-alias: {0,1,2}]   ;;  %s810_s3 = inlined_call_operand.vmem [shape: f32[2,16,256], index: 3, kind: output, shape index: {}]  }
   0x1   :  { %s733_s14 = smov 0   ;;  %s735_s15 = smov 0  }
   0x2   :  { %s737_s16 = smov 0  }
   0x3 LB: > { %s22_s17 = sadd.s32 1, %s699_s14  ;;  %s25_s18 = sadd.s32 1, %s703_s15  ;;  %s707_s16 = sphi %s737_s16, %s13_s16   ;;  %s703_s15 = sphi %s735_s15, %s814_s15   ;;  %s699_s14 = sphi %s733_s14, %s813_s14   ;;  %s695_s13 = sphi %s731_s13, %s812_s13   ;;  %s691_s12 = sphi %s729_s12, %s811_s12  }
   0x4   : > { %p23_p0 = scmp.ge.s32.totalorder %s22_s17, 2  ;;  %p602_p1 = scmp.ge.s32.totalorder %s707_s16, 1 }
   0x5   : > { %p197_p2 = scmp.lt.s32.totalorder %s707_s16, 5 }
   0x6   : > { %s816_s17 = smov (%p23_p0, %s22_s17), 0  ;;  %s818_s18 = smov (!%p23_p0, %s25_s18), %s703_s15 }
   0x7   : > { %p198_p3 = pnand %p602_p1, %p197_p2  ;;  %p27_p4 = scmp.ge.s32.totalorder %s818_s18, 2 }
   0x8   : > { %p249_p5 = scmp.lt.s32.totalorder (!%p198_p3), %s695_s13, 1  ;;  %s258_s19 = sadd.s32 (!%p198_p3), 2, %s691_s12 }
   0x9   : > { %s820_s18 = smov (%p27_p4, %s818_s18), 0  ;;  %201 = sbr.rel (%p198_p3) target bundleno = 704 (0x2c0), region = 32 }
   0xa   : > { %p261_p6 = scmp.lt.s32.totalorder (!%p198_p3), %s258_s19, 5  ;;  %p251_p7 = scmp.lt.s32.totalorder (!%p198_p3), %s691_s12, 5 }
   0xb   : > { %s269_s7 = sadd.s32 (!%p198_p3), 4, %s691_s12  ;;  %p282_p9 = scmp.lt.s32.totalorder (!%p198_p3), %s691_s12, 1 }
   0xc   : > { %p272_p8 = scmp.lt.s32.totalorder (!%p198_p3), %s269_s7, 5 }
   0xe   : > { %s822_s13 = smov (!%p249_p5, %s695_s13), 1  ;;  %s824_s19 = smov (!%p261_p6, %s258_s19), 5  ;;  %vm404_vm12 = vcmask 64512  }
   0xf   : > { %s765_s20 = smul.u32 12, %s822_s13  ;;  %s605_s21 = sshll.u32 %s824_s19, 1 }
  0x10   : > { %s252_s27 = scalar_select %p251_p7, %s691_s12, 5 }
  0x11   : > { %s265_s22 = sadd.s32 %s765_s20, %s605_s21  ;;  %s826_s7 = smov (!%p272_p8, %s269_s7), 5 }
  0x12   : > { %s606_s23 = sshll.u32 %s265_s22, 3  ;;  %s603_s28 = sshll.u32 %s252_s27, 1 }
  0x13   : > { %s267_s26 = scalar_lea.vmem %s808_s1, %s606_s23  ;;  %s255_s29 = sadd.s32 %s765_s20, %s603_s28 }
  0x14   : > { %v291_v0 = vld [vmem:[%s267_s26] sm:$0xff]  ;;  %v292_v1 = vld [vmem:[%s267_s26 + $0x8] sm:$0xff]  ;;  %s604_s30 = sshll.u32 %s255_s29, 3  ;;  %s607_s8 = sshll.u32 %s826_s7, 1 }
  0x15   : > { %v328_v2 = vmul.f32 %v291_v0, %v291_v0  ;;  %v329_v3 = vmul.f32 %v292_v1, %v292_v1  ;;  %s257_s6 = scalar_lea.vmem %s807_s0, %s604_s30  ;;  %s276_s9 = sadd.s32 %s765_s20, %s607_s8 }
  0x16   : > { %v289_v5 = vld [vmem:[%s257_s6] sm:$0xff]  ;;  %v290_v6 = vld [vmem:[%s257_s6 + $0x8] sm:$0xff]  ;;  %s608_s10 = sshll.u32 %s276_s9, 3  ;;  %s828_s12 = smov (!%p282_p9, %s691_s12), 1 }
  0x17   : > { %v330_v4 = vadd.f32 %v329_v3, %v328_v2  ;;  %v295_v7 = vmul.f32 %v289_v5, %v289_v5  ;;  %v296_v8 = vmul.f32 %v290_v6, %v290_v6  ;;  %s278_s21 = scalar_lea.vmem %s809_s2, %s608_s10  ;;  %s609_s20 = sshll.u32 %s828_s12, 1 }
  0x18   : > { %v293_v2 = vld [vmem:[%s278_s21] sm:$0xff]  ;;  %v294_v3 = vld [vmem:[%s278_s21 + $0x8] sm:$0xff]  ;;  %s610_s22 = sshll.u32 %s822_s13, 2 }
  0x19   : > { %331 = vadd.xlane.f32.xlu0 %v330_v4  ;;  %v297_v9 = vadd.f32 %v296_v8, %v295_v7  ;;  %434 = vmatpush.msra.mxu2 %v293_v2  ;;  %s286_s23 = sadd.s32 %s610_s22, %s609_s20 }
  0x1a   : > { %454 = vmatpush.msra.mxu3 %v294_v3  ;;  %s611_s24 = sshll.u32 %s286_s23, 3 }
  0x1b   : > { %s288_s27 = scalar_lea.vmem %s810_s3, %s611_s24 }
  0x21   : > { %298 = vadd.xlane.f32.xlu0 %v297_v9 }
  0x8c   : > { %v332_v10 = vpop.xlane.xlu0 %331 }
  0x8d   : > { %657 = vrsqrt.f32 %v332_v10  ;;  %vm340_vm0 = vcmp.eq.f32.partialorder %v332_v10, inf  ;;  %v343_v18 = vand.u32 2147483648, %v332_v10  ;;  %vm342_vm1 = vcmp.eq.f32.partialorder %v332_v10, 0.0 }
  0x93   : > { %v658_v11 = vpop.eup %657 }
  0x94   : > { %v334_v12 = vmul.f32 %v658_v11, %v332_v10  ;;  %v299_v34 = vpop.xlane.xlu0 %298 }
  0x95   : > { %vm307_vm6 = vcmp.eq.f32.partialorder %v299_v34, inf  ;;  %v310_v42 = vand.u32 2147483648, %v299_v34  ;;  %vm309_vm7 = vcmp.eq.f32.partialorder %v299_v34, 0.0 }
  0x96   : > { %v335_v13 = vmul.f32 %v658_v11, %v334_v12 }
  0x98   : > { %v336_v14 = vmul.f32 0.5, %v335_v13 }
  0x9a   : > { %v337_v15 = vsub.f32 1.5, %v336_v14 }
  0x9c   : > { %v338_v16 = vmul.f32 %v658_v11, %v337_v15 }
  0x9e   : > { %v339_v17 = vmul.f32 %v338_v16, %v332_v10 }
  0xa0   : > { %v341_v19 = vsel %vm340_vm0, %v332_v10, %v339_v17 }
  0xa1   : > { %v344_v20 = vsel %vm342_vm1, %v343_v18, %v341_v19 }
  0xa2   : > { %v345_v21 = vmax.f32 %v344_v20, 1e-12 }
  0xa4   : > { %659 = vrcp.f32 %v345_v21  ;;  %v357_v25 = vand.u32 2147483648, %v345_v21  ;;  %v355_v27 = vand.u32 2147483647, %v345_v21  ;;  %vm351_vm3 = vweird.f32 %v345_v21 }
  0xa5   : > { %661 = vrsqrt.f32 %v299_v34 }
  0xa6   : > { %v358_v29 = vor.u32 1.1754944e-38, %v357_v25  ;;  %vm356_vm5 = vcmp.eq.f32.partialorder %v355_v27, 8.507059e+37 }
  0xaa   : > { %v660_v22 = vpop.eup %659 }
  0xab   : > { %v347_v23 = vmul.f32 %v660_v22, %v345_v21  ;;  %vm352_vm2 = vweird.f32 %v660_v22  ;;  %v662_v35 = vpop.eup %661 }
  0xac   : > { %vm353_vm4 = vmor %vm351_vm3, %vm352_vm2  ;;  %v301_v36 = vmul.f32 %v662_v35, %v299_v34 }
  0xad   : > { %v348_v24 = vsub.f32 1.0, %v347_v23 }
  0xae   : > { %v302_v37 = vmul.f32 %v662_v35, %v301_v36 }
  0xaf   : > { %v349_v26 = vmul.f32 %v660_v22, %v348_v24 }
  0xb0   : > { %v303_v38 = vmul.f32 0.5, %v302_v37 }
  0xb1   : > { %v350_v28 = vadd.f32 %v660_v22, %v349_v26 }
  0xb2   : > { %v304_v39 = vsub.f32 1.5, %v303_v38 }
  0xb3   : > { %v354_v30 = vsel %vm353_vm4, %v660_v22, %v350_v28 }
  0xb4   : > { %v359_v31 = vsel %vm356_vm5, %v358_v29, %v354_v30  ;;  %v305_v40 = vmul.f32 %v662_v35, %v304_v39 }
  0xb5   : > { %v361_v32 = vmul.f32 %v359_v31, %v291_v0  ;;  %v362_v33 = vmul.f32 %v359_v31, %v292_v1 }
  0xb6   : > { %v306_v41 = vmul.f32 %v305_v40, %v299_v34 }
  0xb7   : > { %378 = vmatpush.xpose.msra.mxu0 %v361_v32  ;;  %398 = vmatpush.xpose.msra.mxu1 %v362_v33 }
  0xb8   : > { %v308_v43 = vsel %vm307_vm6, %v299_v34, %v306_v41 }
  0xb9   : > { %v311_v44 = vsel %vm309_vm7, %v310_v42, %v308_v43 }
  0xba   : > { %379 = vmatmul.f32.vlgmr.msra.gmra.mxu0 %v289_v5  ;;  %399 = vmatmul.f32.vlgmr.msra.gmra.mxu1 %v290_v6  ;;  %v312_v45 = vmax.f32 %v311_v44, 1e-12 }
  0xbc   : > { %663 = vrcp.f32 %v312_v45  ;;  %vm318_vm8 = vweird.f32 %v312_v45  ;;  %v324_v50 = vand.u32 2147483648, %v312_v45  ;;  %v322_v52 = vand.u32 2147483647, %v312_v45 }
  0xbe   : > { %v325_v53 = vor.u32 1.1754944e-38, %v324_v50  ;;  %vm323_vm11 = vcmp.eq.f32.partialorder %v322_v52, 8.507059e+37 }
  0xc2   : > { %v664_v46 = vpop.eup %663 }
  0xc3   : > { %v314_v47 = vmul.f32 %v664_v46, %v312_v45  ;;  %vm319_vm9 = vweird.f32 %v664_v46 }
  0xc4   : > { %vm320_vm10 = vmor %vm318_vm8, %vm319_vm9 }
  0xc5   : > { %v315_v48 = vsub.f32 1.0, %v314_v47 }
  0xc7   : > { %v316_v49 = vmul.f32 %v664_v46, %v315_v48 }
  0xc9   : > { %v317_v51 = vadd.f32 %v664_v46, %v316_v49 }
  0xcb   : > { %v321_v54 = vsel %vm320_vm10, %v664_v46, %v317_v51 }
  0xcc   : > { %v326_v58 = vsel %vm323_vm11, %v325_v53, %v321_v54 }
 0x137   : > { %v380_v55 = vpop.f32.mrf.mxu0  ;;  %v400_v56 = vpop.f32.mrf.mxu1 }
 0x138   : > { %v401_v57 = vadd.f32 %v400_v56, %v380_v55 }
 0x13a   : > { %v403_v59 = vmul.f32 %v401_v57, %v326_v58 }
 0x13c   : > { %v405_v60 = vsel %vm404_vm12, %v403_v59, -inf }
 0x13d   : > { %406 = vmax.xlane.f32.xlu1 %v405_v60 }
 0x1b0   : > { %v407_v61 = vpop.xlane.xlu1 %406 }
 0x1b1   : > { %v408_v62 = vsub.f32 %v403_v59, %v407_v61 }
 0x1b3   : > { %v409_v63 = vmul.f32 1.442695, %v408_v62 }
 0x1b5   : > { %665 = vpow2.f32 %v409_v63 }
 0x1bb   : > { %v666_v0 = vpop.eup %665 }
 0x1bc   : > { %v411_v1 = vsel %vm404_vm12, %v666_v0, 0.0 }
 0x1bd   : > { %412 = vadd.xlane.f32.xlu1 %v411_v1 }
 0x230   : > { %v413_v4 = vpop.xlane.xlu1 %412 }
 0x231   : > { %667 = vrcp.f32 %v413_v4 }
 0x237   : > { %v668_v5 = vpop.eup %667 }
 0x238   : > { %v415_v6 = vmul.f32 %v668_v5, %v666_v0 }
 0x23a   : > { %612 = vmatmul.msk.f32.vlgmr.msra.gmra.mxu2 %vm404_vm12, %v415_v6  ;;  %613 = vmatmul.msk.f32.vlgmr.msra.gmra.mxu3 %vm404_vm12, %v415_v6 }
 0x2bd   : > { %v436_v7 = vpop.f32.mrf.mxu2  ;;  %v456_v8 = vpop.f32.mrf.mxu3 }
 0x2be   : > { %459 = vst [vmem:[%s288_s27] sm:$0xff] %v436_v7 }
 0x2bf   : > { %460 = vst [vmem:[%s288_s27 + $0x8] sm:$0xff] %v456_v8 }
 0x2c0 PF: > { %s13_s16 = sadd.s32 1, %s707_s16   ;;  %s811_s12 = smov %s699_s14 }
 0x2c1   : > { %p10_p10 = scmp.ge.s32.totalorder %s13_s16, 6   ;;  %s812_s13 = smov %s703_s15 }
 0x2c2   : > { %s813_s14 = smov %s816_s17  ;;  %s814_s15 = smov %s820_s18 }
 0x2c3   :  { %12 = sbr.rel (!%p10_p10) target bundleno = 3 (0x3), region = 68 }

// kernel: self_attention_forward.7
= control target key start
LH: loop header
LB: loop body
LE: loop exit
PB: predicated region body
PF: predicated region fallthrough
CT: control target
= control target key end

     0   :  { %s464_s12 = smov 0   ;;  %s466_s13 = smov 0   ;;  %s509_s0 = inlined_call_operand.vmem [shape: f32[2,16,256], index: 0, kind: input, shape index: {}]   ;;  %s510_s1 = inlined_call_operand.vmem [shape: f32[16,16], index: 1, kind: input, shape index: {}]   ;;  %s511_s2 = inlined_call_operand.vmem [shape: f32[16,1], index: 2, kind: input, shape index: {}]   ;;  %s512_s3 = inlined_call_operand.vmem [shape: f32[2,16,256], index: 3, kind: output, shape index: {}]  }
   0x1   :  { %s468_s14 = smov 0  }
   0x2 LB: > { %s25_s15 = sadd.s32 1, %s437_s13  ;;  %p376_p0 = scmp.ge.s32.totalorder %s441_s14, 1  ;;  %s441_s14 = sphi %s468_s14, %s13_s14   ;;  %s437_s13 = sphi %s466_s13, %s514_s13   ;;  %s433_s12 = sphi %s464_s12, %s513_s12  }
   0x3   : > { %p27_p1 = scmp.ge.s32.totalorder %s25_s15, 2  ;;  %p158_p2 = scmp.lt.s32.totalorder %s441_s14, 3 }
   0x5   : > { %s516_s15 = smov (%p27_p1, %s25_s15), 0  ;;  %p159_p3 = pnand %p376_p0, %p158_p2 }
   0x6   : > { %p191_p4 = scmp.lt.s32.totalorder (!%p159_p3), %s433_s12, 1 }
   0x7   : > { %162 = sbr.rel (%p159_p3) target bundleno = 156 (0x9c), region = 32 }
   0xc   : > { %v216_v0 = vld [vmem:[%s511_s2] sm:$0xff]  ;;  %v443_v1 = vmov 0   ;;  %s518_s12 = smov (!%p191_p4, %s433_s12), 1  ;;  %vm228_vm0 = vcmask 130048   ;;  %v211_v7 = vld [vmem:[%s510_s1 + $0x8] sm:$0xff] }
   0xd   : > { %418 = vset.pattern.permute.xlu0 %v443_v1  ;;  %s387_s18 = sshll.u32 %s518_s12, 5  ;;  %v210_v6 = vld [vmem:[%s510_s1] sm:$0xff]  ;;  %v217_v8 = vld [vmem:[%s511_s2 + $0x8] sm:$0xff] }
   0xe   : > { %220 = vperm.xlu0 %418, %v216_v0   ;;  %s198_s21 = scalar_lea.vmem %s509_s0, %s387_s18  ;;  %s208_s30 = scalar_lea.vmem %s512_s3, %s387_s18 }
   0xf   : > { %v214_v2 = vld [vmem:[%s198_s21 + $0x10] sm:$0xff]  ;;  %v215_v3 = vld [vmem:[%s198_s21 + $0x18] sm:$0xff]  ;;  %v212_v4 = vld [vmem:[%s198_s21] sm:$0xff] }
  0x10   : > { %249 = vmatpush.msra.mxu0 %v214_v2  ;;  %389 = vmatpush.msra.mxu2 %v214_v2  ;;  %v213_v5 = vld [vmem:[%s198_s21 + $0x8] sm:$0xff] }
  0x11   : > { %272 = vmatpush.msra.mxu1 %v215_v3  ;;  %391 = vmatpush.msra.mxu3 %v215_v3 }
  0x12   : > { %250 = vmatpush.msra.mxu0 %v212_v4  ;;  %390 = vmatpush.msra.mxu2 %v212_v4 }
  0x13   : > { %273 = vmatpush.msra.mxu1 %v213_v5  ;;  %392 = vmatpush.msra.mxu3 %v213_v5 }
  0x14   : > { %381 = vmatmul.msk.f32.vlgmr.msra.gmra.mxu0 %vm228_vm0, %v210_v6  ;;  %382 = vmatmul.msk.f32.vlgmr.msra.gmra.mxu2 %vm228_vm0, %v211_v7 }
  0x15   : > { %383 = vmatmul.msk.f32.vlgmr.msra.gmra.mxu1 %vm228_vm0, %v210_v6  ;;  %384 = vmatmul.msk.f32.vlgmr.msra.gmra.mxu3 %vm228_vm0, %v211_v7 }
  0x16   : > { %225 = vperm.xlu0 %418, %v217_v8  }
  0x80   : > { %v221_v9 = vpop.permute.xlu0 %220 }
  0x88   : > { %v226_v14 = vpop.permute.xlu0 %225 }
  0x91   : > { %v252_v10 = vpop.f32.mrf.mxu0 }
  0x92   : > { %v253_v11 = vadd.f32 %v252_v10, %v221_v9  ;;  %v275_v12 = vpop.f32.mrf.mxu1 }
  0x93   : > { %v276_v13 = vadd.f32 %v275_v12, %v221_v9 }
  0x94   : > { %281 = vst [vmem:[%s208_s30] sm:$0xff] %v253_v11 }
  0x95   : > { %282 = vst [vmem:[%s208_s30 + $0x8] sm:$0xff] %v276_v13 }
  0x97   : > { %v255_v15 = vpop.f32.mrf.mxu2 }
  0x98   : > { %v256_v16 = vadd.f32 %v255_v15, %v226_v14  ;;  %v278_v17 = vpop.f32.mrf.mxu3 }
  0x99   : > { %v279_v18 = vadd.f32 %v278_v17, %v226_v14 }
  0x9a   : > { %283 = vst [vmem:[%s208_s30 + $0x10] sm:$0xff] %v256_v16 }
  0x9b   : > { %284 = vst [vmem:[%s208_s30 + $0x18] sm:$0xff] %v279_v18 }
  0x9c PF: > { %s13_s14 = sadd.s32 1, %s441_s14   ;;  %s513_s12 = smov %s437_s13 }
  0x9d   : > { %p10_p5 = scmp.ge.s32.totalorder %s13_s14, 4   ;;  %s514_s13 = smov %s516_s15 }
  0x9f   :  { %12 = sbr.rel (!%p10_p5) target bundleno = 2 (0x2), region = 62 }

// kernel: self_attention_forward.5
= control target key start
LH: loop header
LB: loop body
LE: loop exit
PB: predicated region body
PF: predicated region fallthrough
CT: control target
= control target key end

     0   :  { %8 = vsyncpa [#allocation3], 0  ;;  %s4423_s0 = inlined_call_operand.vmem [shape: f32[2,48,18,18], index: 0, kind: input, shape index: {}]   ;;  %s4424_s1 = inlined_call_operand.vmem [shape: f32[432], index: 1, kind: input, shape index: {}]   ;;  %s4425_s2 = inlined_call_operand.vmem [shape: f32[48], index: 2, kind: input, shape index: {}]   ;;  %s4426_s3 = inlined_call_operand.vmem [shape: f32[2,48,16,16], index: 3, kind: output, shape index: {}]  }
   0x1   :  { %9 = vsyncpa [#allocation5], 0  ;;  %s2683_s12 = smov 0   ;;  %s2685_s13 = smov 0  }
   0x2   :  { %s2687_s14 = smov 0   ;;  %s2689_s15 = smov 0  }
   0x3   :  { %s2691_s16 = smov 0  }
   0x4 LB: > { %s2378_s17 = sadd.s32 4294967295, %s2657_s16   ;;  %s24_s18 = sadd.s32 1, %s2649_s14  ;;  %s2657_s16 = sphi %s2691_s16, %s15_s16   ;;  %s2653_s15 = sphi %s2689_s15, %s4438_s15   ;;  %s2649_s14 = sphi %s2687_s14, %s4437_s14   ;;  %s2645_s13 = sphi %s2685_s13, %s4436_s13   ;;  %s2641_s12 = sphi %s2683_s12, %s4435_s12  }
   0x5   : > { %p25_p0 = scmp.ge.s32.totalorder %s24_s18, 3  ;;  %s27_s19 = sadd.s32 1, %s2653_s15 }
   0x6   : > { %p2380_p1 = scmp.ge.s32.totalorder %s2657_s16, 1  ;;  %p130_p2 = scmp.lt.s32.totalorder %s2657_s16, 7 }
   0x7   : > { %s4440_s18 = smov (%p25_p0, %s24_s18), 0  ;;  %s4442_s19 = smov (!%p25_p0, %s27_s19), %s2653_s15 }
   0x8   : > { %p2716_p3 = pnand %p2380_p1, %p130_p2  ;;  %p29_p4 = scmp.ge.s32.totalorder %s4442_s19, 2 }
   0x9   : > { %p2720_p5 = scmp.eq.s32.totalorder %s2378_s17, 0  ;;  %s142_s24 = sshll.u32 %s4424_s1, 4  ;;  %s143_s24 = int_to_ptr.vmem [resolvable:$true] %s142_s24 }
   0xa   : > { %p2526_p6 = pneg %p2716_p3  ;;  %s4444_s19 = smov (%p29_p4, %s4442_s19), 0 }
   0xb   : > { %s152_s27 = sshll.u32 %s4425_s2, 4  ;;  %s2659_s28 = smov [#allocation2]   ;;  %s153_s27 = int_to_ptr.vmem [resolvable:$true] %s152_s27 }
   0xc   : > { %p2527_p7 = pnand %p2720_p5, %p2526_p6  ;;  %s2660_s29 = smov [#allocation4]  }
   0xd   : > { %179 = sbr.rel (%p2716_p3) target bundleno = 663 (0x297), region = 32 }
   0xe   : > { %2529 = dma.vmem_to_smem (!%p2527_p7), %s143_s24, 64, %s2659_s28, [#allocation3]  }
   0xf   : > { %2532 = dma.vmem_to_smem (!%p2527_p7), %s153_s27, 16, %s2660_s29, [#allocation5]  }
  0x12   : > { %2632 = dma.done.wait (%p2720_p5), [#allocation3], 64  }
  0x13   : > { %2634 = vsyncadd (%p2720_p5), [#allocation3], 4294967232 }
  0x14   : > { %2636 = dma.done.wait (%p2720_p5), [#allocation5], 16  }
  0x15   : > { %2638 = vsyncadd (%p2720_p5), [#allocation5], 4294967280 }
  0x16   : > { %191 = sfence }
  0x17   : > { %s2747_s30 = sshll.u32 %s2641_s12, 4  ;;  %p221_p8 = scmp.lt.s32.totalorder %s2645_s13, 1  ;;  %vm364_vm0 = vcmask 130048  }
  0x18   : > { %p223_p9 = scmp.lt.s32.totalorder %s2747_s30, 47  ;;  %s2752_s4 = smul.u32 144, %s2641_s12 }
  0x19   : > { %s4446_s13 = smov (!%p221_p8, %s2645_s13), 1  ;;  %s2661_s26 = smov 126  }
  0x1a   : > { %s2758_s5 = scalar_select %p223_p9, %s2747_s30, 47 }
  0x1b   : > { %s2516_s6 = smul.u32 144, %s4446_s13  ;;  %s267_s7 = sadd.s32 2, %s2752_s4 }
  0x1c   : > { %s2515_s8 = smul.u32 3, %s2758_s5  ;;  %s268_s9 = sld [smem:[#allocation2 + %s267_s7]] }
  0x1d   : > { %s252_s10 = sadd.s32 1, %s2752_s4  ;;  %s291_s23 = sadd.s32 4, %s2752_s4 }
  0x1e   : > { %s227_s11 = sadd.s32 %s2516_s6, %s2515_s8  ;;  %s253_s17 = sld [smem:[#allocation2 + %s252_s10]] }
  0x1f   : > { %s2388_s20 = sshll.u32 %s227_s11, 3  ;;  %s292_s24 = sld [smem:[#allocation2 + %s291_s23]] }
  0x20   : > { %s2767_s22 = scalar_lea.vmem %s4423_s0, %s2388_s20  ;;  %s306_s25 = sadd.s32 5, %s2752_s4 }
  0x21   : > { %v2770_v0 = vld [vmem:[%s2767_s22] sm:$0xff]  ;;  %v2778_v5 = vld [vmem:[%s2767_s22 + $0x8] sm:$0xff]  ;;  %s307_s27 = sld [smem:[#allocation2 + %s306_s25]]  ;;  %s2662_s28 = smov 127   ;;  %v2832_v26 = vld [vmem:[%s2767_s22 + $0x18] sm:$0xff] }
  0x22   : > { %v269_v1 = vstv %s268_s9  ;;  %v2782_v6 = vld [vmem:[%s2767_s22 + $0x1] sm:$0xff]  ;;  %s345_s29 = sadd.s32 8, %s2752_s4  ;;  %s330_s6 = sadd.s32 7, %s2752_s4  ;;  %v2795_v11 = vld [vmem:[%s2767_s22 + $0x9] sm:$0xff]  ;;  %v2843_v29 = vld [vmem:[%s2767_s22 + $0x19] sm:$0xff] }
  0x23   : > { %v270_v2 = vmul.f32 %v269_v1, %v2770_v0  ;;  %v271_v8 = vmul.f32 %v269_v1, %v2778_v5  ;;  %s367_s7 = sadd.s32 1, %s2747_s30  ;;  %s2792_s8 = sld [smem:[#allocation2 + %s345_s29]]  ;;  %v2809_v16 = vld [vmem:[%s2767_s22 + $0x2] sm:$0xff]  ;;  %v2815_v20 = vld [vmem:[%s2767_s22 + $0xa] sm:$0xff]  ;;  %v2872_v40 = vld [vmem:[%s2767_s22 + $0x1a] sm:$0xff] }
  0x24   : > { %v254_v3 = vstv %s253_s17  ;;  %s331_s9 = sld [smem:[#allocation2 + %s330_s6]]  ;;  %s2801_s10 = smul.u32 9, %s367_s7  ;;  %v2826_v23 = vld [vmem:[%s2767_s22 + $0x20] sm:$0xff]  ;;  %v2889_v47 = vld [vmem:[%s2767_s22 + $0x38] sm:$0xff]  ;;  %v2894_v50 = vld [vmem:[%s2767_s22 + $0x30] sm:$0xff] }
  0x25   : > { %274 = vrot.lane.b32.xlu1 %v270_v2, %s2661_s26  ;;  %v255_v4 = vmul.f32 %v254_v3, %v2770_v0  ;;  %v293_v7 = vstv %s292_s24  ;;  %v256_v10 = vmul.f32 %v254_v3, %v2778_v5  ;;  %s2390_s24 = sshll.u32 %s2758_s5, 1  ;;  %s2517_s25 = smul.u32 96, %s4446_s13  ;;  %v2858_v35 = vld [vmem:[%s2767_s22 + $0x21] sm:$0xff]  ;;  %v2902_v53 = vld [vmem:[%s2767_s22 + $0x31] sm:$0xff] }
  0x26   : > { %v294_v9 = vmul.f32 %v293_v7, %v2782_v6  ;;  %v295_v13 = vmul.f32 %v293_v7, %v2795_v11  ;;  %s378_s11 = sadd.s32 1, %s2801_s10  ;;  %s417_s20 = sadd.s32 4, %s2801_s10  ;;  %v2878_v44 = vld [vmem:[%s2767_s22 + $0x22] sm:$0xff]  ;;  %v2917_v59 = vld [vmem:[%s2767_s22 + $0x39] sm:$0xff] }
  0x27   : > { %259 = vrot.lane.b32.xlu0 %v255_v4, %s2662_s28  ;;  %v308_v12 = vstv %s307_s27  ;;  %s379_s17 = sld [smem:[#allocation2 + %s378_s11]]  ;;  %s393_s12 = sadd.s32 2, %s2801_s10  ;;  %v2931_v1 = vld [vmem:[%s2767_s22 + $0x32] sm:$0xff]  ;;  %v2937_v7 = vld [vmem:[%s2767_s22 + $0x3a] sm:$0xff] }
  0x28   : > { %298 = vrot.lane.b32.xlu2 %v294_v9, %s2662_s28  ;;  %v310_v14 = vmul.f32 %v308_v12, %v2795_v11  ;;  %v309_v15 = vmul.f32 %v308_v12, %v2782_v6  ;;  %s2823_s21 = sld [smem:[#allocation2 + %s417_s20]]  ;;  %s2836_s27 = sadd.s32 %s2517_s25, %s2390_s24 }
  0x29   : > { %v347_v17 = vstv %s2792_s8  ;;  %s394_s23 = sld [smem:[#allocation2 + %s393_s12]]  ;;  %s432_s29 = sadd.s32 5, %s2801_s10 }
  0x2a   : > { %v332_v18 = vstv %s331_s9  ;;  %v348_v21 = vmul.f32 %v347_v17, %v2809_v16  ;;  %v349_v25 = vmul.f32 %v347_v17, %v2815_v20  ;;  %s433_s5 = sld [smem:[#allocation2 + %s432_s29]]  ;;  %s471_s13 = sadd.s32 8, %s2801_s10 }
  0x2b   : > { %v333_v19 = vmul.f32 %v332_v18, %v2809_v16  ;;  %v334_v22 = vmul.f32 %v332_v18, %v2815_v20  ;;  %s456_s6 = sadd.s32 7, %s2801_s10  ;;  %s493_s8 = sadd.s32 2, %s2747_s30 }
  0x2c   : > { %s2855_s9 = sld [smem:[#allocation2 + %s471_s13]] }
  0x2d   : > { %276 = vrot.lane.b32.xlu1 %v271_v8, %s2661_s26  ;;  %v380_v24 = vstv %s379_s17  ;;  %s457_s11 = sld [smem:[#allocation2 + %s456_s6]]  ;;  %s2864_s17 = smul.u32 9, %s493_s8 }
  0x2e   : > { %v382_v27 = vmul.f32 %v2826_v23, %v380_v24  ;;  %v381_v28 = vmul.f32 %v2832_v26, %v380_v24  ;;  %v419_v30 = vstv %s2823_s21 }
  0x2f   : > { %261 = vrot.lane.b32.xlu0 %v256_v10, %s2662_s28  ;;  %v395_v31 = vstv %s394_s23  ;;  %v420_v33 = vmul.f32 %v2843_v29, %v419_v30  ;;  %v421_v37 = vmul.f32 %v2858_v35, %v419_v30  ;;  %s504_s20 = sadd.s32 1, %s2864_s17  ;;  %s543_s21 = sadd.s32 4, %s2864_s17  ;;  %v2948_v10 = vld [vmem:[%s2767_s22 + $0x50] sm:$0xff] }
  0x30   : > { %300 = vrot.lane.b32.xlu2 %v295_v13, %s2662_s28  ;;  %v396_v32 = vmul.f32 %v2832_v26, %v395_v31  ;;  %v397_v34 = vmul.f32 %v2826_v23, %v395_v31  ;;  %v434_v36 = vstv %s433_s5  ;;  %s505_s12 = sld [smem:[#allocation2 + %s504_s20]]  ;;  %s519_s23 = sadd.s32 2, %s2864_s17  ;;  %v2983_v30 = vld [vmem:[%s2767_s22 + $0x51] sm:$0xff] }
  0x31   : > { %v436_v38 = vmul.f32 %v2858_v35, %v434_v36  ;;  %v435_v39 = vmul.f32 %v2843_v29, %v434_v36  ;;  %s2886_s24 = sld [smem:[#allocation2 + %s543_s21]]  ;;  %s558_s29 = sadd.s32 5, %s2864_s17 }
  0x32   : > { %v473_v41 = vstv %s2855_s9  ;;  %s520_s25 = sld [smem:[#allocation2 + %s519_s23]]  ;;  %s597_s13 = sadd.s32 8, %s2864_s17 }
  0x33   : > { %v458_v42 = vstv %s457_s11  ;;  %v474_v45 = vmul.f32 %v2872_v40, %v473_v41  ;;  %v475_v49 = vmul.f32 %v2878_v44, %v473_v41  ;;  %s559_s5 = sld [smem:[#allocation2 + %s558_s29]]  ;;  %s582_s6 = sadd.s32 7, %s2864_s17 }
  0x34   : > { %v459_v43 = vmul.f32 %v2872_v40, %v458_v42  ;;  %v460_v46 = vmul.f32 %v2878_v44, %v458_v42  ;;  %s619_s9 = sadd.s32 3, %s2747_s30  ;;  %s2914_s11 = sld [smem:[#allocation2 + %s597_s13]] }
  0x35   : > { %315 = vrot.lane.b32.xlu1 %v310_v14, %s2661_s26  ;;  %s583_s20 = sld [smem:[#allocation2 + %s582_s6]]  ;;  %v2953_v14 = vld [vmem:[%s2767_s22 + $0x48] sm:$0xff] }
  0x36   : > { %v506_v48 = vstv %s505_s12  ;;  %s2923_s12 = smul.u32 9, %s619_s9 }
  0x37   : > { %313 = vrot.lane.b32.xlu0 %v309_v15, %s2661_s26  ;;  %v508_v51 = vmul.f32 %v2889_v47, %v506_v48  ;;  %v507_v52 = vmul.f32 %v2894_v50, %v506_v48  ;;  %v545_v54 = vstv %s2886_s24 }
  0x38   : > { %337 = vrot.lane.b32.xlu2 %v333_v19, %s2662_s28  ;;  %v521_v55 = vstv %s520_s25  ;;  %v546_v57 = vmul.f32 %v2902_v53, %v545_v54  ;;  %v547_v61 = vmul.f32 %v2917_v59, %v545_v54  ;;  %s630_s21 = sadd.s32 1, %s2923_s12  ;;  %s669_s24 = sadd.s32 4, %s2923_s12  ;;  %v2963_v19 = vld [vmem:[%s2767_s22 + $0x49] sm:$0xff] }
  0x39   : > { %v522_v56 = vmul.f32 %v2894_v50, %v521_v55  ;;  %v523_v58 = vmul.f32 %v2889_v47, %v521_v55  ;;  %v560_v60 = vstv %s559_s5  ;;  %s631_s23 = sld [smem:[#allocation2 + %s630_s21]]  ;;  %s645_s25 = sadd.s32 2, %s2923_s12 }
  0x3a   : > { %v562_v62 = vmul.f32 %v2917_v59, %v560_v60  ;;  %v561_v63 = vmul.f32 %v2902_v53, %v560_v60  ;;  %v599_v2 = vstv %s2914_s11  ;;  %s2945_s29 = sld [smem:[#allocation2 + %s669_s24]]  ;;  %s684_s13 = sadd.s32 5, %s2923_s12 }
  0x3b   : > { %v584_v3 = vstv %s583_s20  ;;  %v600_v8 = vmul.f32 %v2931_v1, %v599_v2  ;;  %s646_s5 = sld [smem:[#allocation2 + %s645_s25]]  ;;  %v601_v13 = vmul.f32 %v2937_v7, %v599_v2  ;;  %s723_s11 = sadd.s32 8, %s2923_s12 }
  0x3c   : > { %v585_v4 = vmul.f32 %v2931_v1, %v584_v3  ;;  %v586_v9 = vmul.f32 %v2937_v7, %v584_v3  ;;  %s685_s6 = sld [smem:[#allocation2 + %s684_s13]]  ;;  %s708_s20 = sadd.s32 7, %s2923_s12 }
  0x3d   : > { %352 = vrot.lane.b32.xlu1 %v348_v21, %s2661_s26  ;;  %s2974_s21 = sld [smem:[#allocation2 + %s2752_s4]] }
  0x3e   : > { %s2980_s24 = sld [smem:[#allocation2 + %s723_s11]] }
  0x3f   : > { %339 = vrot.lane.b32.xlu0 %v334_v22, %s2662_s28  ;;  %v632_v12 = vstv %s631_s23  ;;  %s4427_s23 = sadd.s32 4, %s2747_s30  ;;  %s709_s25 = sld [smem:[#allocation2 + %s708_s20]] }
  0x40   : > { %354 = vrot.lane.b32.xlu2 %v349_v25, %s2661_s26  ;;  %v634_v15 = vmul.f32 %v2948_v10, %v632_v12  ;;  %v633_v17 = vmul.f32 %v2953_v14, %v632_v12  ;;  %v671_v21 = vstv %s2945_s29  ;;  %s2989_s29 = smul.u32 9, %s4427_s23  ;;  %s323_s20 = sadd.s32 6, %s2752_s4 }
  0x41   : > { %v647_v22 = vstv %s646_s5  ;;  %v672_v25 = vmul.f32 %v2963_v19, %v671_v21  ;;  %s284_s5 = sadd.s32 3, %s2752_s4  ;;  %s410_s23 = sadd.s32 3, %s2801_s10 }
  0x42   : > { %v648_v24 = vmul.f32 %v2953_v14, %v647_v22  ;;  %v686_v31 = vstv %s685_s6  ;;  %s756_s13 = sadd.s32 1, %s2989_s29  ;;  %s3000_s6 = sld [smem:[#allocation2 + %s284_s5]] }
  0x43   : > { %v247_v36 = vstv %s2974_s21  ;;  %s3006_s11 = sld [smem:[#allocation2 + %s756_s13]]  ;;  %s795_s21 = sadd.s32 4, %s2989_s29 }
  0x44   : > { %s3026_s5 = sld [smem:[#allocation2 + %s795_s21]]  ;;  %v249_v55 = vmul.f32 %v247_v36, %v2778_v5  ;;  %s810_s13 = sadd.s32 5, %s2989_s29 }
  0x45   : > { %387 = vrot.lane.b32.xlu1 %v382_v27, %s2662_s28  ;;  %v649_v27 = vmul.f32 %v2948_v10, %v647_v22  ;;  %v710_v41 = vstv %s709_s25  ;;  %s3020_s25 = sld [smem:[#allocation2 + %s323_s20]]  ;;  %s849_s20 = sadd.s32 8, %s2989_s29 }
  0x46   : > { %s834_s21 = sadd.s32 7, %s2989_s29 }
  0x47   : > { %385 = vrot.lane.b32.xlu0 %v381_v28, %s2662_s28 }
  0x48   : > { %400 = vrot.lane.b32.xlu2 %v396_v32, %s2661_s26  ;;  %v673_v32 = vmul.f32 %v2983_v30, %v671_v21 }
  0x4a   : > { %v797_v21 = vstv %s3026_s5  ;;  %s2391_s5 = sshll.u32 %s2836_s27, 3 }
  0x4d   : > { %424 = vrot.lane.b32.xlu1 %v420_v33, %s2662_s28  ;;  %v688_v33 = vmul.f32 %v2983_v30, %v686_v31 }
  0x4f   : > { %402 = vrot.lane.b32.xlu0 %v397_v34, %s2661_s26  ;;  %v687_v34 = vmul.f32 %v2963_v19, %v686_v31 }
  0x50   : > { %426 = vrot.lane.b32.xlu2 %v421_v37, %s2662_s28 }
  0x55   : > { %441 = vrot.lane.b32.xlu1 %v436_v38, %s2661_s26  ;;  %v3003_v38 = vld [vmem:[%s2767_s22 + $0x4a] sm:$0xff] }
  0x57   : > { %439 = vrot.lane.b32.xlu0 %v435_v39, %s2661_s26  ;;  %v725_v39 = vstv %s2980_s24  ;;  %s771_s24 = sadd.s32 2, %s2989_s29 }
  0x58   : > { %463 = vrot.lane.b32.xlu2 %v459_v43, %s2662_s28  ;;  %v711_v43 = vmul.f32 %v3003_v38, %v710_v41  ;;  %s3033_s4 = sld [smem:[#allocation2 + %s771_s24]]  ;;  %s871_s24 = sadd.s32 5, %s2747_s30 }
  0x5d   : > { %478 = vrot.lane.b32.xlu1 %v474_v45, %s2661_s26  ;;  %v248_v45 = vmul.f32 %v247_v36, %v2770_v0  ;;  %v286_v0 = vstv %s3000_s6  ;;  %s3055_s6 = sld [smem:[#allocation2 + %s810_s13]] }
  0x5e   : > { %s3088_s13 = sld [smem:[#allocation2 + %s2801_s10]] }
  0x5f   : > { %465 = vrot.lane.b32.xlu0 %v460_v46, %s2662_s28  ;;  %v3012_v46 = vld [vmem:[%s2767_s22 + $0x52] sm:$0xff] }
  0x60   : > { %480 = vrot.lane.b32.xlu2 %v475_v49, %s2661_s26  ;;  %v726_v49 = vmul.f32 %v3003_v38, %v725_v39  ;;  %v727_v60 = vmul.f32 %v3012_v46, %v725_v39 }
  0x65   : > { %513 = vrot.lane.b32.xlu1 %v508_v51, %s2662_s28  ;;  %v712_v51 = vmul.f32 %v3012_v46, %v710_v41 }
  0x67   : > { %511 = vrot.lane.b32.xlu0 %v507_v52, %s2662_s28 }
  0x68   : > { %526 = vrot.lane.b32.xlu2 %v522_v56, %s2661_s26  ;;  %v3030_v56 = vld [vmem:[%s2767_s22 + $0x68] sm:$0xff] }
  0x6d   : > { %550 = vrot.lane.b32.xlu1 %v546_v57, %s2662_s28  ;;  %v758_v57 = vstv %s3006_s11  ;;  %s3059_s11 = sld [smem:[#allocation4 + %s2747_s30]] }
  0x6e   : > { %v760_v2 = vmul.f32 %v3030_v56, %v758_v57 }
  0x6f   : > { %528 = vrot.lane.b32.xlu0 %v523_v58, %s2661_s26 }
  0x70   : > { %552 = vrot.lane.b32.xlu2 %v547_v61, %s2662_s28 }
  0x75   : > { %567 = vrot.lane.b32.xlu1 %v562_v62, %s2661_s26  ;;  %v3038_v62 = vld [vmem:[%s2767_s22 + $0x60] sm:$0xff] }
  0x77   : > { %565 = vrot.lane.b32.xlu0 %v561_v63, %s2661_s26  ;;  %v287_v63 = vmul.f32 %v286_v0, %v2782_v6 }
  0x78   : > { %589 = vrot.lane.b32.xlu2 %v585_v4, %s2662_s28  ;;  %v288_v4 = vmul.f32 %v286_v0, %v2795_v11  ;;  %v773_v11 = vstv %s3033_s4  ;;  %s3083_s4 = sld [smem:[#allocation2 + %s834_s21]] }
  0x79   : > { %v775_v36 = vmul.f32 %v3030_v56, %v773_v11 }
  0x7d   : > { %604 = vrot.lane.b32.xlu1 %v600_v8, %s2661_s26  ;;  %v759_v8 = vmul.f32 %v3038_v62, %v758_v57 }
  0x7f   : > { %591 = vrot.lane.b32.xlu0 %v586_v9, %s2662_s28 }
  0x80   : > { %606 = vrot.lane.b32.xlu2 %v601_v13, %s2661_s26  ;;  %v325_v13 = vstv %s3020_s25  ;;  %s3075_s25 = sld [smem:[#allocation2 + %s849_s20]]  ;;  %s3093_s20 = smul.u32 9, %s871_s24 }
  0x82   : > { %v2960_v18 = vpop.permute.xlu2 %298 }
  0x85   : > { %639 = vrot.lane.b32.xlu1 %v634_v15, %s2662_s28 }
  0x87   : > { %637 = vrot.lane.b32.xlu0 %v633_v17, %s2662_s28  ;;  %v3051_v17 = vld [vmem:[%s2767_s22 + $0x61] sm:$0xff] }
  0x88   : > { %652 = vrot.lane.b32.xlu2 %v648_v24, %s2661_s26  ;;  %v774_v24 = vmul.f32 %v3038_v62, %v773_v11 }
  0x8a   : > { %v2978_v28 = vpop.permute.xlu2 %300 }
  0x8d   : > { %676 = vrot.lane.b32.xlu1 %v672_v25, %s2662_s28 }
  0x8f   : > { %654 = vrot.lane.b32.xlu0 %v649_v27, %s2661_s26  ;;  %v326_v27 = vmul.f32 %v325_v13, %v2809_v16  ;;  %v327_v16 = vmul.f32 %v325_v13, %v2815_v20 }
  0x90   : > { %678 = vrot.lane.b32.xlu2 %v673_v32, %s2662_s28 }
  0x92   : > { %v2998_v37 = vpop.permute.xlu2 %337 }
  0x95   : > { %693 = vrot.lane.b32.xlu1 %v688_v33, %s2661_s26  ;;  %v798_v33 = vmul.f32 %v3051_v17, %v797_v21 }
  0x97   : > { %691 = vrot.lane.b32.xlu0 %v687_v34, %s2661_s26  ;;  %v275_v42 = vpop.permute.xlu1 %274 }
  0x98   : > { %715 = vrot.lane.b32.xlu2 %v711_v43, %s2662_s28  ;;  %v812_v43 = vstv %s3055_s6  ;;  %s3098_s6 = scalar_lea.vmem %s4426_s3, %s2391_s5  ;;  %s3120_s5 = sld [smem:[#allocation2 + %s410_s23]] }
  0x99   : > { %v260_v48 = vpop.permute.xlu0 %259  ;;  %v813_v57 = vmul.f32 %v3051_v17, %v812_v43  ;;  %s936_s23 = sadd.s32 5, %s3093_s20 }
  0x9a   : > { %v265_v52 = vadd.f32 %v260_v48, %v248_v45  ;;  %v3024_v54 = vpop.permute.xlu2 %354  ;;  %v361_v45 = vstv %s3059_s11  ;;  %s882_s11 = sadd.s32 1, %s3093_s20 }
  0x9b   : > { %s3116_s21 = sld [smem:[#allocation2 + %s882_s11]] }
  0x9c   : > { %v280_v61 = vadd.f32 %v275_v42, %v265_v52  ;;  %v3080_v42 = vld [vmem:[%s2767_s22 + $0x69] sm:$0xff] }
  0x9d   : > { %730 = vrot.lane.b32.xlu1 %v726_v49, %s2661_s26  ;;  %v799_v20 = vmul.f32 %v3080_v42, %v797_v21  ;;  %v814_v52 = vmul.f32 %v3080_v42, %v812_v43 }
  0x9e   : > { %v289_v12 = vadd.f32 %v287_v63, %v280_v61  ;;  %v3112_v63 = vld [vmem:[%s2767_s22 + $0x62] sm:$0xff] }
  0x9f   : > { %717 = vrot.lane.b32.xlu0 %v712_v51, %s2662_s28  ;;  %v277_v58 = vpop.permute.xlu1 %276 }
  0xa0   : > { %732 = vrot.lane.b32.xlu2 %v727_v60, %s2661_s26  ;;  %v304_v31 = vadd.f32 %v2960_v18, %v289_v12 }
  0xa1   : > { %v262_v5 = vpop.permute.xlu0 %261 }
  0xa2   : > { %v266_v3 = vadd.f32 %v262_v5, %v249_v55  ;;  %v3048_v15 = vpop.permute.xlu2 %400  ;;  %v851_v5 = vstv %s3075_s25  ;;  %s449_s25 = sadd.s32 6, %s2801_s10 }
  0xa3   : > { %v852_v12 = vmul.f32 %v3112_v63, %v851_v5  ;;  %s3136_s27 = sld [smem:[#allocation2 + %s449_s25]]  ;;  %s975_s25 = sadd.s32 8, %s3093_s20 }
  0xa4   : > { %v281_v9 = vadd.f32 %v277_v58, %v266_v3  ;;  %v373_v3 = vstv %s3088_s13  ;;  %s897_s13 = sadd.s32 2, %s3093_s20 }
  0xa5   : > { %765 = vrot.lane.b32.xlu1 %v760_v2, %s2662_s28  ;;  %v836_v2 = vstv %s3083_s4  ;;  %v374_v13 = vmul.f32 %v2832_v26, %v373_v3  ;;  %s921_s4 = sadd.s32 4, %s3093_s20  ;;  %v375_v21 = vmul.f32 %v2826_v23, %v373_v3  ;;  %v884_v26 = vstv %s3116_s21  ;;  %s3147_s10 = sld [smem:[#allocation2 + %s897_s13]] }
  0xa6   : > { %v290_v6 = vadd.f32 %v288_v4, %v281_v9  ;;  %s3141_s11 = sld [smem:[#allocation2 + %s921_s4]]  ;;  %s997_s4 = sadd.s32 6, %s2747_s30 }
  0xa7   : > { %763 = vrot.lane.b32.xlu0 %v759_v8, %s2662_s28  ;;  %v316_v22 = vpop.permute.xlu1 %315  ;;  %v3126_v8 = vld [vmem:[%s2767_s22 + $0x6a] sm:$0xff]  ;;  %s3171_s21 = sld [smem:[#allocation2 + %s936_s23]] }
  0xa8   : > { %v305_v25 = vadd.f32 %v2978_v28, %v290_v6  ;;  %778 = vrot.lane.b32.xlu2 %v774_v24, %s2661_s26  ;;  %v838_v6 = vmul.f32 %v3126_v8, %v836_v2  ;;  %v3144_v24 = vld [vmem:[%s2767_s22 + $0x80] sm:$0xff]  ;;  %s3191_s13 = sld [smem:[#allocation2 + %s975_s25]] }
  0xa9   : > { %v314_v32 = vpop.permute.xlu0 %313  ;;  %v451_v43 = vstv %s3136_s27 }
  0xaa   : > { %v319_v34 = vadd.f32 %v314_v32, %v304_v31  ;;  %v320_v28 = vadd.f32 %v316_v22, %v305_v25  ;;  %v3073_v18 = vpop.permute.xlu2 %426  ;;  %v412_v25 = vstv %s3120_s5  ;;  %v3153_v32 = vld [vmem:[%s2767_s22 + $0x78] sm:$0xff]  ;;  %s3176_s5 = sld [smem:[#allocation4 + %s367_s7]]  ;;  %s960_s7 = sadd.s32 7, %s3093_s20 }
  0xab   : > { %s3198_s27 = sld [smem:[#allocation2 + %s960_s7]]  ;;  %s575_s7 = sadd.s32 6, %s2864_s17 }
  0xac   : > { %v328_v39 = vadd.f32 %v326_v27, %v319_v34  ;;  %v853_v27 = vmul.f32 %v3126_v8, %v851_v5  ;;  %v886_v34 = vmul.f32 %v3144_v24, %v884_v26 }
  0xad   : > { %802 = vrot.lane.b32.xlu1 %v798_v33, %s2662_s28 }
  0xae   : > { %v343_v41 = vadd.f32 %v2998_v37, %v328_v39  ;;  %v329_v37 = vadd.f32 %v327_v16, %v320_v28  ;;  %v413_v28 = vmul.f32 %v2843_v29, %v412_v25  ;;  %v414_v39 = vmul.f32 %v2858_v35, %v412_v25 }
  0xaf   : > { %780 = vrot.lane.b32.xlu0 %v775_v36, %s2661_s26  ;;  %v353_v48 = vpop.permute.xlu1 %352  ;;  %v923_v29 = vstv %s3141_s11  ;;  %v899_v35 = vstv %s3147_s10  ;;  %s3203_s11 = sld [smem:[#allocation2 + %s2864_s17]]  ;;  %s3208_s10 = smul.u32 9, %s997_s4 }
  0xb0   : > { %v358_v49 = vadd.f32 %v353_v48, %v343_v41  ;;  %804 = vrot.lane.b32.xlu2 %v799_v20, %s2662_s28  ;;  %v885_v41 = vmul.f32 %v3153_v32, %v884_v26 }
  0xb1   : > { %v340_v51 = vpop.permute.xlu0 %339  ;;  %s1008_s23 = sadd.s32 1, %s3208_s10 }
  0xb2   : > { %v362_v0 = vadd.f32 %v361_v45, %v358_v49  ;;  %v344_v55 = vadd.f32 %v340_v51, %v329_v37  ;;  %v3109_v60 = vpop.permute.xlu2 %463  ;;  %v900_v37 = vmul.f32 %v3153_v32, %v899_v35 }
  0xb4   : > { %365 = vst.msk [vmem:[%s3098_s6] sm:$0xff] %vm364_vm0, %v362_v0  ;;  %v359_v58 = vadd.f32 %v3024_v54, %v344_v55  ;;  %v837_v54 = vmul.f32 %v3112_v63, %v836_v2 }
  0xb5   : > { %819 = vrot.lane.b32.xlu1 %v814_v52, %s2661_s26  ;;  %v452_v52 = vmul.f32 %v2872_v40, %v451_v43  ;;  %v453_v40 = vmul.f32 %v2878_v44, %v451_v43 }
  0xb6   : > { %v363_v61 = vadd.f32 %v361_v45, %v359_v58 }
  0xb7   : > { %817 = vrot.lane.b32.xlu0 %v813_v57, %s2661_s26  ;;  %v388_v4 = vpop.permute.xlu1 %387 }
  0xb8   : > { %366 = vst.msk [vmem:[%s3098_s6 + $0x8] sm:$0xff] %vm364_vm0, %v363_v61  ;;  %841 = vrot.lane.b32.xlu2 %v837_v54, %s2662_s28  ;;  %v392_v31 = vadd.f32 %v388_v4, %v375_v21  ;;  %v901_v61 = vmul.f32 %v3144_v24, %v899_v35  ;;  %v3195_v4 = vld [vmem:[%s2767_s22 + $0x81] sm:$0xff]  ;;  %v938_v54 = vstv %s3171_s21  ;;  %s536_s21 = sadd.s32 3, %s2864_s17 }
  0xb9   : > { %v386_v9 = vpop.permute.xlu0 %385  ;;  %v940_v21 = vmul.f32 %v3195_v4, %v938_v54  ;;  %s3230_s25 = sld [smem:[#allocation2 + %s536_s21]]  ;;  %s1062_s21 = sadd.s32 5, %s3208_s10 }
  0xba   : > { %v3139_v11 = vpop.permute.xlu2 %480  ;;  %v391_v22 = vadd.f32 %v386_v9, %v374_v13  ;;  %v487_v9 = vstv %s3176_s5  ;;  %s3226_s5 = sld [smem:[#allocation2 + %s1008_s23]] }
  0xbc   : > { %v406_v36 = vadd.f32 %v3048_v15, %v391_v22  ;;  %v3167_v15 = vld [vmem:[%s2767_s22 + $0x79] sm:$0xff] }
  0xbd   : > { %856 = vrot.lane.b32.xlu1 %v852_v12, %s2661_s26  ;;  %v924_v55 = vmul.f32 %v3167_v15, %v923_v29  ;;  %v925_v12 = vmul.f32 %v3195_v4, %v923_v29  ;;  %v939_v25 = vmul.f32 %v3167_v15, %v938_v54 }
  0xbe   : > { %v415_v48 = vadd.f32 %v413_v28, %v406_v36  ;;  %v962_v36 = vstv %s3198_s27  ;;  %v499_v28 = vstv %s3203_s11  ;;  %s1023_s27 = sadd.s32 2, %s3208_s10  ;;  %s3246_s11 = sld [smem:[#allocation2 + %s575_s7]] }
  0xbf   : > { %843 = vrot.lane.b32.xlu0 %v838_v6, %s2662_s28  ;;  %v425_v23 = vpop.permute.xlu1 %424  ;;  %v501_v29 = vmul.f32 %v2889_v47, %v499_v28  ;;  %s3257_s17 = sld [smem:[#allocation2 + %s1023_s27]]  ;;  %s1101_s7 = sadd.s32 8, %s3208_s10 }
  0xc0   : > { %858 = vrot.lane.b32.xlu2 %v853_v27, %s2661_s26  ;;  %v430_v51 = vadd.f32 %v425_v23, %v415_v48  ;;  %v500_v48 = vmul.f32 %v2894_v50, %v499_v28  ;;  %v1010_v50 = vstv %s3226_s5  ;;  %s3281_s5 = sld [smem:[#allocation2 + %s1062_s21]] }
  0xc1   : > { %v403_v33 = vpop.permute.xlu0 %402  ;;  %s3301_s27 = sld [smem:[#allocation2 + %s1101_s7]] }
  0xc2   : > { %v407_v16 = vadd.f32 %v403_v33, %v392_v31  ;;  %v3164_v45 = vpop.permute.xlu2 %526  ;;  %v3222_v33 = vld [vmem:[%s2767_s22 + $0x7a] sm:$0xff] }
  0xc4   : > { %v416_v20 = vadd.f32 %v414_v39, %v407_v16  ;;  %v3236_v16 = vld [vmem:[%s2767_s22 + $0x82] sm:$0xff]  ;;  %v577_v54 = vstv %s3246_s11 }
  0xc5   : > { %891 = vrot.lane.b32.xlu1 %v886_v34, %s2662_s28  ;;  %v977_v34 = vstv %s3191_s13  ;;  %s1047_s13 = sadd.s32 4, %s3208_s10 }
  0xc6   : > { %v431_v57 = vadd.f32 %v3073_v18, %v416_v20  ;;  %v978_v43 = vmul.f32 %v3222_v33, %v977_v34  ;;  %v964_v20 = vmul.f32 %v3236_v16, %v962_v36  ;;  %s3251_s23 = sld [smem:[#allocation2 + %s1047_s13]]  ;;  %s1123_s13 = sadd.s32 7, %s2747_s30 }
  0xc7   : > { %889 = vrot.lane.b32.xlu0 %v885_v41, %s2662_s28  ;;  %v442_v49 = vpop.permute.xlu1 %441 }
  0xc8   : > { %904 = vrot.lane.b32.xlu2 %v900_v37, %s2661_s26  ;;  %v446_v5 = vadd.f32 %v442_v49, %v431_v57  ;;  %v3254_v37 = vld [vmem:[%s2767_s22 + $0x98] sm:$0xff] }
  0xc9   : > { %v440_v0 = vpop.permute.xlu0 %439 }
  0xca   : > { %v445_v58 = vadd.f32 %v440_v0, %v430_v51  ;;  %v3189_v3 = vpop.permute.xlu2 %552  ;;  %v455_v13 = vadd.f32 %v453_v40, %v446_v5  ;;  %v538_v51 = vstv %s3230_s25  ;;  %s3286_s25 = sld [smem:[#allocation4 + %s493_s8]]  ;;  %s1086_s8 = sadd.s32 7, %s3208_s10 }
  0xcb   : > { %v539_v5 = vmul.f32 %v2902_v53, %v538_v51  ;;  %s3308_s11 = sld [smem:[#allocation2 + %s1086_s8]]  ;;  %s701_s8 = sadd.s32 6, %s2923_s12 }
  0xcc   : > { %v454_v2 = vadd.f32 %v452_v52, %v445_v58  ;;  %v979_v52 = vmul.f32 %v3236_v16, %v977_v34  ;;  %v1012_v58 = vmul.f32 %v3254_v37, %v1010_v50  ;;  %v1049_v53 = vstv %s3251_s23  ;;  %s3313_s23 = sld [smem:[#allocation2 + %s2923_s12]] }
  0xcd   : > { %928 = vrot.lane.b32.xlu1 %v924_v55, %s2662_s28  ;;  %v3263_v55 = vld [vmem:[%s2767_s22 + $0x90] sm:$0xff] }
  0xce   : > { %v469_v18 = vadd.f32 %v3109_v60, %v454_v2  ;;  %v540_v2 = vmul.f32 %v2917_v59, %v538_v51  ;;  %v1025_v59 = vstv %s3257_s17  ;;  %s3318_s17 = smul.u32 9, %s1123_s13 }
  0xcf   : > { %906 = vrot.lane.b32.xlu0 %v901_v61, %s2661_s26  ;;  %v479_v44 = vpop.permute.xlu1 %478 }
  0xd0   : > { %v484_v60 = vadd.f32 %v479_v44, %v469_v18  ;;  %930 = vrot.lane.b32.xlu2 %v925_v12, %s2662_s28  ;;  %v1011_v18 = vmul.f32 %v3263_v55, %v1010_v50  ;;  %s1134_s21 = sadd.s32 1, %s3318_s17 }
  0xd1   : > { %v466_v6 = vpop.permute.xlu0 %465 }
  0xd2   : > { %v488_v22 = vadd.f32 %v487_v9, %v484_v60  ;;  %v470_v26 = vadd.f32 %v466_v6, %v455_v13  ;;  %v3219_v27 = vpop.permute.xlu2 %589  ;;  %v1026_v13 = vmul.f32 %v3263_v55, %v1025_v59 }
  0xd4   : > { %2399 = vst.msk [vmem:[%s3098_s6 + $0x10] sm:$0xff] %vm364_vm0, %v488_v22  ;;  %v485_v23 = vadd.f32 %v3139_v11, %v470_v26  ;;  %v963_v11 = vmul.f32 %v3222_v33, %v962_v36 }
  0xd5   : > { %945 = vrot.lane.b32.xlu1 %v940_v21, %s2661_s26  ;;  %v578_v21 = vmul.f32 %v2931_v1, %v577_v54  ;;  %v579_v1 = vmul.f32 %v2937_v7, %v577_v54 }
  0xd6   : > { %v489_v31 = vadd.f32 %v487_v9, %v485_v23 }
  0xd7   : > { %943 = vrot.lane.b32.xlu0 %v939_v25, %s2661_s26  ;;  %v514_v39 = vpop.permute.xlu1 %513 }
  0xd8   : > { %2400 = vst.msk [vmem:[%s3098_s6 + $0x18] sm:$0xff] %vm364_vm0, %v489_v31  ;;  %967 = vrot.lane.b32.xlu2 %v963_v11, %s2662_s28  ;;  %v518_v0 = vadd.f32 %v514_v39, %v501_v29  ;;  %v1027_v31 = vmul.f32 %v3254_v37, %v1025_v59  ;;  %v3305_v39 = vld [vmem:[%s2767_s22 + $0x99] sm:$0xff]  ;;  %v1064_v11 = vstv %s3281_s5  ;;  %s662_s5 = sadd.s32 3, %s2923_s12 }
  0xd9   : > { %v512_v41 = vpop.permute.xlu0 %511  ;;  %v1066_v29 = vmul.f32 %v3305_v39, %v1064_v11  ;;  %s3340_s7 = sld [smem:[#allocation2 + %s662_s5]]  ;;  %s1188_s5 = sadd.s32 5, %s3318_s17 }
  0xda   : > { %v3249_v35 = vpop.permute.xlu2 %606  ;;  %v517_v49 = vadd.f32 %v512_v41, %v500_v48  ;;  %v613_v41 = vstv %s3286_s25  ;;  %s3336_s25 = sld [smem:[#allocation2 + %s1134_s21]] }
  0xdc   : > { %v532_v61 = vadd.f32 %v3164_v45, %v517_v49  ;;  %v3277_v45 = vld [vmem:[%s2767_s22 + $0x91] sm:$0xff] }
  0xdd   : > { %982 = vrot.lane.b32.xlu1 %v978_v43, %s2661_s26  ;;  %v1050_v26 = vmul.f32 %v3277_v45, %v1049_v53  ;;  %v1051_v43 = vmul.f32 %v3305_v39, %v1049_v53  ;;  %v1065_v51 = vmul.f32 %v3277_v45, %v1064_v11 }
  0xde   : > { %v541_v44 = vadd.f32 %v539_v5, %v532_v61  ;;  %v1088_v61 = vstv %s3308_s11  ;;  %v625_v5 = vstv %s3313_s23  ;;  %s1149_s11 = sadd.s32 2, %s3318_s17  ;;  %s3356_s23 = sld [smem:[#allocation2 + %s701_s8]] }
  0xdf   : > { %969 = vrot.lane.b32.xlu0 %v964_v20, %s2662_s28  ;;  %v551_v47 = vpop.permute.xlu1 %550  ;;  %v627_v53 = vmul.f32 %v2948_v10, %v625_v5  ;;  %s3367_s12 = sld [smem:[#allocation2 + %s1149_s11]]  ;;  %s1227_s8 = sadd.s32 8, %s3318_s17 }
  0xe0   : > { %984 = vrot.lane.b32.xlu2 %v979_v52, %s2661_s26  ;;  %v556_v6 = vadd.f32 %v551_v47, %v541_v44  ;;  %v626_v44 = vmul.f32 %v2953_v14, %v625_v5  ;;  %v1136_v14 = vstv %s3336_s25  ;;  %s3391_s25 = sld [smem:[#allocation2 + %s1188_s5]] }
  0xe1   : > { %v529_v57 = vpop.permute.xlu0 %528  ;;  %s3411_s11 = sld [smem:[#allocation2 + %s1227_s8]] }
  0xe2   : > { %v533_v40 = vadd.f32 %v529_v57, %v518_v0  ;;  %v3274_v9 = vpop.permute.xlu2 %652  ;;  %v3332_v57 = vld [vmem:[%s2767_s22 + $0x92] sm:$0xff] }
  0xe4   : > { %v542_v12 = vadd.f32 %v540_v2, %v533_v40  ;;  %v3346_v40 = vld [vmem:[%s2767_s22 + $0x9a] sm:$0xff]  ;;  %v703_v11 = vstv %s3356_s23 }
  0xe5   : > { %1017 = vrot.lane.b32.xlu1 %v1012_v58, %s2662_s28  ;;  %v1103_v58 = vstv %s3301_s27  ;;  %s1173_s27 = sadd.s32 4, %s3318_s17 }
  0xe6   : > { %v557_v25 = vadd.f32 %v3189_v3, %v542_v12  ;;  %v1104_v54 = vmul.f32 %v3332_v57, %v1103_v58  ;;  %v1090_v12 = vmul.f32 %v3346_v40, %v1088_v61  ;;  %s3361_s21 = sld [smem:[#allocation2 + %s1173_s27]]  ;;  %s1249_s27 = sadd.s32 8, %s2747_s30 }
  0xe7   : > { %1015 = vrot.lane.b32.xlu0 %v1011_v18, %s2662_s28  ;;  %v568_v60 = vpop.permute.xlu1 %567 }
  0xe8   : > { %1030 = vrot.lane.b32.xlu2 %v1026_v13, %s2661_s26  ;;  %v572_v34 = vadd.f32 %v568_v60, %v557_v25  ;;  %v3364_v13 = vld [vmem:[%s2767_s22 + $0xb0] sm:$0xff] }
  0xe9   : > { %v566_v22 = vpop.permute.xlu0 %565 }
  0xea   : > { %v571_v23 = vadd.f32 %v566_v22, %v556_v6  ;;  %v3299_v28 = vpop.permute.xlu2 %678  ;;  %v581_v48 = vadd.f32 %v579_v1, %v572_v34  ;;  %v664_v6 = vstv %s3340_s7  ;;  %s3396_s7 = sld [smem:[#allocation4 + %s619_s9]]  ;;  %s1212_s9 = sadd.s32 7, %s3318_s17 }
  0xeb   : > { %v665_v34 = vmul.f32 %v2963_v19, %v664_v6  ;;  %s3418_s23 = sld [smem:[#allocation2 + %s1212_s9]]  ;;  %s827_s9 = sadd.s32 6, %s2989_s29 }
  0xec   : > { %v580_v36 = vadd.f32 %v578_v21, %v571_v23  ;;  %v1105_v21 = vmul.f32 %v3346_v40, %v1103_v58  ;;  %v1138_v23 = vmul.f32 %v3364_v13, %v1136_v14  ;;  %v1175_v19 = vstv %s3361_s21  ;;  %s3423_s21 = sld [smem:[#allocation2 + %s2989_s29]] }
  0xed   : > { %1054 = vrot.lane.b32.xlu1 %v1050_v26, %s2662_s28  ;;  %v3373_v26 = vld [vmem:[%s2767_s22 + $0xa8] sm:$0xff] }
  0xee   : > { %v595_v3 = vadd.f32 %v3219_v27, %v580_v36  ;;  %v666_v36 = vmul.f32 %v2983_v30, %v664_v6  ;;  %v1151_v30 = vstv %s3367_s12  ;;  %s3428_s12 = smul.u32 9, %s1249_s27 }
  0xef   : > { %1032 = vrot.lane.b32.xlu0 %v1027_v31, %s2661_s26  ;;  %v605_v7 = vpop.permute.xlu1 %604 }
  0xf0   : > { %v610_v27 = vadd.f32 %v605_v7, %v595_v3  ;;  %1056 = vrot.lane.b32.xlu2 %v1051_v43, %s2662_s28  ;;  %v1137_v3 = vmul.f32 %v3373_v26, %v1136_v14  ;;  %s1260_s5 = sadd.s32 1, %s3428_s12 }
  0xf1   : > { %v592_v20 = vpop.permute.xlu0 %591 }
  0xf2   : > { %v614_v49 = vadd.f32 %v613_v41, %v610_v27  ;;  %v596_v50 = vadd.f32 %v592_v20, %v581_v48  ;;  %v3329_v52 = vpop.permute.xlu2 %715  ;;  %v1152_v48 = vmul.f32 %v3373_v26, %v1151_v30 }
  0xf4   : > { %2407 = vst.msk [vmem:[%s3098_s6 + $0x20] sm:$0xff] %vm364_vm0, %v614_v49  ;;  %v611_v47 = vadd.f32 %v3249_v35, %v596_v50  ;;  %v1089_v35 = vmul.f32 %v3332_v57, %v1088_v61 }
  0xf5   : > { %1071 = vrot.lane.b32.xlu1 %v1066_v29, %s2661_s26  ;;  %v704_v29 = vmul.f32 %v3003_v38, %v703_v11  ;;  %v705_v38 = vmul.f32 %v3012_v46, %v703_v11 }
  0xf6   : > { %v615_v0 = vadd.f32 %v613_v41, %v611_v47 }
  0xf7   : > { %1069 = vrot.lane.b32.xlu0 %v1065_v51, %s2661_s26  ;;  %v640_v2 = vpop.permute.xlu1 %639 }
  0xf8   : > { %2408 = vst.msk [vmem:[%s3098_s6 + $0x28] sm:$0xff] %vm364_vm0, %v615_v0  ;;  %1093 = vrot.lane.b32.xlu2 %v1089_v35, %s2662_s28  ;;  %v644_v22 = vadd.f32 %v640_v2, %v627_v53  ;;  %v1153_v0 = vmul.f32 %v3364_v13, %v1151_v30  ;;  %v3415_v2 = vld [vmem:[%s2767_s22 + $0xb1] sm:$0xff]  ;;  %v1190_v35 = vstv %s3391_s25  ;;  %s788_s25 = sadd.s32 3, %s2989_s29 }
  0xf9   : > { %v638_v18 = vpop.permute.xlu0 %637  ;;  %v1192_v53 = vmul.f32 %v3415_v2, %v1190_v35  ;;  %s3450_s8 = sld [smem:[#allocation2 + %s788_s25]]  ;;  %s1314_s25 = sadd.s32 5, %s3428_s12 }
  0xfa   : > { %v3359_v59 = vpop.permute.xlu2 %732  ;;  %v643_v60 = vadd.f32 %v638_v18, %v626_v44  ;;  %v739_v18 = vstv %s3396_s7  ;;  %s3446_s7 = sld [smem:[#allocation2 + %s1260_s5]] }
  0xfc   : > { %v658_v31 = vadd.f32 %v3274_v9, %v643_v60  ;;  %v3387_v9 = vld [vmem:[%s2767_s22 + $0xa9] sm:$0xff] }
  0xfd   : > { %1108 = vrot.lane.b32.xlu1 %v1104_v54, %s2661_s26  ;;  %v1176_v50 = vmul.f32 %v3387_v9, %v1175_v19  ;;  %v1177_v54 = vmul.f32 %v3415_v2, %v1175_v19  ;;  %v1191_v6 = vmul.f32 %v3387_v9, %v1190_v35 }
  0xfe   : > { %v667_v7 = vadd.f32 %v665_v34, %v658_v31  ;;  %v1214_v31 = vstv %s3418_s23  ;;  %v751_v34 = vstv %s3423_s21  ;;  %s1275_s23 = sadd.s32 2, %s3428_s12  ;;  %s3466_s21 = sld [smem:[#allocation2 + %s827_s9]] }
  0xff   : > { %1095 = vrot.lane.b32.xlu0 %v1090_v12, %s2662_s28  ;;  %v677_v10 = vpop.permute.xlu1 %676  ;;  %v753_v19 = vmul.f32 %v3030_v56, %v751_v34  ;;  %s3477_s29 = sld [smem:[#allocation2 + %s1275_s23]]  ;;  %s1338_s23 = sadd.s32 7, %s3428_s12 }
 0x100   : > { %1110 = vrot.lane.b32.xlu2 %v1105_v21, %s2661_s26  ;;  %v682_v20 = vadd.f32 %v677_v10, %v667_v7  ;;  %v752_v7 = vmul.f32 %v3038_v62, %v751_v34  ;;  %v1262_v62 = vstv %s3446_s7  ;;  %s3501_s7 = sld [smem:[#allocation2 + %s1314_s25]] }
 0x101   : > { %v655_v25 = vpop.permute.xlu0 %654  ;;  %s3533_s25 = sld [smem:[#allocation2 + %s3093_s20]] }
 0x102   : > { %v659_v1 = vadd.f32 %v655_v25, %v644_v22  ;;  %v3384_v41 = vpop.permute.xlu2 %778  ;;  %v3442_v25 = vld [vmem:[%s2767_s22 + $0xaa] sm:$0xff] }
 0x104   : > { %v668_v43 = vadd.f32 %v666_v36, %v659_v1  ;;  %v3456_v1 = vld [vmem:[%s2767_s22 + $0xb2] sm:$0xff]  ;;  %v829_v35 = vstv %s3466_s21  ;;  %s1375_s21 = sadd.s32 9, %s2747_s30 }
 0x105   : > { %1143 = vrot.lane.b32.xlu1 %v1138_v23, %s2662_s28  ;;  %v1229_v23 = vstv %s3411_s11  ;;  %s1299_s11 = sadd.s32 4, %s3428_s12 }
 0x106   : > { %v683_v51 = vadd.f32 %v3299_v28, %v668_v43  ;;  %v1230_v11 = vmul.f32 %v3442_v25, %v1229_v23  ;;  %v1216_v43 = vmul.f32 %v3456_v1, %v1214_v31  ;;  %s3471_s5 = sld [smem:[#allocation2 + %s1299_s11]]  ;;  %s1353_s11 = sadd.s32 8, %s3428_s12 }
 0x107   : > { %1141 = vrot.lane.b32.xlu0 %v1137_v3, %s2662_s28  ;;  %v694_v27 = vpop.permute.xlu1 %693 }
 0x108   : > { %1156 = vrot.lane.b32.xlu2 %v1152_v48, %s2661_s26  ;;  %v698_v58 = vadd.f32 %v694_v27, %v683_v51  ;;  %v3474_v48 = vld [vmem:[%s2767_s22 + $0xc8] sm:$0xff] }
 0x109   : > { %v692_v49 = vpop.permute.xlu0 %691 }
 0x10a   : > { %v697_v47 = vadd.f32 %v692_v49, %v682_v20  ;;  %v3409_v5 = vpop.permute.xlu2 %804  ;;  %v707_v44 = vadd.f32 %v705_v38, %v698_v58  ;;  %v790_v20 = vstv %s3450_s8  ;;  %s4432_s8 = sadd.s32 4, %s2747_s30 }
 0x10b   : > { %v791_v58 = vmul.f32 %v3051_v17, %v790_v20  ;;  %s3506_s9 = sld [smem:[#allocation4 + %s4432_s8]]  ;;  %s3538_s8 = smul.u32 9, %s1375_s21 }
 0x10c   : > { %v706_v61 = vadd.f32 %v704_v29, %v697_v47  ;;  %v1231_v29 = vmul.f32 %v3456_v1, %v1229_v23  ;;  %v1264_v47 = vmul.f32 %v3474_v48, %v1262_v62  ;;  %v1301_v17 = vstv %s3471_s5  ;;  %s3521_s5 = sld [smem:[#allocation2 + %s1353_s11]] }
 0x10d   : > { %1180 = vrot.lane.b32.xlu1 %v1176_v50, %s2662_s28  ;;  %v3483_v50 = vld [vmem:[%s2767_s22 + $0xc0] sm:$0xff] }
 0x10e   : > { %v721_v28 = vadd.f32 %v3329_v52, %v706_v61  ;;  %v792_v61 = vmul.f32 %v3080_v42, %v790_v20  ;;  %v1277_v42 = vstv %s3477_s29  ;;  %s3528_s29 = sld [smem:[#allocation2 + %s1338_s23]] }
 0x10f   : > { %1158 = vrot.lane.b32.xlu0 %v1153_v0, %s2661_s26  ;;  %v731_v46 = vpop.permute.xlu1 %730 }
 0x110   : > { %v736_v52 = vadd.f32 %v731_v46, %v721_v28  ;;  %1182 = vrot.lane.b32.xlu2 %v1177_v54, %s2662_s28  ;;  %v1263_v28 = vmul.f32 %v3483_v50, %v1262_v62 }
 0x111   : > { %v718_v12 = vpop.permute.xlu0 %717 }
 0x112   : > { %v740_v60 = vadd.f32 %v739_v18, %v736_v52  ;;  %v722_v14 = vadd.f32 %v718_v12, %v707_v44  ;;  %v3439_v21 = vpop.permute.xlu2 %841  ;;  %v1278_v44 = vmul.f32 %v3483_v50, %v1277_v42 }
 0x114   : > { %2415 = vst.msk [vmem:[%s3098_s6 + $0x30] sm:$0xff] %vm364_vm0, %v740_v60  ;;  %v737_v10 = vadd.f32 %v3359_v59, %v722_v14  ;;  %v1215_v59 = vmul.f32 %v3442_v25, %v1214_v31 }
 0x115   : > { %1197 = vrot.lane.b32.xlu1 %v1192_v53, %s2661_s26  ;;  %v830_v53 = vmul.f32 %v3112_v63, %v829_v35  ;;  %v831_v63 = vmul.f32 %v3126_v8, %v829_v35 }
 0x116   : > { %v741_v22 = vadd.f32 %v739_v18, %v737_v10 }
 0x117   : > { %1195 = vrot.lane.b32.xlu0 %v1191_v6, %s2661_s26  ;;  %v766_v36 = vpop.permute.xlu1 %765 }
 0x118   : > { %2416 = vst.msk [vmem:[%s3098_s6 + $0x38] sm:$0xff] %vm364_vm0, %v741_v22  ;;  %1219 = vrot.lane.b32.xlu2 %v1215_v59, %s2662_s28  ;;  %v770_v49 = vadd.f32 %v766_v36, %v753_v19  ;;  %v1279_v22 = vmul.f32 %v3474_v48, %v1277_v42  ;;  %v3525_v36 = vld [vmem:[%s2767_s22 + $0xc9] sm:$0xff]  ;;  %v1316_v59 = vstv %s3501_s7  ;;  %s1386_s7 = sadd.s32 1, %s3538_s8 }
 0x119   : > { %v764_v3 = vpop.permute.xlu0 %763  ;;  %v1318_v19 = vmul.f32 %v3525_v36, %v1316_v59  ;;  %s3556_s11 = sld [smem:[#allocation2 + %s1386_s7]] }
 0x11a   : > { %v3469_v30 = vpop.permute.xlu2 %858  ;;  %v769_v27 = vadd.f32 %v764_v3, %v752_v7  ;;  %v865_v3 = vstv %s3506_s9  ;;  %s914_s9 = sadd.s32 3, %s3093_s20 }
 0x11b   : > { %s3560_s23 = sld [smem:[#allocation2 + %s914_s9]] }
 0x11c   : > { %v784_v0 = vadd.f32 %v3384_v41, %v769_v27  ;;  %v3497_v41 = vld [vmem:[%s2767_s22 + $0xc1] sm:$0xff] }
 0x11d   : > { %1234 = vrot.lane.b32.xlu1 %v1230_v11, %s2661_s26  ;;  %v1302_v14 = vmul.f32 %v3497_v41, %v1301_v17  ;;  %v1303_v11 = vmul.f32 %v3525_v36, %v1301_v17  ;;  %v1317_v20 = vmul.f32 %v3497_v41, %v1316_v59 }
 0x11e   : > { %v793_v46 = vadd.f32 %v791_v58, %v784_v0  ;;  %v1340_v0 = vstv %s3528_s29  ;;  %v877_v58 = vstv %s3533_s25  ;;  %s1425_s29 = sadd.s32 4, %s3538_s8  ;;  %s1401_s25 = sadd.s32 2, %s3538_s8 }
 0x11f   : > { %1221 = vrot.lane.b32.xlu0 %v1216_v43, %s2662_s28  ;;  %v803_v56 = vpop.permute.xlu1 %802  ;;  %v879_v17 = vmul.f32 %v3144_v24, %v877_v58  ;;  %s3581_s9 = sld [smem:[#allocation2 + %s1425_s29]]  ;;  %s1479_s29 = sadd.s32 8, %s3538_s8 }
 0x120   : > { %1236 = vrot.lane.b32.xlu2 %v1231_v29, %s2661_s26  ;;  %v808_v12 = vadd.f32 %v803_v56, %v793_v46  ;;  %v878_v46 = vmul.f32 %v3153_v32, %v877_v58  ;;  %v1388_v32 = vstv %s3556_s11  ;;  %s1440_s11 = sadd.s32 5, %s3538_s8 }
 0x121   : > { %v781_v51 = vpop.permute.xlu0 %780 }
 0x122   : > { %v785_v38 = vadd.f32 %v781_v51, %v770_v49  ;;  %v3494_v18 = vpop.permute.xlu2 %904  ;;  %v3552_v51 = vld [vmem:[%s2767_s22 + $0xc2] sm:$0xff] }
 0x124   : > { %v794_v54 = vadd.f32 %v792_v61, %v785_v38  ;;  %v3566_v38 = vld [vmem:[%s2767_s22 + $0xca] sm:$0xff] }
 0x125   : > { %1269 = vrot.lane.b32.xlu1 %v1264_v47, %s2662_s28  ;;  %v1355_v47 = vstv %s3521_s5  ;;  %s953_s5 = sadd.s32 6, %s3093_s20  ;;  %s3587_s20 = sld [smem:[#allocation2 + %s1401_s25]] }
 0x126   : > { %v809_v6 = vadd.f32 %v3409_v5, %v794_v54  ;;  %v1356_v35 = vmul.f32 %v3552_v51, %v1355_v47  ;;  %v1342_v54 = vmul.f32 %v3566_v38, %v1340_v0  ;;  %s3576_s7 = sld [smem:[#allocation2 + %s953_s5]]  ;;  %s1501_s25 = sadd.s32 10, %s2747_s30 }
 0x127   : > { %1267 = vrot.lane.b32.xlu0 %v1263_v28, %s2662_s28  ;;  %v820_v52 = vpop.permute.xlu1 %819  ;;  %s3616_s5 = sld [smem:[#allocation4 + %s871_s24]]  ;;  %s1464_s24 = sadd.s32 7, %s3538_s8 }
 0x128   : > { %1282 = vrot.lane.b32.xlu2 %v1278_v44, %s2661_s26  ;;  %v824_v23 = vadd.f32 %v820_v52, %v809_v6  ;;  %v3584_v44 = vld [vmem:[%s2767_s22 + $0xe0] sm:$0xff] }
 0x129   : > { %v818_v60 = vpop.permute.xlu0 %817 }
 0x12a   : > { %v823_v10 = vadd.f32 %v818_v60, %v808_v12  ;;  %v3519_v34 = vpop.permute.xlu2 %930  ;;  %v833_v7 = vadd.f32 %v831_v63, %v824_v23  ;;  %v916_v12 = vstv %s3560_s23  ;;  %s3611_s23 = sld [smem:[#allocation2 + %s1440_s11]]  ;;  %s3648_s11 = smul.u32 9, %s1501_s25 }
 0x12b   : > { %v917_v23 = vmul.f32 %v3167_v15, %v916_v12  ;;  %v1427_v15 = vstv %s3581_s9  ;;  %s3638_s9 = sld [smem:[#allocation2 + %s1464_s24]] }
 0x12c   : > { %v832_v31 = vadd.f32 %v830_v53, %v823_v10  ;;  %v1357_v53 = vmul.f32 %v3566_v38, %v1355_v47  ;;  %v1390_v10 = vmul.f32 %v3584_v44, %v1388_v32  ;;  %v955_v59 = vstv %s3576_s7  ;;  %s3631_s7 = sld [smem:[#allocation2 + %s1479_s29]] }
 0x12d   : > { %1306 = vrot.lane.b32.xlu1 %v1302_v14, %s2662_s28  ;;  %v3593_v14 = vld [vmem:[%s2767_s22 + $0xd8] sm:$0xff] }
 0x12e   : > { %v847_v5 = vadd.f32 %v3439_v21, %v832_v31  ;;  %v918_v31 = vmul.f32 %v3195_v4, %v916_v12  ;;  %v1403_v4 = vstv %s3587_s20  ;;  %s3643_s20 = sld [smem:[#allocation2 + %s3208_s10]] }
 0x12f   : > { %1284 = vrot.lane.b32.xlu0 %v1279_v22, %s2661_s26  ;;  %v857_v8 = vpop.permute.xlu1 %856 }
 0x130   : > { %v862_v21 = vadd.f32 %v857_v8, %v847_v5  ;;  %1308 = vrot.lane.b32.xlu2 %v1303_v11, %s2662_s28  ;;  %v1389_v5 = vmul.f32 %v3593_v14, %v1388_v32 }
 0x131   : > { %v844_v43 = vpop.permute.xlu0 %843 }
 0x132   : > { %v866_v27 = vadd.f32 %v865_v3, %v862_v21  ;;  %v848_v62 = vadd.f32 %v844_v43, %v833_v7  ;;  %v3549_v29 = vpop.permute.xlu2 %967  ;;  %v1404_v7 = vmul.f32 %v3593_v14, %v1403_v4 }
 0x134   : > { %2423 = vst.msk [vmem:[%s3098_s6 + $0x40] sm:$0xff] %vm364_vm0, %v866_v27  ;;  %v863_v56 = vadd.f32 %v3469_v30, %v848_v62  ;;  %v1341_v30 = vmul.f32 %v3552_v51, %v1340_v0 }
 0x135   : > { %1323 = vrot.lane.b32.xlu1 %v1318_v19, %s2661_s26  ;;  %v956_v19 = vmul.f32 %v3222_v33, %v955_v59  ;;  %v957_v33 = vmul.f32 %v3236_v16, %v955_v59 }
 0x136   : > { %v867_v49 = vadd.f32 %v865_v3, %v863_v56 }
 0x137   : > { %1321 = vrot.lane.b32.xlu0 %v1317_v20, %s2661_s26  ;;  %v892_v61 = vpop.permute.xlu1 %891 }
 0x138   : > { %2424 = vst.msk [vmem:[%s3098_s6 + $0x48] sm:$0xff] %vm364_vm0, %v867_v49  ;;  %1345 = vrot.lane.b32.xlu2 %v1341_v30, %s2662_s28  ;;  %v896_v60 = vadd.f32 %v892_v61, %v879_v17  ;;  %v1405_v49 = vmul.f32 %v3584_v44, %v1403_v4  ;;  %v3635_v61 = vld [vmem:[%s2767_s22 + $0xe1] sm:$0xff]  ;;  %v1442_v30 = vstv %s3611_s23  ;;  %s1512_s23 = sadd.s32 1, %s3648_s11 }
 0x139   : > { %v890_v28 = vpop.permute.xlu0 %889  ;;  %v1444_v17 = vmul.f32 %v3635_v61, %v1442_v30  ;;  %s3666_s29 = sld [smem:[#allocation2 + %s1512_s23]] }
 0x13a   : > { %v3579_v42 = vpop.permute.xlu2 %984  ;;  %v895_v52 = vadd.f32 %v890_v28, %v878_v46  ;;  %v991_v28 = vstv %s3616_s5  ;;  %s1040_s5 = sadd.s32 3, %s3208_s10 }
 0x13b   : > { %s3670_s24 = sld [smem:[#allocation2 + %s1040_s5]] }
 0x13c   : > { %v910_v22 = vadd.f32 %v3494_v18, %v895_v52  ;;  %v3607_v18 = vld [vmem:[%s2767_s22 + $0xd9] sm:$0xff] }
 0x13d   : > { %1360 = vrot.lane.b32.xlu1 %v1356_v35, %s2661_s26  ;;  %v1428_v62 = vmul.f32 %v3607_v18, %v1427_v15  ;;  %v1429_v35 = vmul.f32 %v3635_v61, %v1427_v15  ;;  %v1443_v12 = vmul.f32 %v3607_v18, %v1442_v30 }
 0x13e   : > { %v919_v8 = vadd.f32 %v917_v23, %v910_v22  ;;  %v1466_v22 = vstv %s3638_s9  ;;  %v1003_v23 = vstv %s3643_s20  ;;  %s1551_s9 = sadd.s32 4, %s3648_s11  ;;  %s1527_s20 = sadd.s32 2, %s3648_s11 }
 0x13f   : > { %1347 = vrot.lane.b32.xlu0 %v1342_v54, %s2662_s28  ;;  %v929_v24 = vpop.permute.xlu1 %928  ;;  %v1005_v15 = vmul.f32 %v3254_v37, %v1003_v23  ;;  %s3691_s5 = sld [smem:[#allocation2 + %s1551_s9]]  ;;  %s1605_s9 = sadd.s32 8, %s3648_s11 }
 0x140   : > { %1362 = vrot.lane.b32.xlu2 %v1357_v53, %s2661_s26  ;;  %v934_v43 = vadd.f32 %v929_v24, %v919_v8  ;;  %v1004_v8 = vmul.f32 %v3263_v55, %v1003_v23  ;;  %v1514_v55 = vstv %s3666_s29  ;;  %s1566_s29 = sadd.s32 5, %s3648_s11 }
 0x141   : > { %v907_v6 = vpop.permute.xlu0 %906 }
 0x142   : > { %v911_v63 = vadd.f32 %v907_v6, %v896_v60  ;;  %v3604_v3 = vpop.permute.xlu2 %1030  ;;  %v3662_v6 = vld [vmem:[%s2767_s22 + $0xda] sm:$0xff] }
 0x144   : > { %v920_v11 = vadd.f32 %v918_v31, %v911_v63  ;;  %v3676_v63 = vld [vmem:[%s2767_s22 + $0xe2] sm:$0xff] }
 0x145   : > { %1395 = vrot.lane.b32.xlu1 %v1390_v10, %s2662_s28  ;;  %v1481_v10 = vstv %s3631_s7  ;;  %s1079_s7 = sadd.s32 6, %s3208_s10  ;;  %s3697_s10 = sld [smem:[#allocation2 + %s1527_s20]] }
 0x146   : > { %v935_v20 = vadd.f32 %v3519_v34, %v920_v11  ;;  %v1482_v59 = vmul.f32 %v3662_v6, %v1481_v10  ;;  %v1468_v11 = vmul.f32 %v3676_v63, %v1466_v22  ;;  %s3686_s23 = sld [smem:[#allocation2 + %s1079_s7]]  ;;  %s1627_s20 = sadd.s32 11, %s2747_s30 }
 0x147   : > { %1393 = vrot.lane.b32.xlu0 %v1389_v5, %s2662_s28  ;;  %v946_v21 = vpop.permute.xlu1 %945  ;;  %s3726_s7 = sld [smem:[#allocation4 + %s997_s4]]  ;;  %s1590_s4 = sadd.s32 7, %s3648_s11 }
 0x148   : > { %1408 = vrot.lane.b32.xlu2 %v1404_v7, %s2661_s26  ;;  %v950_v47 = vadd.f32 %v946_v21, %v935_v20  ;;  %v3694_v7 = vld [vmem:[%s2767_s22 + $0xf8] sm:$0xff] }
 0x149   : > { %v944_v27 = vpop.permute.xlu0 %943 }
 0x14a   : > { %v949_v56 = vadd.f32 %v944_v27, %v934_v43  ;;  %v3629_v58 = vpop.permute.xlu2 %1056  ;;  %v959_v46 = vadd.f32 %v957_v33, %v950_v47  ;;  %v1042_v43 = vstv %s3670_s24  ;;  %s3721_s24 = sld [smem:[#allocation2 + %s1566_s29]]  ;;  %s3758_s29 = smul.u32 9, %s1627_s20 }
 0x14b   : > { %v1043_v47 = vmul.f32 %v3277_v45, %v1042_v43  ;;  %v1553_v45 = vstv %s3691_s5  ;;  %s3748_s5 = sld [smem:[#allocation2 + %s1590_s4]] }
 0x14c   : > { %v958_v0 = vadd.f32 %v956_v19, %v949_v56  ;;  %v1483_v19 = vmul.f32 %v3676_v63, %v1481_v10  ;;  %v1516_v56 = vmul.f32 %v3694_v7, %v1514_v55  ;;  %v1081_v30 = vstv %s3686_s23  ;;  %s3741_s23 = sld [smem:[#allocation2 + %s1605_s9]] }
 0x14d   : > { %1432 = vrot.lane.b32.xlu1 %v1428_v62, %s2662_s28  ;;  %v3703_v62 = vld [vmem:[%s2767_s22 + $0xf0] sm:$0xff] }
 0x14e   : > { %v973_v34 = vadd.f32 %v3549_v29, %v958_v0  ;;  %v1044_v0 = vmul.f32 %v3305_v39, %v1042_v43  ;;  %v1529_v39 = vstv %s3697_s10  ;;  %s3753_s10 = sld [smem:[#allocation2 + %s3318_s17]] }
 0x14f   : > { %1410 = vrot.lane.b32.xlu0 %v1405_v49, %s2661_s26  ;;  %v983_v16 = vpop.permute.xlu1 %982 }
 0x150   : > { %v988_v29 = vadd.f32 %v983_v16, %v973_v34  ;;  %1434 = vrot.lane.b32.xlu2 %v1429_v35, %s2662_s28  ;;  %v1515_v34 = vmul.f32 %v3703_v62, %v1514_v55 }
 0x151   : > { %v970_v54 = vpop.permute.xlu0 %969 }
 0x152   : > { %v992_v52 = vadd.f32 %v991_v28, %v988_v29  ;;  %v974_v32 = vadd.f32 %v970_v54, %v959_v46  ;;  %v3659_v53 = vpop.permute.xlu2 %1093  ;;  %v1530_v46 = vmul.f32 %v3703_v62, %v1529_v39 }
 0x154   : > { %2431 = vst.msk [vmem:[%s3098_s6 + $0x50] sm:$0xff] %vm364_vm0, %v992_v52  ;;  %v989_v24 = vadd.f32 %v3579_v42, %v974_v32  ;;  %v1467_v42 = vmul.f32 %v3662_v6, %v1466_v22 }
 0x155   : > { %1449 = vrot.lane.b32.xlu1 %v1444_v17, %s2661_s26  ;;  %v1082_v17 = vmul.f32 %v3332_v57, %v1081_v30  ;;  %v1083_v57 = vmul.f32 %v3346_v40, %v1081_v30 }
 0x156   : > { %v993_v60 = vadd.f32 %v991_v28, %v989_v24 }
 0x157   : > { %1447 = vrot.lane.b32.xlu0 %v1443_v12, %s2661_s26  ;;  %v1018_v31 = vpop.permute.xlu1 %1017 }
 0x158   : > { %2432 = vst.msk [vmem:[%s3098_s6 + $0x58] sm:$0xff] %vm364_vm0, %v993_v60  ;;  %1471 = vrot.lane.b32.xlu2 %v1467_v42, %s2662_s28  ;;  %v1022_v27 = vadd.f32 %v1018_v31, %v1005_v15  ;;  %v1531_v60 = vmul.f32 %v3694_v7, %v1529_v39  ;;  %v3745_v31 = vld [vmem:[%s2767_s22 + $0xf9] sm:$0xff]  ;;  %v1568_v42 = vstv %s3721_s24  ;;  %s1638_s24 = sadd.s32 1, %s3758_s29 }
 0x159   : > { %v1016_v5 = vpop.permute.xlu0 %1015  ;;  %v1570_v15 = vmul.f32 %v3745_v31, %v1568_v42  ;;  %s3776_s9 = sld [smem:[#allocation2 + %s1638_s24]] }
 0x15a   : > { %v3689_v4 = vpop.permute.xlu2 %1110  ;;  %v1021_v21 = vadd.f32 %v1016_v5, %v1004_v8  ;;  %v1117_v5 = vstv %s3726_s7  ;;  %s1166_s7 = sadd.s32 3, %s3318_s17 }
 0x15b   : > { %s3780_s4 = sld [smem:[#allocation2 + %s1166_s7]] }
 0x15c   : > { %v1036_v49 = vadd.f32 %v3604_v3, %v1021_v21  ;;  %v3717_v3 = vld [vmem:[%s2767_s22 + $0xf1] sm:$0xff] }
 0x15d   : > { %1486 = vrot.lane.b32.xlu1 %v1482_v59, %s2661_s26  ;;  %v1554_v32 = vmul.f32 %v3717_v3, %v1553_v45  ;;  %v1555_v59 = vmul.f32 %v3745_v31, %v1553_v45  ;;  %v1569_v43 = vmul.f32 %v3717_v3, %v1568_v42 }
 0x15e   : > { %v1045_v16 = vadd.f32 %v1043_v47, %v1036_v49  ;;  %v1592_v49 = vstv %s3748_s5  ;;  %v1129_v47 = vstv %s3753_s10  ;;  %s1677_s5 = sadd.s32 4, %s3758_s29  ;;  %s1653_s10 = sadd.s32 2, %s3758_s29 }
 0x15f   : > { %1473 = vrot.lane.b32.xlu0 %v1468_v11, %s2662_s28  ;;  %v1055_v37 = vpop.permute.xlu1 %1054  ;;  %v1131_v45 = vmul.f32 %v3364_v13, %v1129_v47  ;;  %s3801_s7 = sld [smem:[#allocation2 + %s1677_s5]]  ;;  %s1731_s5 = sadd.s32 8, %s3758_s29 }
 0x160   : > { %1488 = vrot.lane.b32.xlu2 %v1483_v19, %s2661_s26  ;;  %v1060_v54 = vadd.f32 %v1055_v37, %v1045_v16  ;;  %v1130_v16 = vmul.f32 %v3373_v26, %v1129_v47  ;;  %v1640_v26 = vstv %s3776_s9  ;;  %s1692_s9 = sadd.s32 5, %s3758_s29 }
 0x161   : > { %v1033_v20 = vpop.permute.xlu0 %1032 }
 0x162   : > { %v1037_v33 = vadd.f32 %v1033_v20, %v1022_v27  ;;  %v3714_v28 = vpop.permute.xlu2 %1156  ;;  %v3772_v20 = vld [vmem:[%s2767_s22 + $0xf2] sm:$0xff] }
 0x164   : > { %v1046_v35 = vadd.f32 %v1044_v0, %v1037_v33  ;;  %v3786_v33 = vld [vmem:[%s2767_s22 + $0xfa] sm:$0xff] }
 0x165   : > { %1521 = vrot.lane.b32.xlu1 %v1516_v56, %s2662_s28  ;;  %v1607_v56 = vstv %s3741_s23  ;;  %s1205_s23 = sadd.s32 6, %s3318_s17  ;;  %s3807_s17 = sld [smem:[#allocation2 + %s1653_s10]] }
 0x166   : > { %v1061_v12 = vadd.f32 %v3629_v58, %v1046_v35  ;;  %v1608_v30 = vmul.f32 %v3772_v20, %v1607_v56  ;;  %v1594_v35 = vmul.f32 %v3786_v33, %v1592_v49  ;;  %s3796_s24 = sld [smem:[#allocation2 + %s1205_s23]]  ;;  %s1753_s10 = sadd.s32 12, %s2747_s30 }
 0x167   : > { %1519 = vrot.lane.b32.xlu0 %v1515_v34, %s2662_s28  ;;  %v1072_v29 = vpop.permute.xlu1 %1071  ;;  %s3836_s23 = sld [smem:[#allocation4 + %s1123_s13]]  ;;  %s1716_s13 = sadd.s32 7, %s3758_s29 }
 0x168   : > { %1534 = vrot.lane.b32.xlu2 %v1530_v46, %s2661_s26  ;;  %v1076_v10 = vadd.f32 %v1072_v29, %v1061_v12  ;;  %v3804_v46 = vld [vmem:[%s2767_s22 + $0x110] sm:$0xff] }
 0x169   : > { %v1070_v52 = vpop.permute.xlu0 %1069 }
 0x16a   : > { %v1075_v24 = vadd.f32 %v1070_v52, %v1060_v54  ;;  %v3739_v23 = vpop.permute.xlu2 %1182  ;;  %v1085_v8 = vadd.f32 %v1083_v57, %v1076_v10  ;;  %v1168_v54 = vstv %s3780_s4  ;;  %s3831_s4 = sld [smem:[#allocation2 + %s1692_s9]]  ;;  %s3868_s9 = smul.u32 9, %s1753_s10 }
 0x16b   : > { %v1169_v10 = vmul.f32 %v3387_v9, %v1168_v54  ;;  %v1679_v9 = vstv %s3801_s7  ;;  %s3858_s7 = sld [smem:[#allocation2 + %s1716_s13]] }
 0x16c   : > { %v1084_v22 = vadd.f32 %v1082_v17, %v1075_v24  ;;  %v1609_v17 = vmul.f32 %v3786_v33, %v1607_v56  ;;  %v1642_v24 = vmul.f32 %v3804_v46, %v1640_v26  ;;  %v1207_v42 = vstv %s3796_s24  ;;  %s3851_s24 = sld [smem:[#allocation2 + %s1731_s5]] }
 0x16d   : > { %1558 = vrot.lane.b32.xlu1 %v1554_v32, %s2662_s28  ;;  %v3813_v32 = vld [vmem:[%s2767_s22 + $0x108] sm:$0xff] }
 0x16e   : > { %v1099_v58 = vadd.f32 %v3659_v53, %v1084_v22  ;;  %v1170_v22 = vmul.f32 %v3415_v2, %v1168_v54  ;;  %v1655_v2 = vstv %s3807_s17  ;;  %s3863_s17 = sld [smem:[#allocation2 + %s3428_s12]] }
 0x16f   : > { %1536 = vrot.lane.b32.xlu0 %v1531_v60, %s2661_s26  ;;  %v1109_v40 = vpop.permute.xlu1 %1108 }
 0x170   : > { %v1114_v53 = vadd.f32 %v1109_v40, %v1099_v58  ;;  %1560 = vrot.lane.b32.xlu2 %v1555_v59, %s2662_s28  ;;  %v1641_v58 = vmul.f32 %v3813_v32, %v1640_v26 }
 0x171   : > { %v1096_v11 = vpop.permute.xlu0 %1095 }
 0x172   : > { %v1118_v21 = vadd.f32 %v1117_v5, %v1114_v53  ;;  %v1100_v55 = vadd.f32 %v1096_v11, %v1085_v8  ;;  %v3769_v19 = vpop.permute.xlu2 %1219  ;;  %v1656_v8 = vmul.f32 %v3813_v32, %v1655_v2 }
 0x174   : > { %2439 = vst.msk [vmem:[%s3098_s6 + $0x60] sm:$0xff] %vm364_vm0, %v1118_v21  ;;  %v1115_v37 = vadd.f32 %v3689_v4, %v1100_v55  ;;  %v1593_v4 = vmul.f32 %v3772_v20, %v1592_v49 }
 0x175   : > { %1575 = vrot.lane.b32.xlu1 %v1570_v15, %s2661_s26  ;;  %v1208_v15 = vmul.f32 %v3442_v25, %v1207_v42  ;;  %v1209_v25 = vmul.f32 %v3456_v1, %v1207_v42 }
 0x176   : > { %v1119_v27 = vadd.f32 %v1117_v5, %v1115_v37 }
 0x177   : > { %1573 = vrot.lane.b32.xlu0 %v1569_v43, %s2661_s26  ;;  %v1144_v0 = vpop.permute.xlu1 %1143 }
 0x178   : > { %2440 = vst.msk [vmem:[%s3098_s6 + $0x68] sm:$0xff] %vm364_vm0, %v1119_v27  ;;  %1597 = vrot.lane.b32.xlu2 %v1593_v4, %s2662_s28  ;;  %v1148_v52 = vadd.f32 %v1144_v0, %v1131_v45  ;;  %v1657_v27 = vmul.f32 %v3804_v46, %v1655_v2  ;;  %v3855_v0 = vld [vmem:[%s2767_s22 + $0x111] sm:$0xff]  ;;  %v1694_v4 = vstv %s3831_s4  ;;  %s1764_s4 = sadd.s32 1, %s3868_s9 }
 0x179   : > { %v1142_v34 = vpop.permute.xlu0 %1141  ;;  %v1696_v45 = vmul.f32 %v3855_v0, %v1694_v4  ;;  %s3886_s5 = sld [smem:[#allocation2 + %s1764_s4]] }
 0x17a   : > { %v3799_v39 = vpop.permute.xlu2 %1236  ;;  %v1147_v29 = vadd.f32 %v1142_v34, %v1130_v16  ;;  %v1243_v34 = vstv %s3836_s23  ;;  %s1292_s23 = sadd.s32 3, %s3428_s12 }
 0x17b   : > { %s3890_s13 = sld [smem:[#allocation2 + %s1292_s23]] }
 0x17c   : > { %v1162_v60 = vadd.f32 %v3714_v28, %v1147_v29  ;;  %v3827_v28 = vld [vmem:[%s2767_s22 + $0x109] sm:$0xff] }
 0x17d   : > { %1612 = vrot.lane.b32.xlu1 %v1608_v30, %s2661_s26  ;;  %v1680_v55 = vmul.f32 %v3827_v28, %v1679_v9  ;;  %v1681_v30 = vmul.f32 %v3855_v0, %v1679_v9  ;;  %v1695_v54 = vmul.f32 %v3827_v28, %v1694_v4 }
 0x17e   : > { %v1171_v40 = vadd.f32 %v1169_v10, %v1162_v60  ;;  %v1718_v60 = vstv %s3858_s7  ;;  %v1255_v10 = vstv %s3863_s17  ;;  %s1803_s7 = sadd.s32 4, %s3868_s9  ;;  %s1779_s17 = sadd.s32 2, %s3868_s9 }
 0x17f   : > { %1599 = vrot.lane.b32.xlu0 %v1594_v35, %s2662_s28  ;;  %v1181_v13 = vpop.permute.xlu1 %1180  ;;  %v1257_v9 = vmul.f32 %v3474_v48, %v1255_v10  ;;  %s3911_s23 = sld [smem:[#allocation2 + %s1803_s7]]  ;;  %s1857_s7 = sadd.s32 8, %s3868_s9 }
 0x180   : > { %1614 = vrot.lane.b32.xlu2 %v1609_v17, %s2661_s26  ;;  %v1186_v11 = vadd.f32 %v1181_v13, %v1171_v40  ;;  %v1256_v40 = vmul.f32 %v3483_v50, %v1255_v10  ;;  %v1766_v50 = vstv %s3886_s5  ;;  %s1818_s5 = sadd.s32 5, %s3868_s9 }
 0x181   : > { %v1159_v12 = vpop.permute.xlu0 %1158 }
 0x182   : > { %v1163_v57 = vadd.f32 %v1159_v12, %v1148_v52  ;;  %v3824_v5 = vpop.permute.xlu2 %1282  ;;  %v3882_v12 = vld [vmem:[%s2767_s22 + $0x10a] sm:$0xff] }
 0x184   : > { %v1172_v59 = vadd.f32 %v1170_v22, %v1163_v57  ;;  %v3896_v57 = vld [vmem:[%s2767_s22 + $0x112] sm:$0xff] }
 0x185   : > { %1647 = vrot.lane.b32.xlu1 %v1642_v24, %s2662_s28  ;;  %v1733_v24 = vstv %s3851_s24  ;;  %s1331_s24 = sadd.s32 6, %s3428_s12  ;;  %s3917_s12 = sld [smem:[#allocation2 + %s1779_s17]] }
 0x186   : > { %v1187_v43 = vadd.f32 %v3739_v23, %v1172_v59  ;;  %v1734_v42 = vmul.f32 %v3882_v12, %v1733_v24  ;;  %v1720_v59 = vmul.f32 %v3896_v57, %v1718_v60  ;;  %s3906_s4 = sld [smem:[#allocation2 + %s1331_s24]]  ;;  %s4429_s17 = sadd.s32 13, %s2747_s30 }
 0x187   : > { %1645 = vrot.lane.b32.xlu0 %v1641_v58, %s2662_s28  ;;  %v1198_v53 = vpop.permute.xlu1 %1197  ;;  %s3946_s24 = sld [smem:[#allocation4 + %s1249_s27]]  ;;  %s1842_s27 = sadd.s32 7, %s3868_s9 }
 0x188   : > { %1660 = vrot.lane.b32.xlu2 %v1656_v8, %s2661_s26  ;;  %v1202_v56 = vadd.f32 %v1198_v53, %v1187_v43  ;;  %v3914_v8 = vld [vmem:[%s2767_s22 + $0x128] sm:$0xff] }
 0x189   : > { %v1196_v21 = vpop.permute.xlu0 %1195 }
 0x18a   : > { %v1201_v37 = vadd.f32 %v1196_v21, %v1186_v11  ;;  %v3849_v47 = vpop.permute.xlu2 %1308  ;;  %v1211_v16 = vadd.f32 %v1209_v25, %v1202_v56  ;;  %v1294_v11 = vstv %s3890_s13  ;;  %s3941_s13 = sld [smem:[#allocation2 + %s1818_s5]]  ;;  %s3978_s5 = smul.u32 9, %s4429_s17 }
 0x18b   : > { %v1295_v56 = vmul.f32 %v3497_v41, %v1294_v11  ;;  %v1805_v41 = vstv %s3911_s23  ;;  %s3968_s23 = sld [smem:[#allocation2 + %s1842_s27]] }
 0x18c   : > { %v1210_v49 = vadd.f32 %v1208_v15, %v1201_v37  ;;  %v1735_v15 = vmul.f32 %v3896_v57, %v1733_v24  ;;  %v1768_v37 = vmul.f32 %v3914_v8, %v1766_v50  ;;  %v1333_v4 = vstv %s3906_s4  ;;  %s3961_s4 = sld [smem:[#allocation2 + %s1857_s7]] }
 0x18d   : > { %1684 = vrot.lane.b32.xlu1 %v1680_v55, %s2662_s28  ;;  %v3923_v55 = vld [vmem:[%s2767_s22 + $0x120] sm:$0xff] }
 0x18e   : > { %v1225_v23 = vadd.f32 %v3769_v19, %v1210_v49  ;;  %v1296_v49 = vmul.f32 %v3525_v36, %v1294_v11  ;;  %v1781_v36 = vstv %s3917_s12  ;;  %s3973_s12 = sld [smem:[#allocation2 + %s3538_s8]] }
 0x18f   : > { %1662 = vrot.lane.b32.xlu0 %v1657_v27, %s2661_s26  ;;  %v1235_v1 = vpop.permute.xlu1 %1234 }
 0x190   : > { %v1240_v19 = vadd.f32 %v1235_v1, %v1225_v23  ;;  %1686 = vrot.lane.b32.xlu2 %v1681_v30, %s2662_s28  ;;  %v1767_v23 = vmul.f32 %v3923_v55, %v1766_v50 }
 0x191   : > { %v1222_v35 = vpop.permute.xlu0 %1221 }
 0x192   : > { %v1244_v29 = vadd.f32 %v1243_v34, %v1240_v19  ;;  %v1226_v26 = vadd.f32 %v1222_v35, %v1211_v16  ;;  %v3879_v17 = vpop.permute.xlu2 %1345  ;;  %v1782_v16 = vmul.f32 %v3923_v55, %v1781_v36 }
 0x194   : > { %2447 = vst.msk [vmem:[%s3098_s6 + $0x70] sm:$0xff] %vm364_vm0, %v1244_v29  ;;  %v1241_v13 = vadd.f32 %v3799_v39, %v1226_v26  ;;  %v1719_v39 = vmul.f32 %v3882_v12, %v1718_v60 }
 0x195   : > { %1701 = vrot.lane.b32.xlu1 %v1696_v45, %s2661_s26  ;;  %v1334_v45 = vmul.f32 %v3552_v51, %v1333_v4  ;;  %v1335_v51 = vmul.f32 %v3566_v38, %v1333_v4 }
 0x196   : > { %v1245_v52 = vadd.f32 %v1243_v34, %v1241_v13 }
 0x197   : > { %1699 = vrot.lane.b32.xlu0 %v1695_v54, %s2661_s26  ;;  %v1270_v22 = vpop.permute.xlu1 %1269 }
 0x198   : > { %2448 = vst.msk [vmem:[%s3098_s6 + $0x78] sm:$0xff] %vm364_vm0, %v1245_v52  ;;  %1723 = vrot.lane.b32.xlu2 %v1719_v39, %s2662_s28  ;;  %v1274_v21 = vadd.f32 %v1270_v22, %v1257_v9  ;;  %v1783_v52 = vmul.f32 %v3914_v8, %v1781_v36  ;;  %v3965_v22 = vld [vmem:[%s2767_s22 + $0x129] sm:$0xff]  ;;  %v1820_v39 = vstv %s3941_s13  ;;  %s1890_s13 = sadd.s32 1, %s3978_s5 }
 0x199   : > { %v1268_v58 = vpop.permute.xlu0 %1267  ;;  %v1822_v9 = vmul.f32 %v3965_v22, %v1820_v39  ;;  %s3996_s7 = sld [smem:[#allocation2 + %s1890_s13]] }
 0x19a   : > { %v3909_v2 = vpop.permute.xlu2 %1362  ;;  %v1273_v53 = vadd.f32 %v1268_v58, %v1256_v40  ;;  %v1369_v58 = vstv %s3946_s24  ;;  %s1418_s24 = sadd.s32 3, %s3538_s8 }
 0x19b   : > { %s4000_s27 = sld [smem:[#allocation2 + %s1418_s24]] }
 0x19c   : > { %v1288_v27 = vadd.f32 %v3824_v5, %v1273_v53  ;;  %v3937_v5 = vld [vmem:[%s2767_s22 + $0x121] sm:$0xff] }
 0x19d   : > { %1738 = vrot.lane.b32.xlu1 %v1734_v42, %s2661_s26  ;;  %v1806_v26 = vmul.f32 %v3937_v5, %v1805_v41  ;;  %v1807_v42 = vmul.f32 %v3965_v22, %v1805_v41  ;;  %v1821_v11 = vmul.f32 %v3937_v5, %v1820_v39 }
 0x19e   : > { %v1297_v1 = vadd.f32 %v1295_v56, %v1288_v27  ;;  %v1844_v27 = vstv %s3968_s23  ;;  %v1381_v56 = vstv %s3973_s12  ;;  %s1929_s23 = sadd.s32 4, %s3978_s5  ;;  %s1905_s12 = sadd.s32 2, %s3978_s5 }
 0x19f   : > { %1725 = vrot.lane.b32.xlu0 %v1720_v59, %s2662_s28  ;;  %v1307_v48 = vpop.permute.xlu1 %1306  ;;  %v1383_v41 = vmul.f32 %v3584_v44, %v1381_v56  ;;  %s4021_s24 = sld [smem:[#allocation2 + %s1929_s23]]  ;;  %s1983_s23 = sadd.s32 8, %s3978_s5 }
 0x1a0   : > { %1740 = vrot.lane.b32.xlu2 %v1735_v15, %s2661_s26  ;;  %v1312_v35 = vadd.f32 %v1307_v48, %v1297_v1  ;;  %v1382_v1 = vmul.f32 %v3593_v14, %v1381_v56  ;;  %v1892_v14 = vstv %s3996_s7  ;;  %s1944_s7 = sadd.s32 5, %s3978_s5 }
 0x1a1   : > { %v1285_v43 = vpop.permute.xlu0 %1284 }
 0x1a2   : > { %v1289_v25 = vadd.f32 %v1285_v43, %v1274_v21  ;;  %v3934_v34 = vpop.permute.xlu2 %1408  ;;  %v3992_v43 = vld [vmem:[%s2767_s22 + $0x122] sm:$0xff] }
 0x1a4   : > { %v1298_v30 = vadd.f32 %v1296_v49, %v1289_v25  ;;  %v4006_v25 = vld [vmem:[%s2767_s22 + $0x12a] sm:$0xff] }
 0x1a5   : > { %1773 = vrot.lane.b32.xlu1 %v1768_v37, %s2662_s28  ;;  %v1859_v37 = vstv %s3961_s4  ;;  %s1457_s4 = sadd.s32 6, %s3538_s8  ;;  %s4027_s8 = sld [smem:[#allocation2 + %s1905_s12]] }
 0x1a6   : > { %v1313_v54 = vadd.f32 %v3849_v47, %v1298_v30  ;;  %v1860_v4 = vmul.f32 %v3992_v43, %v1859_v37  ;;  %v1846_v30 = vmul.f32 %v4006_v25, %v1844_v27  ;;  %s4016_s13 = sld [smem:[#allocation2 + %s1457_s4]]  ;;  %s4428_s12 = sadd.s32 14, %s2747_s30 }
 0x1a7   : > { %1771 = vrot.lane.b32.xlu0 %v1767_v23, %s2662_s28  ;;  %v1324_v19 = vpop.permute.xlu1 %1323  ;;  %s4056_s4 = sld [smem:[#allocation4 + %s1375_s21]]  ;;  %s1968_s21 = sadd.s32 7, %s3978_s5 }
 0x1a8   : > { %1786 = vrot.lane.b32.xlu2 %v1782_v16, %s2661_s26  ;;  %v1328_v24 = vadd.f32 %v1324_v19, %v1313_v54  ;;  %v4024_v16 = vld [vmem:[%s2767_s22 + $0x140] sm:$0xff] }
 0x1a9   : > { %v1322_v29 = vpop.permute.xlu0 %1321 }
 0x1aa   : > { %v1327_v13 = vadd.f32 %v1322_v29, %v1312_v35  ;;  %v3959_v10 = vpop.permute.xlu2 %1434  ;;  %v1337_v40 = vadd.f32 %v1335_v51, %v1328_v24  ;;  %v1420_v35 = vstv %s4000_s27  ;;  %s4051_s27 = sld [smem:[#allocation2 + %s1944_s7]]  ;;  %s4088_s7 = smul.u32 9, %s4428_s12 }
 0x1ab   : > { %v1421_v24 = vmul.f32 %v3607_v18, %v1420_v35  ;;  %v1931_v18 = vstv %s4021_s24  ;;  %s4078_s24 = sld [smem:[#allocation2 + %s1968_s21]] }
 0x1ac   : > { %v1336_v60 = vadd.f32 %v1334_v45, %v1327_v13  ;;  %v1861_v45 = vmul.f32 %v4006_v25, %v1859_v37  ;;  %v1894_v13 = vmul.f32 %v4024_v16, %v1892_v14  ;;  %v1459_v39 = vstv %s4016_s13  ;;  %s4071_s13 = sld [smem:[#allocation2 + %s1983_s23]] }
 0x1ad   : > { %1810 = vrot.lane.b32.xlu1 %v1806_v26, %s2662_s28  ;;  %v4033_v26 = vld [vmem:[%s2767_s22 + $0x138] sm:$0xff] }
 0x1ae   : > { %v1351_v47 = vadd.f32 %v3879_v17, %v1336_v60  ;;  %v1422_v60 = vmul.f32 %v3635_v61, %v1420_v35  ;;  %v1907_v61 = vstv %s4027_s8  ;;  %s4083_s8 = sld [smem:[#allocation2 + %s3648_s11]] }
 0x1af   : > { %1788 = vrot.lane.b32.xlu0 %v1783_v52, %s2661_s26  ;;  %v1361_v38 = vpop.permute.xlu1 %1360 }
 0x1b0   : > { %v1366_v17 = vadd.f32 %v1361_v38, %v1351_v47  ;;  %1812 = vrot.lane.b32.xlu2 %v1807_v42, %s2662_s28  ;;  %v1893_v47 = vmul.f32 %v4033_v26, %v1892_v14 }
 0x1b1   : > { %v1348_v59 = vpop.permute.xlu0 %1347 }
 0x1b2   : > { %v1370_v53 = vadd.f32 %v1369_v58, %v1366_v17  ;;  %v1352_v50 = vadd.f32 %v1348_v59, %v1337_v40  ;;  %v3989_v15 = vpop.permute.xlu2 %1471  ;;  %v1908_v40 = vmul.f32 %v4033_v26, %v1907_v61 }
 0x1b4   : > { %2455 = vst.msk [vmem:[%s3098_s6 + $0x80] sm:$0xff] %vm364_vm0, %v1370_v53  ;;  %v1367_v48 = vadd.f32 %v3909_v2, %v1352_v50  ;;  %v1845_v2 = vmul.f32 %v3992_v43, %v1844_v27 }
 0x1b5   : > { %1827 = vrot.lane.b32.xlu1 %v1822_v9, %s2661_s26  ;;  %v1460_v9 = vmul.f32 %v3662_v6, %v1459_v39  ;;  %v1461_v6 = vmul.f32 %v3676_v63, %v1459_v39 }
 0x1b6   : > { %v1371_v21 = vadd.f32 %v1369_v58, %v1367_v48 }
 0x1b7   : > { %1825 = vrot.lane.b32.xlu0 %v1821_v11, %s2661_s26  ;;  %v1396_v49 = vpop.permute.xlu1 %1395 }
 0x1b8   : > { %2456 = vst.msk [vmem:[%s3098_s6 + $0x88] sm:$0xff] %vm364_vm0, %v1371_v21  ;;  %1849 = vrot.lane.b32.xlu2 %v1845_v2, %s2662_s28  ;;  %v1400_v29 = vadd.f32 %v1396_v49, %v1383_v41  ;;  %v1909_v21 = vmul.f32 %v4024_v16, %v1907_v61  ;;  %v4075_v49 = vld [vmem:[%s2767_s22 + $0x141] sm:$0xff]  ;;  %v1946_v2 = vstv %s4051_s27  ;;  %s2016_s27 = sadd.s32 1, %s4088_s7 }
 0x1b9   : > { %v1394_v23 = vpop.permute.xlu0 %1393  ;;  %v1948_v41 = vmul.f32 %v4075_v49, %v1946_v2  ;;  %s4106_s23 = sld [smem:[#allocation2 + %s2016_s27]]  ;;  %s2131_s27 = sadd.s32 15, %s2747_s30 }
 0x1ba   : > { %v4019_v36 = vpop.permute.xlu2 %1488  ;;  %v1399_v19 = vadd.f32 %v1394_v23, %v1382_v1  ;;  %v1495_v23 = vstv %s4056_s4  ;;  %s1544_s4 = sadd.s32 3, %s3648_s11  ;;  %s4142_s17 = smul.u32 9, %s2131_s27 }
 0x1bb   : > { %s4110_s21 = sld [smem:[#allocation2 + %s1544_s4]] }
 0x1bc   : > { %v1414_v52 = vadd.f32 %v3934_v34, %v1399_v19  ;;  %v4047_v34 = vld [vmem:[%s2767_s22 + $0x139] sm:$0xff] }
 0x1bd   : > { %1864 = vrot.lane.b32.xlu1 %v1860_v4, %s2661_s26  ;;  %v1932_v50 = vmul.f32 %v4047_v34, %v1931_v18  ;;  %v1933_v4 = vmul.f32 %v4075_v49, %v1931_v18  ;;  %v1947_v35 = vmul.f32 %v4047_v34, %v1946_v2 }
 0x1be   : > { %v1423_v38 = vadd.f32 %v1421_v24, %v1414_v52  ;;  %v1970_v52 = vstv %s4078_s24  ;;  %v1507_v24 = vstv %s4083_s8  ;;  %s2055_s24 = sadd.s32 4, %s4088_s7  ;;  %s2031_s8 = sadd.s32 2, %s4088_s7 }
 0x1bf   : > { %1851 = vrot.lane.b32.xlu0 %v1846_v30, %s2662_s28  ;;  %v1433_v44 = vpop.permute.xlu1 %1432  ;;  %v1509_v18 = vmul.f32 %v3694_v7, %v1507_v24  ;;  %s4138_s12 = sld [smem:[#allocation2 + %s2031_s8]] }
 0x1c0   : > { %1866 = vrot.lane.b32.xlu2 %v1861_v45, %s2661_s26  ;;  %v1438_v59 = vadd.f32 %v1433_v44, %v1423_v38  ;;  %v1508_v38 = vmul.f32 %v3703_v62, %v1507_v24  ;;  %s4174_s8 = sld [smem:[#allocation4 + %s1501_s25]]  ;;  %s2181_s25 = sadd.s32 4, %s4142_s17 }
 0x1c1   : > { %v1411_v54 = vpop.permute.xlu0 %1410  ;;  %v1546_v7 = vstv %s4110_s21  ;;  %s2142_s21 = sadd.s32 1, %s4142_s17 }
 0x1c2   : > { %v1415_v51 = vadd.f32 %v1411_v54, %v1400_v29  ;;  %v4044_v58 = vpop.permute.xlu2 %1534  ;;  %v4102_v54 = vld [vmem:[%s2767_s22 + $0x13a] sm:$0xff] }
 0x1c4   : > { %v1424_v42 = vadd.f32 %v1422_v60, %v1415_v51  ;;  %v1971_v60 = vmul.f32 %v4102_v54, %v1970_v52  ;;  %v4116_v51 = vld [vmem:[%s2767_s22 + $0x142] sm:$0xff] }
 0x1c5   : > { %1899 = vrot.lane.b32.xlu1 %v1894_v13, %s2662_s28  ;;  %v1985_v13 = vstv %s4071_s13  ;;  %s1583_s13 = sadd.s32 6, %s3648_s11  ;;  %s4132_s11 = sld [smem:[#allocation2 + %s2055_s24]] }
 0x1c6   : > { %v1439_v11 = vadd.f32 %v3959_v10, %v1424_v42  ;;  %v1986_v39 = vmul.f32 %v4102_v54, %v1985_v13  ;;  %v1972_v42 = vmul.f32 %v4116_v51, %v1970_v52  ;;  %s4127_s4 = sld [smem:[#allocation2 + %s1583_s13]] }
 0x1c7   : > { %1897 = vrot.lane.b32.xlu0 %v1893_v47, %s2662_s28  ;;  %v1450_v17 = vpop.permute.xlu1 %1449  ;;  %s4169_s24 = sld [smem:[#allocation2 + %s2142_s21]] }
 0x1c8   : > { %1912 = vrot.lane.b32.xlu2 %v1908_v40, %s2661_s26  ;;  %v1454_v37 = vadd.f32 %v1450_v17, %v1439_v11  ;;  %v4135_v17 = vld [vmem:[%s2767_s22 + $0x158] sm:$0xff]  ;;  %v2018_v40 = vstv %s4106_s23  ;;  %s2157_s23 = sadd.s32 2, %s4142_s17 }
 0x1c9   : > { %v1448_v53 = vpop.permute.xlu0 %1447  ;;  %s4162_s13 = sld [smem:[#allocation2 + %s2157_s23]]  ;;  %s1670_s23 = sadd.s32 3, %s3758_s29 }
 0x1ca   : > { %v1453_v48 = vadd.f32 %v1448_v53, %v1438_v59  ;;  %v4069_v56 = vpop.permute.xlu2 %1560  ;;  %v1463_v1 = vadd.f32 %v1461_v6, %v1454_v37  ;;  %v1547_v37 = vmul.f32 %v3717_v3, %v1546_v7  ;;  %v4165_v3 = vld [vmem:[%s2767_s22 + $0x151] sm:$0xff] }
 0x1cc   : > { %v1462_v27 = vadd.f32 %v1460_v9, %v1453_v48  ;;  %v1987_v9 = vmul.f32 %v4116_v51, %v1985_v13  ;;  %v2020_v48 = vmul.f32 %v4135_v17, %v2018_v40  ;;  %v1585_v2 = vstv %s4127_s4  ;;  %s4198_s4 = sld [smem:[#allocation2 + %s3758_s29]] }
 0x1cd   : > { %1936 = vrot.lane.b32.xlu1 %v1932_v50, %s2662_s28  ;;  %v4148_v50 = vld [vmem:[%s2767_s22 + $0x150] sm:$0xff]  ;;  %v1587_v24 = vmul.f32 %v3786_v33, %v1585_v2 }
 0x1ce   : > { %v1477_v10 = vadd.f32 %v3989_v15, %v1462_v27  ;;  %v1548_v27 = vmul.f32 %v3745_v31, %v1546_v7  ;;  %v2057_v31 = vstv %s4132_s11  ;;  %s2070_s11 = sadd.s32 5, %s4088_s7 }
 0x1cf   : > { %1914 = vrot.lane.b32.xlu0 %v1909_v21, %s2661_s26  ;;  %v1487_v63 = vpop.permute.xlu1 %1486  ;;  %s4219_s21 = sld [smem:[#allocation2 + %s2070_s11]]  ;;  %s2220_s11 = sadd.s32 7, %s4142_s17 }
 0x1d0   : > { %v1492_v15 = vadd.f32 %v1487_v63, %v1477_v10  ;;  %1938 = vrot.lane.b32.xlu2 %v1933_v4, %s2662_s28  ;;  %v2019_v10 = vmul.f32 %v4148_v50, %v2018_v40  ;;  %v2033_v4 = vstv %s4138_s12  ;;  %s4193_s12 = sld [smem:[#allocation2 + %s2181_s25]]  ;;  %s2196_s25 = sadd.s32 5, %s4142_s17 }
 0x1d1   : > { %v1474_v30 = vpop.permute.xlu0 %1473 }
 0x1d2   : > { %v1496_v19 = vadd.f32 %v1495_v23, %v1492_v15  ;;  %v1478_v14 = vadd.f32 %v1474_v30, %v1463_v1  ;;  %v4099_v45 = vpop.permute.xlu2 %1597  ;;  %v2034_v1 = vmul.f32 %v4148_v50, %v2033_v4 }
 0x1d4   : > { %2463 = vst.msk [vmem:[%s3098_s6 + $0x90] sm:$0xff] %vm364_vm0, %v1496_v19  ;;  %v1493_v44 = vadd.f32 %v4019_v36, %v1478_v14  ;;  %v2058_v14 = vmul.f32 %v4165_v3, %v2057_v31 }
 0x1d5   : > { %1953 = vrot.lane.b32.xlu1 %v1948_v41, %s2661_s26  ;;  %v1586_v41 = vmul.f32 %v3772_v20, %v1585_v2 }
 0x1d6   : > { %v1497_v29 = vadd.f32 %v1495_v23, %v1493_v44 }
 0x1d7   : > { %1951 = vrot.lane.b32.xlu0 %v1947_v35, %s2661_s26  ;;  %v1522_v36 = vpop.permute.xlu1 %1521 }
 0x1d8   : > { %2464 = vst.msk [vmem:[%s3098_s6 + $0x98] sm:$0xff] %vm364_vm0, %v1497_v29  ;;  %1975 = vrot.lane.b32.xlu2 %v1971_v60, %s2662_s28  ;;  %v1526_v53 = vadd.f32 %v1522_v36, %v1509_v18  ;;  %v2035_v29 = vmul.f32 %v4135_v17, %v2033_v4  ;;  %v2159_v60 = vstv %s4162_s13  ;;  %v4202_v18 = vld [vmem:[%s2767_s22 + $0x170] sm:$0xff]  ;;  %s1671_s13 = sld [smem:[#allocation2 + %s1670_s23]] }
 0x1d9   : > { %v1520_v47 = vpop.permute.xlu0 %1519  ;;  %s4268_s23 = sld [smem:[#allocation2 + %s2220_s11]]  ;;  %s1961_s11 = sadd.s32 6, %s3978_s5 }
 0x1da   : > { %v4130_v61 = vpop.permute.xlu2 %1614  ;;  %v1525_v62 = vadd.f32 %v1520_v47, %v1508_v38  ;;  %v2144_v47 = vstv %s4169_s24  ;;  %s1709_s24 = sadd.s32 6, %s3758_s29  ;;  %s4248_s29 = sld [smem:[#allocation2 + %s2196_s25]] }
 0x1db   : > { %s4302_s25 = sld [smem:[#allocation2 + %s3868_s9]] }
 0x1dc   : > { %v1540_v21 = vadd.f32 %v4044_v58, %v1525_v62 }
 0x1dd   : > { %1990 = vrot.lane.b32.xlu1 %v1986_v39, %s2661_s26  ;;  %v1621_v39 = vstv %s4174_s8  ;;  %s2094_s8 = sadd.s32 7, %s4088_s7 }
 0x1de   : > { %v1549_v58 = vadd.f32 %v1547_v37, %v1540_v21  ;;  %v4216_v21 = vld [vmem:[%s2767_s22 + $0x169] sm:$0xff]  ;;  %v2183_v37 = vstv %s4193_s12  ;;  %s4237_s12 = sld [smem:[#allocation2 + %s1709_s24]] }
 0x1df   : > { %1977 = vrot.lane.b32.xlu0 %v1972_v42, %s2662_s28  ;;  %v1559_v59 = vpop.permute.xlu1 %1558 }
 0x1e0   : > { %1992 = vrot.lane.b32.xlu2 %v1987_v9, %s2661_s26  ;;  %v1564_v30 = vadd.f32 %v1559_v59, %v1549_v58  ;;  %v2146_v9 = vmul.f32 %v4202_v18, %v2144_v47  ;;  %v2184_v58 = vmul.f32 %v4216_v21, %v2183_v37 }
 0x1e1   : > { %v1537_v11 = vpop.permute.xlu0 %1536 }
 0x1e2   : > { %v1541_v6 = vadd.f32 %v1537_v11, %v1526_v53  ;;  %v4160_v23 = vpop.permute.xlu2 %1660 }
 0x1e4   : > { %v1550_v63 = vadd.f32 %v1548_v27, %v1541_v6  ;;  %v1633_v27 = vstv %s4198_s4  ;;  %s4242_s4 = sld [smem:[#allocation2 + %s2094_s8]] }
 0x1e5   : > { %2025 = vrot.lane.b32.xlu1 %v2020_v48, %s2662_s28 }
 0x1e6   : > { %v1565_v35 = vadd.f32 %v4069_v56, %v1550_v63  ;;  %v4189_v56 = vld [vmem:[%s2767_s22 + $0x168] sm:$0xff]  ;;  %v1634_v63 = vmul.f32 %v3813_v32, %v1633_v27  ;;  %v4246_v32 = vld [vmem:[%s2767_s22 + $0x171] sm:$0xff] }
 0x1e7   : > { %2023 = vrot.lane.b32.xlu0 %v2019_v10, %s2662_s28  ;;  %v1576_v15 = vpop.permute.xlu1 %1575  ;;  %v2145_v33 = vmul.f32 %v4189_v56, %v2144_v47  ;;  %v2160_v40 = vmul.f32 %v4189_v56, %v2159_v60  ;;  %v4227_v10 = vld [vmem:[%s2767_s22 + $0x159] sm:$0xff] }
 0x1e8   : > { %2038 = vrot.lane.b32.xlu2 %v2034_v1, %s2661_s26  ;;  %v1580_v13 = vadd.f32 %v1576_v15, %v1565_v35  ;;  %v2059_v4 = vmul.f32 %v4227_v10, %v2057_v31  ;;  %v1635_v15 = vmul.f32 %v3804_v46, %v1633_v27  ;;  %v1672_v31 = vstv %s1671_s13  ;;  %s2235_s13 = sadd.s32 8, %s4142_s17 }
 0x1e9   : > { %v1574_v19 = vpop.permute.xlu0 %1573  ;;  %s4287_s24 = sld [smem:[#allocation2 + %s2235_s13]] }
 0x1ea   : > { %v1579_v44 = vadd.f32 %v1574_v19, %v1564_v30  ;;  %v4185_v20 = vpop.permute.xlu2 %1686  ;;  %v2185_v19 = vmul.f32 %v4246_v32, %v2183_v37  ;;  %s4361_s13 = sld [smem:[#allocation2 + %s4088_s7]] }
 0x1ec   : > { %v1588_v52 = vadd.f32 %v1586_v41, %v1579_v44  ;;  %v2072_v41 = vstv %s4219_s21  ;;  %s4273_s21 = sld [smem:[#allocation4 + %s1627_s20]]  ;;  %s2109_s20 = sadd.s32 8, %s4088_s7 }
 0x1ed   : > { %2062 = vrot.lane.b32.xlu1 %v2058_v14, %s2662_s28  ;;  %v2074_v44 = vmul.f32 %v4227_v10, %v2072_v41  ;;  %s4297_s8 = sld [smem:[#allocation2 + %s2109_s20]]  ;;  %s2048_s20 = sadd.s32 3, %s4088_s7 }
 0x1ee   : > { %v1603_v36 = vadd.f32 %v4099_v45, %v1588_v52  ;;  %v1589_v45 = vadd.f32 %v1587_v24, %v1580_v13  ;;  %v1673_v13 = vmul.f32 %v3827_v28, %v1672_v31  ;;  %v1674_v52 = vmul.f32 %v3855_v0, %v1672_v31 }
 0x1ef   : > { %2040 = vrot.lane.b32.xlu0 %v2035_v29, %s2661_s26  ;;  %v1613_v38 = vpop.permute.xlu1 %1612  ;;  %v2096_v28 = vstv %s4242_s4  ;;  %v2198_v0 = vstv %s4248_s29  ;;  %s1835_s4 = sadd.s32 6, %s3868_s9 }
 0x1f0   : > { %v1618_v42 = vadd.f32 %v1613_v38, %v1603_v36  ;;  %2149 = vrot.lane.b32.xlu2 %v2145_v33, %s2662_s28  ;;  %v2073_v36 = vmul.f32 %v4165_v3, %v2072_v41 }
 0x1f1   : > { %v1600_v62 = vpop.permute.xlu0 %1599 }
 0x1f2   : > { %v1622_v7 = vadd.f32 %v1621_v39, %v1618_v42  ;;  %v1604_v59 = vadd.f32 %v1600_v62, %v1589_v45  ;;  %v4213_v11 = vpop.permute.xlu2 %1723  ;;  %v2199_v42 = vmul.f32 %v4216_v21, %v2198_v0 }
 0x1f4   : > { %2471 = vst.msk [vmem:[%s3098_s6 + $0xa0] sm:$0xff] %vm364_vm0, %v1622_v7  ;;  %v1619_v53 = vadd.f32 %v4130_v61, %v1604_v59  ;;  %v2161_v61 = vmul.f32 %v4202_v18, %v2159_v60  ;;  %v1711_v60 = vstv %s4237_s12  ;;  %s1796_s12 = sadd.s32 3, %s3868_s9  ;;  %s1872_s9 = sld [smem:[#allocation4 + %s1753_s10]] }
 0x1f5   : > { %2164 = vrot.lane.b32.xlu1 %v2160_v40, %s2661_s26  ;;  %v1712_v62 = vmul.f32 %v3882_v12, %v1711_v60  ;;  %v1713_v12 = vmul.f32 %v3896_v57, %v1711_v60  ;;  %v1747_v57 = vstv %s4273_s21  ;;  %s1922_s10 = sadd.s32 3, %s3978_s5 }
 0x1f6   : > { %v1623_v48 = vadd.f32 %v1621_v39, %v1619_v53  ;;  %v2200_v53 = vmul.f32 %v4246_v32, %v2198_v0  ;;  %s1923_s29 = sld [smem:[#allocation2 + %s1922_s10]] }
 0x1f7   : > { %2151 = vrot.lane.b32.xlu0 %v2146_v9, %s2662_s28  ;;  %v1648_v6 = vpop.permute.xlu1 %1647 }
 0x1f8   : > { %2472 = vst.msk [vmem:[%s3098_s6 + $0xa8] sm:$0xff] %vm364_vm0, %v1623_v48  ;;  %2166 = vrot.lane.b32.xlu2 %v2161_v61, %s2661_s26  ;;  %v1652_v14 = vadd.f32 %v1648_v6, %v1635_v15  ;;  %v4291_v6 = vld [vmem:[%s2767_s22 + $0x172] sm:$0xff]  ;;  %v2222_v61 = vstv %s4268_s23  ;;  %s1962_s23 = sld [smem:[#allocation2 + %s1961_s11]] }
 0x1f9   : > { %v1646_v2 = vpop.permute.xlu0 %1645  ;;  %v4306_v15 = vld [vmem:[%s2767_s22 + $0x16a] sm:$0xff]  ;;  %v2224_v41 = vmul.f32 %v4291_v6, %v2222_v61 }
 0x1fa   : > { %v4240_v1 = vpop.permute.xlu2 %1740  ;;  %v1651_v30 = vadd.f32 %v1646_v2, %v1634_v63  ;;  %v4295_v2 = vld [vmem:[%s2767_s22 + $0x15a] sm:$0xff] }
 0x1fb   : > { %v2098_v63 = vmul.f32 %v4295_v2, %v2096_v28 }
 0x1fc   : > { %v1666_v29 = vadd.f32 %v4160_v23, %v1651_v30  ;;  %v4264_v23 = vld [vmem:[%s2767_s22 + $0x152] sm:$0xff]  ;;  %s1797_s22 = sld [smem:[#allocation2 + %s1796_s12]]  ;;  %s2087_s12 = sadd.s32 6, %s4088_s7 }
 0x1fd   : > { %2188 = vrot.lane.b32.xlu1 %v2184_v58, %s2662_s28  ;;  %v2097_v7 = vmul.f32 %v4264_v23, %v2096_v28  ;;  %s2213_s7 = sadd.s32 6, %s4142_s17 }
 0x1fe   : > { %v1675_v39 = vadd.f32 %v1673_v13, %v1666_v29  ;;  %v2237_v29 = vstv %s4287_s24  ;;  %v2111_v13 = vstv %s4297_s8  ;;  %s4364_s24 = sld [smem:[#allocation2 + %s2048_s20]] }
 0x1ff   : > { %2064 = vrot.lane.b32.xlu0 %v2059_v4, %s2662_s28  ;;  %v1685_v46 = vpop.permute.xlu1 %1684  ;;  %s2136_s8 = sld [smem:[#allocation2 + %s4142_s17]] }
 0x200   : > { %2190 = vrot.lane.b32.xlu2 %v2185_v19, %s2662_s28  ;;  %v1690_v45 = vadd.f32 %v1685_v46, %v1675_v39  ;;  %v2223_v19 = vmul.f32 %v4306_v15, %v2222_v61 }
 0x201   : > { %v1663_v35 = vpop.permute.xlu0 %1662 }
 0x202   : > { %v1667_v24 = vadd.f32 %v1663_v35, %v1652_v14  ;;  %v4261_v47 = vpop.permute.xlu2 %1786 }
 0x204   : > { %v1676_v38 = vadd.f32 %v1674_v52, %v1667_v24  ;;  %v1759_v52 = vstv %s4302_s25  ;;  %s2174_s25 = sadd.s32 3, %s4142_s17  ;;  %s2250_s17 = sld [smem:[#allocation4 + %s2131_s27]] }
 0x205   : > { %2079 = vrot.lane.b32.xlu1 %v2074_v44, %s2661_s26  ;;  %v1760_v39 = vmul.f32 %v3923_v55, %v1759_v52  ;;  %v1761_v28 = vmul.f32 %v3914_v8, %v1759_v52 }
 0x206   : > { %v1691_v59 = vadd.f32 %v4185_v20, %v1676_v38  ;;  %v2113_v38 = vmul.f32 %v4295_v2, %v2111_v13 }
 0x207   : > { %2077 = vrot.lane.b32.xlu0 %v2073_v36, %s2661_s26  ;;  %v1702_v33 = vpop.permute.xlu1 %1701  ;;  %v2112_v36 = vmul.f32 %v4264_v23, %v2111_v13 }
 0x208   : > { %2203 = vrot.lane.b32.xlu2 %v2199_v42, %s2661_s26  ;;  %v1706_v48 = vadd.f32 %v1702_v33, %v1691_v59  ;;  %v1798_v42 = vstv %s1797_s22  ;;  %s4371_s22 = sld [smem:[#allocation2 + %s2174_s25]] }
 0x209   : > { %v1700_v40 = vpop.permute.xlu0 %1699  ;;  %v1799_v59 = vmul.f32 %v3937_v5, %v1798_v42  ;;  %v1800_v8 = vmul.f32 %v3965_v22, %v1798_v42 }
 0x20a   : > { %v1705_v9 = vadd.f32 %v1700_v40, %v1690_v45  ;;  %v4285_v27 = vpop.permute.xlu2 %1812 }
 0x20c   : > { %v1714_v37 = vadd.f32 %v1712_v62, %v1705_v9  ;;  %v2239_v62 = vmul.f32 %v4291_v6, %v2237_v29 }
 0x20d   : > { %2101 = vrot.lane.b32.xlu1 %v2097_v7, %s2662_s28 }
 0x20e   : > { %v1729_v20 = vadd.f32 %v4213_v11, %v1714_v37  ;;  %v1715_v11 = vadd.f32 %v1713_v12, %v1706_v48 }
 0x20f   : > { %2205 = vrot.lane.b32.xlu0 %v2200_v53, %s2661_s26  ;;  %v1739_v58 = vpop.permute.xlu1 %1738 }
 0x210   : > { %v1744_v4 = vadd.f32 %v1739_v58, %v1729_v20  ;;  %2103 = vrot.lane.b32.xlu2 %v2098_v63, %s2662_s28 }
 0x211   : > { %v1726_v30 = vpop.permute.xlu0 %1725 }
 0x212   : > { %v1748_v31 = vadd.f32 %v1747_v57, %v1744_v4  ;;  %v1730_v46 = vadd.f32 %v1726_v30, %v1715_v11  ;;  %v1850_v35 = vpop.permute.xlu2 %1849 }
 0x214   : > { %2479 = vst.msk [vmem:[%s3098_s6 + $0xb0] sm:$0xff] %vm364_vm0, %v1748_v31  ;;  %v1745_v14 = vadd.f32 %v4240_v1, %v1730_v46  ;;  %v2238_v1 = vmul.f32 %v4306_v15, %v2237_v29 }
 0x215   : > { %2229 = vrot.lane.b32.xlu1 %v2224_v41, %s2662_s28  ;;  %v1873_v41 = vstv %s1872_s9  ;;  %s4434_s9 = sadd.s32 14, %s2747_s30 }
 0x216   : > { %v1749_v44 = vadd.f32 %v1747_v57, %v1745_v14 }
 0x217   : > { %2227 = vrot.lane.b32.xlu0 %v2223_v19, %s2662_s28  ;;  %v1774_v24 = vpop.permute.xlu1 %1773  ;;  %s1836_s28 = sld [smem:[#allocation2 + %s1835_s4]] }
 0x218   : > { %2480 = vst.msk [vmem:[%s3098_s6 + $0xb8] sm:$0xff] %vm364_vm0, %v1749_v44  ;;  %2116 = vrot.lane.b32.xlu2 %v2112_v36, %s2661_s26  ;;  %v1778_v55 = vadd.f32 %v1774_v24, %v1761_v28  ;;  %s4374_s4 = sld [smem:[#allocation2 + %s2087_s12]] }
 0x219   : > { %v1772_v60 = vpop.permute.xlu0 %1771 }
 0x21a   : > { %v1867_v0 = vpop.permute.xlu2 %1866  ;;  %v1777_v33 = vadd.f32 %v1772_v60, %v1760_v39  ;;  %v1924_v39 = vstv %s1923_s29 }
 0x21b   : > { %v1925_v42 = vmul.f32 %v4047_v34, %v1924_v39 }
 0x21c   : > { %v1792_v7 = vadd.f32 %v4261_v47, %v1777_v33 }
 0x21d   : > { %2242 = vrot.lane.b32.xlu1 %v2238_v1, %s2661_s26  ;;  %v1837_v53 = vstv %s1836_s28  ;;  %s4383_s28 = sld [smem:[#allocation2 + %s2213_s7]] }
 0x21e   : > { %v1801_v37 = vadd.f32 %v1799_v59, %v1792_v7  ;;  %v1838_v57 = vmul.f32 %v3992_v43, %v1837_v53  ;;  %v1839_v4 = vmul.f32 %v4006_v25, %v1837_v53 }
 0x21f   : > { %2118 = vrot.lane.b32.xlu0 %v2113_v38, %s2661_s26  ;;  %v1811_v45 = vpop.permute.xlu1 %1810 }
 0x220   : > { %2244 = vrot.lane.b32.xlu2 %v2239_v62, %s2661_s26  ;;  %v1816_v61 = vadd.f32 %v1811_v45, %v1801_v37  ;;  %s1884_s26 = sld [smem:[#allocation2 + %s3978_s5]]  ;;  %v1926_v45 = vmul.f32 %v4075_v49, %v1924_v39  ;;  %s4433_s5 = sadd.s32 13, %s2747_s30 }
 0x221   : > { %v1789_v40 = vpop.permute.xlu0 %1788  ;;  %s1998_s21 = sld [smem:[#allocation4 + %s4433_s5]] }
 0x222   : > { %v1793_v9 = vadd.f32 %v1789_v40, %v1778_v55  ;;  %v1913_v48 = vpop.permute.xlu2 %1912  ;;  %v1963_v55 = vstv %s1962_s23 }
 0x223   : > { %v1965_v34 = vmul.f32 %v4116_v51, %v1963_v55 }
 0x224   : > { %v1802_v12 = vadd.f32 %v1800_v8, %v1793_v9  ;;  %v1964_v8 = vmul.f32 %v4102_v54, %v1963_v55 }
 0x226   : > { %v1817_v5 = vadd.f32 %v4285_v27, %v1802_v12  ;;  %v1885_v52 = vstv %s1884_s26  ;;  %s4387_s26 = sld [smem:[#allocation4 + %s4434_s9]] }
 0x227   : > { %v1828_v20 = vpop.permute.xlu1 %1827  ;;  %v1886_v24 = vmul.f32 %v4033_v26, %v1885_v52  ;;  %v1887_v36 = vmul.f32 %v4024_v16, %v1885_v52  ;;  %v2050_v52 = vstv %s4364_s24 }
 0x228   : > { %v1832_v22 = vadd.f32 %v1828_v20, %v1817_v5 }
 0x229   : > { %v1826_v58 = vpop.permute.xlu0 %1825 }
 0x22a   : > { %v1831_v47 = vadd.f32 %v1826_v58, %v1816_v61  ;;  %v1939_v11 = vpop.permute.xlu2 %1938  ;;  %v1841_v19 = vadd.f32 %v1839_v4, %v1832_v22  ;;  %v1999_v61 = vstv %s1998_s21 }
 0x22c   : > { %v1840_v63 = vadd.f32 %v1838_v57, %v1831_v47 }
 0x22e   : > { %v1855_v30 = vadd.f32 %v1850_v35, %v1840_v63 }
 0x22f   : > { %v1865_v31 = vpop.permute.xlu1 %1864 }
 0x230   : > { %v1870_v46 = vadd.f32 %v1865_v31, %v1855_v30 }
 0x231   : > { %v1852_v43 = vpop.permute.xlu0 %1851 }
 0x232   : > { %v1874_v14 = vadd.f32 %v1873_v41, %v1870_v46  ;;  %v1856_v44 = vadd.f32 %v1852_v43, %v1841_v19  ;;  %v1976_v29 = vpop.permute.xlu2 %1975  ;;  %v2011_v19 = vstv %s4361_s13 }
 0x234   : > { %2487 = vst.msk [vmem:[%s3098_s6 + $0xc0] sm:$0xff] %vm364_vm0, %v1874_v14  ;;  %v1871_v27 = vadd.f32 %v1867_v0, %v1856_v44 }
 0x236   : > { %v1875_v13 = vadd.f32 %v1873_v41, %v1871_v27  ;;  %v2012_v27 = vmul.f32 %v4148_v50, %v2011_v19 }
 0x237   : > { %v1900_v25 = vpop.permute.xlu1 %1899 }
 0x238   : > { %2488 = vst.msk [vmem:[%s3098_s6 + $0xc8] sm:$0xff] %vm364_vm0, %v1875_v13  ;;  %v1904_v28 = vadd.f32 %v1900_v25, %v1887_v36  ;;  %v2137_v13 = vstv %s2136_s8 }
 0x239   : > { %v1898_v35 = vpop.permute.xlu0 %1897 }
 0x23a   : > { %v1993_v60 = vpop.permute.xlu2 %1992  ;;  %v1903_v1 = vadd.f32 %v1898_v35, %v1886_v24  ;;  %v2139_v35 = vmul.f32 %v4202_v18, %v2137_v13 }
 0x23c   : > { %v1918_v33 = vadd.f32 %v1913_v48, %v1903_v1 }
 0x23e   : > { %v1927_v26 = vadd.f32 %v1925_v42, %v1918_v33  ;;  %v2138_v33 = vmul.f32 %v4189_v56, %v2137_v13 }
 0x23f   : > { %v1937_v38 = vpop.permute.xlu1 %1936 }
 0x240   : > { %v1942_v16 = vadd.f32 %v1937_v38, %v1927_v26  ;;  %v2176_v38 = vstv %s4371_s22 }
 0x241   : > { %v1915_v0 = vpop.permute.xlu0 %1914 }
 0x242   : > { %v1919_v62 = vadd.f32 %v1915_v0, %v1904_v28  ;;  %v2039_v40 = vpop.permute.xlu2 %2038  ;;  %v2089_v0 = vstv %s4374_s4 }
 0x244   : > { %v1928_v7 = vadd.f32 %v1926_v45, %v1919_v62  ;;  %v2178_v62 = vmul.f32 %v4246_v32, %v2176_v38  ;;  %v2177_v32 = vmul.f32 %v4216_v21, %v2176_v38 }
 0x246   : > { %v1943_v53 = vadd.f32 %v1939_v11, %v1928_v7 }
 0x247   : > { %v1954_v59 = vpop.permute.xlu1 %1953 }
 0x248   : > { %v1958_v48 = vadd.f32 %v1954_v59, %v1943_v53 }
 0x249   : > { %v1952_v9 = vpop.permute.xlu0 %1951 }
 0x24a   : > { %v1957_v37 = vadd.f32 %v1952_v9, %v1942_v16  ;;  %v2150_v49 = vpop.permute.xlu2 %2149  ;;  %v1967_v5 = vadd.f32 %v1965_v34, %v1958_v48  ;;  %v2125_v34 = vstv %s4387_s26 }
 0x24b   : > { %v2155_v26 = vadd.f32 %v2150_v49, %v2138_v33 }
 0x24c   : > { %v1966_v12 = vadd.f32 %v1964_v8, %v1957_v37 }
 0x24e   : > { %v1981_v20 = vadd.f32 %v1976_v29, %v1966_v12 }
 0x24f   : > { %v1991_v57 = vpop.permute.xlu1 %1990 }
 0x250   : > { %v1996_v58 = vadd.f32 %v1991_v57, %v1981_v20  ;;  %v2215_v20 = vstv %s4383_s28 }
 0x251   : > { %v1978_v47 = vpop.permute.xlu0 %1977  ;;  %v2217_v57 = vmul.f32 %v4291_v6, %v2215_v20  ;;  %v2251_v6 = vstv %s2250_s17 }
 0x252   : > { %v2000_v22 = vadd.f32 %v1999_v61, %v1996_v58  ;;  %v1982_v54 = vadd.f32 %v1978_v47, %v1967_v5  ;;  %v2167_v4 = vpop.permute.xlu2 %2166 }
 0x254   : > { %2495 = vst.msk [vmem:[%s3098_s6 + $0xd0] sm:$0xff] %vm364_vm0, %v2000_v22  ;;  %v1997_v63 = vadd.f32 %v1993_v60, %v1982_v54  ;;  %v2051_v60 = vmul.f32 %v4165_v3, %v2050_v52  ;;  %v2013_v3 = vmul.f32 %v4135_v17, %v2011_v19  ;;  %v2052_v17 = vmul.f32 %v4227_v10, %v2050_v52 }
 0x255   : > { %v2216_v54 = vmul.f32 %v4306_v15, %v2215_v20 }
 0x256   : > { %v2001_v11 = vadd.f32 %v1999_v61, %v1997_v63 }
 0x257   : > { %v2026_v30 = vpop.permute.xlu1 %2025 }
 0x258   : > { %2496 = vst.msk [vmem:[%s3098_s6 + $0xd8] sm:$0xff] %vm364_vm0, %v2001_v11  ;;  %v2030_v59 = vadd.f32 %v2026_v30, %v2013_v3  ;;  %v2091_v30 = vmul.f32 %v4295_v2, %v2089_v0 }
 0x259   : > { %v2024_v51 = vpop.permute.xlu0 %2023 }
 0x25a   : > { %v2191_v31 = vpop.permute.xlu2 %2190  ;;  %v2029_v29 = vadd.f32 %v2024_v51, %v2012_v27 }
 0x25c   : > { %v2044_v36 = vadd.f32 %v2039_v40, %v2029_v29  ;;  %v2090_v40 = vmul.f32 %v4264_v23, %v2089_v0 }
 0x25e   : > { %v2053_v39 = vadd.f32 %v2051_v60, %v2044_v36 }
 0x25f   : > { %v2063_v41 = vpop.permute.xlu1 %2062 }
 0x260   : > { %v2068_v42 = vadd.f32 %v2063_v41, %v2053_v39 }
 0x261   : > { %v2041_v46 = vpop.permute.xlu0 %2040 }
 0x262   : > { %v2204_v44 = vpop.permute.xlu2 %2203  ;;  %v2045_v53 = vadd.f32 %v2041_v46, %v2030_v59 }
 0x264   : > { %v2054_v21 = vadd.f32 %v2052_v17, %v2045_v53 }
 0x267   : > { %v2165_v43 = vpop.permute.xlu1 %2164 }
 0x268   : > { %v2170_v16 = vadd.f32 %v2165_v43, %v2155_v26 }
 0x269   : > { %v2152_v14 = vpop.permute.xlu0 %2151 }
 0x26a   : > { %v2104_v50 = vpop.permute.xlu2 %2103  ;;  %v2156_v1 = vadd.f32 %v2152_v14, %v2139_v35  ;;  %v2179_v23 = vadd.f32 %v2177_v32, %v2170_v16 }
 0x26c   : > { %v2171_v45 = vadd.f32 %v2167_v4, %v2156_v1 }
 0x26e   : > { %v2180_v56 = vadd.f32 %v2178_v62, %v2171_v45 }
 0x26f   : > { %v2189_v25 = vpop.permute.xlu1 %2188 }
 0x270   : > { %v2195_v37 = vadd.f32 %v2191_v31, %v2180_v56  ;;  %v2194_v58 = vadd.f32 %v2189_v25, %v2179_v23 }
 0x271   : > { %v2065_v24 = vpop.permute.xlu0 %2064 }
 0x272   : > { %v2117_v7 = vpop.permute.xlu2 %2116  ;;  %v2069_v47 = vadd.f32 %v2065_v24, %v2054_v21  ;;  %v2209_v4 = vadd.f32 %v2204_v44, %v2194_v58 }
 0x274   : > { %v2218_v19 = vadd.f32 %v2216_v54, %v2209_v4 }
 0x277   : > { %v2080_v28 = vpop.permute.xlu1 %2079 }
 0x278   : > { %v2084_v11 = vadd.f32 %v2080_v28, %v2069_v47 }
 0x279   : > { %v2078_v18 = vpop.permute.xlu0 %2077 }
 0x27a   : > { %v2083_v55 = vadd.f32 %v2078_v18, %v2068_v42  ;;  %v2245_v63 = vpop.permute.xlu2 %2244  ;;  %v2093_v46 = vadd.f32 %v2091_v30, %v2084_v11 }
 0x27c   : > { %v2092_v8 = vadd.f32 %v2090_v40, %v2083_v55  ;;  %v2108_v29 = vadd.f32 %v2104_v50, %v2093_v46 }
 0x27f   : > { %v2102_v9 = vpop.permute.xlu1 %2101 }
 0x280   : > { %v2107_v48 = vadd.f32 %v2102_v9, %v2092_v8 }
 0x281   : > { %v2206_v12 = vpop.permute.xlu0 %2205 }
 0x282   : > { %v2210_v49 = vadd.f32 %v2206_v12, %v2195_v37  ;;  %v2122_v61 = vadd.f32 %v2117_v7, %v2107_v48 }
 0x284   : > { %v2126_v5 = vadd.f32 %v2125_v34, %v2122_v61  ;;  %v2219_v22 = vadd.f32 %v2217_v57, %v2210_v49 }
 0x286   : > { %2503 = vst.msk [vmem:[%s3098_s6 + $0xe0] sm:$0xff] %vm364_vm0, %v2126_v5 }
 0x287   : > { %v2230_v10 = vpop.permute.xlu1 %2229 }
 0x288   : > { %v2234_v51 = vadd.f32 %v2230_v10, %v2219_v22 }
 0x289   : > { %v2228_v41 = vpop.permute.xlu0 %2227 }
 0x28a   : > { %v2249_v31 = vadd.f32 %v2245_v63, %v2234_v51  ;;  %v2233_v14 = vadd.f32 %v2228_v41, %v2218_v19 }
 0x28c   : > { %v2253_v43 = vadd.f32 %v2251_v6, %v2249_v31 }
 0x28e   : > { %2512 = vst.msk [vmem:[%s3098_s6 + $0xf8] sm:$0xff] %vm364_vm0, %v2253_v43 }
 0x28f   : > { %v2243_v27 = vpop.permute.xlu1 %2242 }
 0x290   : > { %v2248_v15 = vadd.f32 %v2243_v27, %v2233_v14 }
 0x291   : > { %v2119_v13 = vpop.permute.xlu0 %2118 }
 0x292   : > { %v2252_v44 = vadd.f32 %v2251_v6, %v2248_v15  ;;  %v2123_v52 = vadd.f32 %v2119_v13, %v2108_v29 }
 0x294   : > { %2511 = vst.msk [vmem:[%s3098_s6 + $0xf0] sm:$0xff] %vm364_vm0, %v2252_v44  ;;  %v2127_v2 = vadd.f32 %v2125_v34, %v2123_v52 }
 0x296   : > { %2504 = vst.msk [vmem:[%s3098_s6 + $0xe8] sm:$0xff] %vm364_vm0, %v2127_v2 }
 0x297 PF: > { %s15_s16 = sadd.s32 1, %s2657_s16   ;;  %s4435_s12 = smov %s2649_s14 }
 0x298   : > { %p12_p10 = scmp.ge.s32.totalorder %s15_s16, 8   ;;  %s4436_s13 = smov %s2653_s15 }
 0x299   : > { %s4437_s14 = smov %s4440_s18  ;;  %s4438_s15 = smov %s4444_s19 }
 0x29a   :  { %14 = sbr.rel (!%p12_p10) target bundleno = 4 (0x4), region = 101 }
 0x29f   :  { %2289 = vsyncpa [#allocation3], 1 }
 0x2a0   :  { %2291 = vsyncpa [#allocation3 + $0x1], 1 }
 0x2a1   :  { %2292 = vsyncpa [#allocation5], 1 }

</bundles_post_ra>
